<compile_context>
chip_gen: v5e
topology: v5e:2x2
jax: 0.10.0
libtpu: 0.0.40
codegen_flags: <defaults>
</compile_context>

<pallas_src>
import functools
import math

import numpy as np
import jax
import jax.numpy as jnp
from jax import lax
from jax.experimental import pallas as pl
from jax.experimental.pallas import tpu as pltpu


def _resblock_kernel(x_ref, w1_ref, w2_ref, wsk_ref, bsk_ref, mask_ref,
                     o_ref, y1pad_ref, *, H, W, Wp):
    """One batch element per grid step.

    x_ref:     ((H+3)*Wp, Cin) bf16  zero-padded input plane, channels-last, rows
                                     flattened with padded row width Wp = W + 2.
    w1_ref:    (9, Cin, Cin)  bf16   conv1 taps (tap t = ky*3 + kx), EqualConv2d-scaled.
    w2_ref:    (9, Cin, Cout) bf16   conv2 taps.
    wsk_ref:   (Cin, Cout)    bf16   1x1 skip-conv weight.
    bsk_ref:   (1, Cout)      f32    skip-conv bias.
    mask_ref:  (H*Wp, 1)      f32    1.0 on real columns (w < W), 0.0 on the 2 pad cols.
    o_ref:     (H*Wp, Cout)   f32    output plane (pad columns are junk, cropped outside).
    y1pad_ref: ((H+3)*Wp, Cin) f32   scratch: conv1 activation re-zero-padded for conv2.
    """
    L = H * Wp
    HPF = (H + 3) * Wp
    Cin = x_ref.shape[-1]
    Cout = o_ref.shape[-1]

    # ---- conv1: 3x3 "same", Cin -> Cin, no bias (EqualConv2d), LeakyReLU(0.2) ----
    # bf16 @ bf16 -> f32 accumulate: native single-pass MXU.
    acc1 = jnp.zeros((L, Cin), jnp.float32)
    for ky in range(3):
        for kx in range(3):
            off = ky * Wp + kx
            acc1 = acc1 + jnp.dot(x_ref[off:off + L, :], w1_ref[ky * 3 + kx],
                                  preferred_element_type=jnp.float32)
    y1 = jnp.maximum(acc1, 0.2 * acc1)        # LeakyReLU(0.2), f32 on the VPU
    y1 = y1 * mask_ref[...]                   # zero the 2 junk pad columns (lane-bcast)

    # Re-zero only the halo rows of the scratch; the middle L rows are fully overwritten.
    # NOTE: must run every step (not under pl.when(program_id==0)) because a "parallel"
    # grid axis gives each TensorCore its own scratch instance.
    y1pad_ref[0:Wp + 1, :] = jnp.zeros((Wp + 1, Cin), jnp.float32)
    y1pad_ref[Wp + 1 + L:HPF, :] = jnp.zeros((HPF - (Wp + 1 + L), Cin), jnp.float32)
    y1pad_ref[Wp + 1:Wp + 1 + L, :] = y1

    # ---- conv2: 3x3 "same", Cin -> Cout, no bias, LeakyReLU(0.2) ----
    acc2 = jnp.zeros((L, Cout), jnp.float32)
    for ky in range(3):
        for kx in range(3):
            off = ky * Wp + kx
            acc2 = acc2 + jnp.dot(
                y1pad_ref[off:off + L, :].astype(jnp.bfloat16),   # bf16 at the dot only
                w2_ref[ky * 3 + kx],
                preferred_element_type=jnp.float32)
    y2 = jnp.maximum(acc2, 0.2 * acc2)

    # ---- skip: 1x1 conv Cin -> Cout with bias ----
    skip = jnp.dot(x_ref[Wp + 1:Wp + 1 + L, :], wsk_ref[...],
                   preferred_element_type=jnp.float32) + bsk_ref[...]

    o_ref[...] = (y2 + skip).astype(o_ref.dtype)


def resblock_forward(x, w1, w2, w_skip, b_skip):
    """NCHW float32 in / NCHW float32 out, matching the PyTorch ResBlock forward."""
    N, Cin, H, W = x.shape
    Cout = w2.shape[0]
    Wp = W + 2                      # padded row width
    HPF = (H + 3) * Wp              # padded+flattened rows (incl. 1 slack row)
    L = H * Wp

    s_conv1 = 1.0 / math.sqrt(Cin * 3 * 3)   # EqualConv2d scale, kernel_size=3
    s_conv2 = 1.0 / math.sqrt(Cin * 3 * 3)
    s_skip = 1.0 / math.sqrt(Cin * 1 * 1)    # kernel_size=1

    # NCHW -> channels-last, zero-pad spatially, flatten the rows, cast to bf16 (halves
    # the input HBM<->VMEM traffic; matmuls accumulate in f32 inside the kernel).
    xt = jnp.transpose(x, (0, 2, 3, 1))                       # (N, H, W, Cin)
    xp = jnp.pad(xt, ((0, 0), (1, 2), (1, 1), (0, 0)))        # (N, H+3, Wp, Cin)
    xf = xp.reshape(N, HPF, Cin).astype(jnp.bfloat16)

    # Conv taps as (tap, Cin, Cout) matrices (F.conv2d is cross-correlation: no flip).
    w1t = jnp.transpose(w1 * s_conv1, (2, 3, 1, 0)).reshape(9, Cin, Cin).astype(jnp.bfloat16)
    w2t = jnp.transpose(w2 * s_conv2, (2, 3, 1, 0)).reshape(9, Cin, Cout).astype(jnp.bfloat16)
    wskt = jnp.transpose((w_skip * s_skip).reshape(Cout, Cin), (1, 0)).astype(jnp.bfloat16)
    bskt = b_skip.reshape(1, Cout).astype(jnp.float32)

    # Validity mask for the 2 junk columns per row of the flattened layout, shape (L, 1).
    col_mask = ((jnp.arange(L) % Wp) < W).astype(jnp.float32)[:, None]

    kernel = functools.partial(_resblock_kernel, H=H, W=W, Wp=Wp)

    flops = 2 * N * H * W * (9 * Cin * Cin + 9 * Cin * Cout + Cin * Cout)
    bytes_accessed = (2 * N * HPF * Cin + 4 * N * L * Cout + 4 * L
                      + 2 * (9 * Cin * Cin + 9 * Cin * Cout + Cin * Cout) + 4 * Cout)

    # Explicit scoped-VMEM budget for the chosen (whole-plane) blocking, lane padding
    # included; clamp to a range that is safe on v5e/v6e/v7x.  For large planes the
    # right fix is H-strip tiling (see header note), not a bigger limit.
    lane = 128
    cin_p, cout_p = max(Cin, lane), max(Cout, lane)
    vmem_need = (2 * HPF * cin_p * 2            # bf16 input plane, double-buffered
                 + 2 * L * cout_p * 4           # f32 output plane, double-buffered
                 + HPF * cin_p * 4              # y1pad scratch
                 + 2 * L * lane * 4             # (L,1) mask, double-buffered
                 + 2 * 2 * (9 * Cin * cin_p + 9 * Cin * cout_p + Cin * cout_p)
                 + 2 * cout_p * 4)
    vmem_limit = int(min(max(2 * vmem_need, 32 << 20), 96 << 20))

    out_flat = pl.pallas_call(
        kernel,
        out_shape=jax.ShapeDtypeStruct((N, L, Cout), x.dtype),
        grid=(N,),
        in_specs=[
            pl.BlockSpec((None, HPF, Cin), lambda n: (n, 0, 0)),   # per-batch input plane
            # Constant-index weight/bias/mask blocks.  At Cin/Cout >= 512 add
            # pipeline_mode=pl.Buffered(1) to these specs to drop the duplicate buffer.
            pl.BlockSpec((9, Cin, Cin), lambda n: (0, 0, 0)),      # conv1 taps
            pl.BlockSpec((9, Cin, Cout), lambda n: (0, 0, 0)),     # conv2 taps
            pl.BlockSpec((Cin, Cout), lambda n: (0, 0)),           # skip weight
            pl.BlockSpec((1, Cout), lambda n: (0, 0)),             # skip bias
            pl.BlockSpec((L, 1), lambda n: (0, 0)),                # column mask (L,1)
        ],
        out_specs=pl.BlockSpec((None, L, Cout), lambda n: (n, 0, 0)),
        scratch_shapes=[pltpu.VMEM((HPF, Cin), jnp.float32)],
        compiler_params=pltpu.CompilerParams(
            dimension_semantics=("parallel",),
            vmem_limit_bytes=vmem_limit),
        cost_estimate=pl.CostEstimate(flops=flops, transcendentals=0,
                                      bytes_accessed=bytes_accessed),
    )(xf, w1t, w2t, wskt, bskt, col_mask)

    out = out_flat.reshape(N, H, Wp, Cout)[:, :, :W, :]        # drop junk columns
    return jnp.transpose(out, (0, 3, 1, 2))                    # back to NCHW


class ResBlock:
    """JAX/Pallas port of the PyTorch ResBlock: conv3x3+LReLU, conv3x3+LReLU, 1x1 skip."""

    def __init__(self, in_channel, out_channel, key):
        k1, k2, k3 = jax.random.split(key, 3)
        # EqualConv2d init: weight ~ N(0, 1) (scaled at runtime), bias = zeros.
        self.w1 = jax.random.normal(k1, (in_channel, in_channel, 3, 3), jnp.float32)
        self.w2 = jax.random.normal(k2, (out_channel, in_channel, 3, 3), jnp.float32)
        self.w_skip = jax.random.normal(k3, (out_channel, in_channel, 1, 1), jnp.float32)
        self.b_skip = jnp.zeros((out_channel,), jnp.float32)
        self._fwd = jax.jit(resblock_forward)

    def __call__(self, x):
        return self._fwd(x, self.w1, self.w2, self.w_skip, self.b_skip)


def resblock_ref(x, w1, w2, w_skip, b_skip):
    """Independent f32 XLA reference (lax.conv_general_dilated) for validation."""
    Cin = x.shape[1]
    s_conv = 1.0 / math.sqrt(Cin * 9)
    s_skip = 1.0 / math.sqrt(Cin * 1)
    dn = ("NCHW", "OIHW", "NCHW")
    prec = lax.Precision.HIGHEST

    y = lax.conv_general_dilated(x, w1 * s_conv, (1, 1), ((1, 1), (1, 1)),
                                 dimension_numbers=dn, precision=prec)
    y = jnp.maximum(y, 0.2 * y)
    y = lax.conv_general_dilated(y, w2 * s_conv, (1, 1), ((1, 1), (1, 1)),
                                 dimension_numbers=dn, precision=prec)
    y = jnp.maximum(y, 0.2 * y)
    skip = lax.conv_general_dilated(x, w_skip * s_skip, (1, 1), ((0, 0), (0, 0)),
                                    dimension_numbers=dn, precision=prec)
    return y + skip + b_skip[None, :, None, None]


if __name__ == "__main__":
    key = jax.random.PRNGKey(0)
    kx, kb, kp = jax.random.split(key, 3)

    N, Cin, Cout, H, W = 2, 4, 8, 16, 16
    x = jax.random.normal(kx, (N, Cin, H, W), dtype=jnp.float32)

    mod = ResBlock(Cin, Cout, kp)
    # PyTorch inits the skip bias to zeros; use a nonzero one so the bias path is tested.
    mod.b_skip = 0.1 * jax.random.normal(kb, (Cout,), dtype=jnp.float32)

    out = mod(x)
    out = jax.block_until_ready(out)
    assert out.shape == (N, Cout, H, W), out.shape

    # Kernel feeds the MXU bf16 operands (f32 accumulation); tolerance reflects that.
    ref = resblock_ref(x, mod.w1, mod.w2, mod.w_skip, mod.b_skip)
    np.testing.assert_allclose(np.asarray(out), np.asarray(ref), rtol=2e-2, atol=3e-2)

    print("KERNEL_OK")
</pallas_src>

<mosaic_0001>
module attributes {stable_mosaic.version = 11 : i64} {
  func.func @_resblock_kernel(%arg0: i32, %arg1: memref<1x342x4xbf16, #tpu.memory_space<vmem>>, %arg2: memref<9x4x4xbf16, #tpu.memory_space<vmem>>, %arg3: memref<9x4x8xbf16, #tpu.memory_space<vmem>>, %arg4: memref<4x8xbf16, #tpu.memory_space<vmem>>, %arg5: memref<1x8xf32, #tpu.memory_space<vmem>>, %arg6: memref<288x1xf32, #tpu.memory_space<vmem>>, %arg7: memref<1x288x8xf32, #tpu.memory_space<vmem>>, %arg8: memref<342x4xf32, #tpu.memory_space<vmem>>) attributes {dimension_semantics = [#tpu.dimension_semantics<parallel>], iteration_bounds = array<i64: 2>, scalar_prefetch = 0 : i64, scratch_operands = 1 : i64, tpu.core_type = #tpu.core_type<tc>, window_params = [{transform_indices = @transform_0, window_bounds = array<i64: 1, 342, 4>}, {pipeline_mode = #tpu.pipeline_mode<synchronous>, transform_indices = @transform_1, window_bounds = array<i64: 9, 4, 4>}, {pipeline_mode = #tpu.pipeline_mode<synchronous>, transform_indices = @transform_2, window_bounds = array<i64: 9, 4, 8>}, {pipeline_mode = #tpu.pipeline_mode<synchronous>, transform_indices = @transform_3, window_bounds = array<i64: 4, 8>}, {pipeline_mode = #tpu.pipeline_mode<synchronous>, transform_indices = @transform_4, window_bounds = array<i64: 1, 8>}, {pipeline_mode = #tpu.pipeline_mode<synchronous>, transform_indices = @transform_5, window_bounds = array<i64: 288, 1>}, {transform_indices = @transform_6, window_bounds = array<i64: 1, 288, 8>}]} {
    %cst = arith.constant 0.000000e+00 : f32
    %0 = vector.broadcast %cst : f32 to vector<288x4xf32>
    %c0 = arith.constant 0 : index
    %c0_0 = arith.constant 0 : index
    %c0_1 = arith.constant 0 : index
    %1 = vector.load %arg1[%c0, %c0_0, %c0_1] : memref<1x342x4xbf16, #tpu.memory_space<vmem>>, vector<1x288x4xbf16>
    %2 = vector.shape_cast %1 : vector<1x288x4xbf16> to vector<288x4xbf16>
    %c0_2 = arith.constant 0 : index
    %c0_3 = arith.constant 0 : index
    %c0_4 = arith.constant 0 : index
    %3 = vector.load %arg2[%c0_2, %c0_3, %c0_4] : memref<9x4x4xbf16, #tpu.memory_space<vmem>>, vector<1x4x4xbf16>
    %4 = vector.shape_cast %3 : vector<1x4x4xbf16> to vector<4x4xbf16>
    %cst_5 = arith.constant dense<0.000000e+00> : vector<288x4xf32>
    %5 = tpu.matmul %2, %4, %cst_5 {dimension_numbers = #tpu.dot_dimension_numbers<[1], [0], [0], [1], [0, 0, 1, 1], [], []>} : vector<288x4xbf16>, vector<4x4xbf16>, vector<288x4xf32> -> vector<288x4xf32>
    %6 = arith.addf %0, %5 : vector<288x4xf32>
    %c0_6 = arith.constant 0 : index
    %c1 = arith.constant 1 : index
    %c0_7 = arith.constant 0 : index
    %7 = vector.load %arg1[%c0_6, %c1, %c0_7] : memref<1x342x4xbf16, #tpu.memory_space<vmem>>, vector<1x288x4xbf16>
    %8 = vector.shape_cast %7 : vector<1x288x4xbf16> to vector<288x4xbf16>
    %c1_8 = arith.constant 1 : index
    %c0_9 = arith.constant 0 : index
    %c0_10 = arith.constant 0 : index
    %9 = vector.load %arg2[%c1_8, %c0_9, %c0_10] : memref<9x4x4xbf16, #tpu.memory_space<vmem>>, vector<1x4x4xbf16>
    %10 = vector.shape_cast %9 : vector<1x4x4xbf16> to vector<4x4xbf16>
    %cst_11 = arith.constant dense<0.000000e+00> : vector<288x4xf32>
    %11 = tpu.matmul %8, %10, %cst_11 {dimension_numbers = #tpu.dot_dimension_numbers<[1], [0], [0], [1], [0, 0, 1, 1], [], []>} : vector<288x4xbf16>, vector<4x4xbf16>, vector<288x4xf32> -> vector<288x4xf32>
    %12 = arith.addf %6, %11 : vector<288x4xf32>
    %c0_12 = arith.constant 0 : index
    %c2 = arith.constant 2 : index
    %c0_13 = arith.constant 0 : index
    %13 = vector.load %arg1[%c0_12, %c2, %c0_13] : memref<1x342x4xbf16, #tpu.memory_space<vmem>>, vector<1x288x4xbf16>
    %14 = vector.shape_cast %13 : vector<1x288x4xbf16> to vector<288x4xbf16>
    %c2_14 = arith.constant 2 : index
    %c0_15 = arith.constant 0 : index
    %c0_16 = arith.constant 0 : index
    %15 = vector.load %arg2[%c2_14, %c0_15, %c0_16] : memref<9x4x4xbf16, #tpu.memory_space<vmem>>, vector<1x4x4xbf16>
    %16 = vector.shape_cast %15 : vector<1x4x4xbf16> to vector<4x4xbf16>
    %cst_17 = arith.constant dense<0.000000e+00> : vector<288x4xf32>
    %17 = tpu.matmul %14, %16, %cst_17 {dimension_numbers = #tpu.dot_dimension_numbers<[1], [0], [0], [1], [0, 0, 1, 1], [], []>} : vector<288x4xbf16>, vector<4x4xbf16>, vector<288x4xf32> -> vector<288x4xf32>
    %18 = arith.addf %12, %17 : vector<288x4xf32>
    %c0_18 = arith.constant 0 : index
    %c18 = arith.constant 18 : index
    %c0_19 = arith.constant 0 : index
    %19 = vector.load %arg1[%c0_18, %c18, %c0_19] : memref<1x342x4xbf16, #tpu.memory_space<vmem>>, vector<1x288x4xbf16>
    %20 = vector.shape_cast %19 : vector<1x288x4xbf16> to vector<288x4xbf16>
    %c3 = arith.constant 3 : index
    %c0_20 = arith.constant 0 : index
    %c0_21 = arith.constant 0 : index
    %21 = vector.load %arg2[%c3, %c0_20, %c0_21] : memref<9x4x4xbf16, #tpu.memory_space<vmem>>, vector<1x4x4xbf16>
    %22 = vector.shape_cast %21 : vector<1x4x4xbf16> to vector<4x4xbf16>
    %cst_22 = arith.constant dense<0.000000e+00> : vector<288x4xf32>
    %23 = tpu.matmul %20, %22, %cst_22 {dimension_numbers = #tpu.dot_dimension_numbers<[1], [0], [0], [1], [0, 0, 1, 1], [], []>} : vector<288x4xbf16>, vector<4x4xbf16>, vector<288x4xf32> -> vector<288x4xf32>
    %24 = arith.addf %18, %23 : vector<288x4xf32>
    %c0_23 = arith.constant 0 : index
    %c19 = arith.constant 19 : index
    %c0_24 = arith.constant 0 : index
    %25 = vector.load %arg1[%c0_23, %c19, %c0_24] : memref<1x342x4xbf16, #tpu.memory_space<vmem>>, vector<1x288x4xbf16>
    %26 = vector.shape_cast %25 : vector<1x288x4xbf16> to vector<288x4xbf16>
    %c4 = arith.constant 4 : index
    %c0_25 = arith.constant 0 : index
    %c0_26 = arith.constant 0 : index
    %27 = vector.load %arg2[%c4, %c0_25, %c0_26] : memref<9x4x4xbf16, #tpu.memory_space<vmem>>, vector<1x4x4xbf16>
    %28 = vector.shape_cast %27 : vector<1x4x4xbf16> to vector<4x4xbf16>
    %cst_27 = arith.constant dense<0.000000e+00> : vector<288x4xf32>
    %29 = tpu.matmul %26, %28, %cst_27 {dimension_numbers = #tpu.dot_dimension_numbers<[1], [0], [0], [1], [0, 0, 1, 1], [], []>} : vector<288x4xbf16>, vector<4x4xbf16>, vector<288x4xf32> -> vector<288x4xf32>
    %30 = arith.addf %24, %29 : vector<288x4xf32>
    %c0_28 = arith.constant 0 : index
    %c20 = arith.constant 20 : index
    %c0_29 = arith.constant 0 : index
    %31 = vector.load %arg1[%c0_28, %c20, %c0_29] : memref<1x342x4xbf16, #tpu.memory_space<vmem>>, vector<1x288x4xbf16>
    %32 = vector.shape_cast %31 : vector<1x288x4xbf16> to vector<288x4xbf16>
    %c5 = arith.constant 5 : index
    %c0_30 = arith.constant 0 : index
    %c0_31 = arith.constant 0 : index
    %33 = vector.load %arg2[%c5, %c0_30, %c0_31] : memref<9x4x4xbf16, #tpu.memory_space<vmem>>, vector<1x4x4xbf16>
    %34 = vector.shape_cast %33 : vector<1x4x4xbf16> to vector<4x4xbf16>
    %cst_32 = arith.constant dense<0.000000e+00> : vector<288x4xf32>
    %35 = tpu.matmul %32, %34, %cst_32 {dimension_numbers = #tpu.dot_dimension_numbers<[1], [0], [0], [1], [0, 0, 1, 1], [], []>} : vector<288x4xbf16>, vector<4x4xbf16>, vector<288x4xf32> -> vector<288x4xf32>
    %36 = arith.addf %30, %35 : vector<288x4xf32>
    %c0_33 = arith.constant 0 : index
    %c36 = arith.constant 36 : index
    %c0_34 = arith.constant 0 : index
    %37 = vector.load %arg1[%c0_33, %c36, %c0_34] : memref<1x342x4xbf16, #tpu.memory_space<vmem>>, vector<1x288x4xbf16>
    %38 = vector.shape_cast %37 : vector<1x288x4xbf16> to vector<288x4xbf16>
    %c6 = arith.constant 6 : index
    %c0_35 = arith.constant 0 : index
    %c0_36 = arith.constant 0 : index
    %39 = vector.load %arg2[%c6, %c0_35, %c0_36] : memref<9x4x4xbf16, #tpu.memory_space<vmem>>, vector<1x4x4xbf16>
    %40 = vector.shape_cast %39 : vector<1x4x4xbf16> to vector<4x4xbf16>
    %cst_37 = arith.constant dense<0.000000e+00> : vector<288x4xf32>
    %41 = tpu.matmul %38, %40, %cst_37 {dimension_numbers = #tpu.dot_dimension_numbers<[1], [0], [0], [1], [0, 0, 1, 1], [], []>} : vector<288x4xbf16>, vector<4x4xbf16>, vector<288x4xf32> -> vector<288x4xf32>
    %42 = arith.addf %36, %41 : vector<288x4xf32>
    %c0_38 = arith.constant 0 : index
    %c37 = arith.constant 37 : index
    %c0_39 = arith.constant 0 : index
    %43 = vector.load %arg1[%c0_38, %c37, %c0_39] : memref<1x342x4xbf16, #tpu.memory_space<vmem>>, vector<1x288x4xbf16>
    %44 = vector.shape_cast %43 : vector<1x288x4xbf16> to vector<288x4xbf16>
    %c7 = arith.constant 7 : index
    %c0_40 = arith.constant 0 : index
    %c0_41 = arith.constant 0 : index
    %45 = vector.load %arg2[%c7, %c0_40, %c0_41] : memref<9x4x4xbf16, #tpu.memory_space<vmem>>, vector<1x4x4xbf16>
    %46 = vector.shape_cast %45 : vector<1x4x4xbf16> to vector<4x4xbf16>
    %cst_42 = arith.constant dense<0.000000e+00> : vector<288x4xf32>
    %47 = tpu.matmul %44, %46, %cst_42 {dimension_numbers = #tpu.dot_dimension_numbers<[1], [0], [0], [1], [0, 0, 1, 1], [], []>} : vector<288x4xbf16>, vector<4x4xbf16>, vector<288x4xf32> -> vector<288x4xf32>
    %48 = arith.addf %42, %47 : vector<288x4xf32>
    %c0_43 = arith.constant 0 : index
    %c38 = arith.constant 38 : index
    %c0_44 = arith.constant 0 : index
    %49 = vector.load %arg1[%c0_43, %c38, %c0_44] : memref<1x342x4xbf16, #tpu.memory_space<vmem>>, vector<1x288x4xbf16>
    %50 = vector.shape_cast %49 : vector<1x288x4xbf16> to vector<288x4xbf16>
    %c8 = arith.constant 8 : index
    %c0_45 = arith.constant 0 : index
    %c0_46 = arith.constant 0 : index
    %51 = vector.load %arg2[%c8, %c0_45, %c0_46] : memref<9x4x4xbf16, #tpu.memory_space<vmem>>, vector<1x4x4xbf16>
    %52 = vector.shape_cast %51 : vector<1x4x4xbf16> to vector<4x4xbf16>
    %cst_47 = arith.constant dense<0.000000e+00> : vector<288x4xf32>
    %53 = tpu.matmul %50, %52, %cst_47 {dimension_numbers = #tpu.dot_dimension_numbers<[1], [0], [0], [1], [0, 0, 1, 1], [], []>} : vector<288x4xbf16>, vector<4x4xbf16>, vector<288x4xf32> -> vector<288x4xf32>
    %54 = arith.addf %48, %53 : vector<288x4xf32>
    %cst_48 = arith.constant 2.000000e-01 : f32
    %55 = vector.broadcast %cst_48 : f32 to vector<288x4xf32>
    %56 = arith.mulf %55, %54 : vector<288x4xf32>
    %57 = arith.maximumf %54, %56 : vector<288x4xf32>
    %c0_49 = arith.constant 0 : index
    %c0_50 = arith.constant 0 : index
    %58 = vector.load %arg6[%c0_49, %c0_50] : memref<288x1xf32, #tpu.memory_space<vmem>>, vector<288x1xf32>
    %59 = vector.broadcast %58 : vector<288x1xf32> to vector<288x4xf32>
    %60 = arith.mulf %57, %59 : vector<288x4xf32>
    %cst_51 = arith.constant 0.000000e+00 : f32
    %61 = vector.broadcast %cst_51 : f32 to vector<19x4xf32>
    %c0_52 = arith.constant 0 : index
    %c0_53 = arith.constant 0 : index
    %62 = vector.load %arg8[%c0_52, %c0_53] : memref<342x4xf32, #tpu.memory_space<vmem>>, vector<19x4xf32>
    tpu.vector_store %arg8[%c0_52, %c0_53], %61 {strides = array<i32>} : memref<342x4xf32, #tpu.memory_space<vmem>>, vector<19x4xf32>,
    %cst_54 = arith.constant 0.000000e+00 : f32
    %63 = vector.broadcast %cst_54 : f32 to vector<35x4xf32>
    %c307 = arith.constant 307 : index
    %c0_55 = arith.constant 0 : index
    %64 = vector.load %arg8[%c307, %c0_55] : memref<342x4xf32, #tpu.memory_space<vmem>>, vector<35x4xf32>
    tpu.vector_store %arg8[%c307, %c0_55], %63 {strides = array<i32>} : memref<342x4xf32, #tpu.memory_space<vmem>>, vector<35x4xf32>,
    %c19_56 = arith.constant 19 : index
    %c0_57 = arith.constant 0 : index
    %65 = vector.load %arg8[%c19_56, %c0_57] : memref<342x4xf32, #tpu.memory_space<vmem>>, vector<288x4xf32>
    tpu.vector_store %arg8[%c19_56, %c0_57], %60 {strides = array<i32>} : memref<342x4xf32, #tpu.memory_space<vmem>>, vector<288x4xf32>,
    %cst_58 = arith.constant 0.000000e+00 : f32
    %66 = vector.broadcast %cst_58 : f32 to vector<288x8xf32>
    %c0_59 = arith.constant 0 : index
    %c0_60 = arith.constant 0 : index
    %67 = vector.load %arg8[%c0_59, %c0_60] : memref<342x4xf32, #tpu.memory_space<vmem>>, vector<288x4xf32>
    %68 = arith.truncf %67 : vector<288x4xf32> to vector<288x4xbf16>
    %c0_61 = arith.constant 0 : index
    %c0_62 = arith.constant 0 : index
    %c0_63 = arith.constant 0 : index
    %69 = vector.load %arg3[%c0_61, %c0_62, %c0_63] : memref<9x4x8xbf16, #tpu.memory_space<vmem>>, vector<1x4x8xbf16>
    %70 = vector.shape_cast %69 : vector<1x4x8xbf16> to vector<4x8xbf16>
    %cst_64 = arith.constant dense<0.000000e+00> : vector<288x8xf32>
    %71 = tpu.matmul %68, %70, %cst_64 {dimension_numbers = #tpu.dot_dimension_numbers<[1], [0], [0], [1], [0, 0, 1, 1], [], []>} : vector<288x4xbf16>, vector<4x8xbf16>, vector<288x8xf32> -> vector<288x8xf32>
    %72 = arith.addf %66, %71 : vector<288x8xf32>
    %c1_65 = arith.constant 1 : index
    %c0_66 = arith.constant 0 : index
    %73 = vector.load %arg8[%c1_65, %c0_66] : memref<342x4xf32, #tpu.memory_space<vmem>>, vector<288x4xf32>
    %74 = arith.truncf %73 : vector<288x4xf32> to vector<288x4xbf16>
    %c1_67 = arith.constant 1 : index
    %c0_68 = arith.constant 0 : index
    %c0_69 = arith.constant 0 : index
    %75 = vector.load %arg3[%c1_67, %c0_68, %c0_69] : memref<9x4x8xbf16, #tpu.memory_space<vmem>>, vector<1x4x8xbf16>
    %76 = vector.shape_cast %75 : vector<1x4x8xbf16> to vector<4x8xbf16>
    %cst_70 = arith.constant dense<0.000000e+00> : vector<288x8xf32>
    %77 = tpu.matmul %74, %76, %cst_70 {dimension_numbers = #tpu.dot_dimension_numbers<[1], [0], [0], [1], [0, 0, 1, 1], [], []>} : vector<288x4xbf16>, vector<4x8xbf16>, vector<288x8xf32> -> vector<288x8xf32>
    %78 = arith.addf %72, %77 : vector<288x8xf32>
    %c2_71 = arith.constant 2 : index
    %c0_72 = arith.constant 0 : index
    %79 = vector.load %arg8[%c2_71, %c0_72] : memref<342x4xf32, #tpu.memory_space<vmem>>, vector<288x4xf32>
    %80 = arith.truncf %79 : vector<288x4xf32> to vector<288x4xbf16>
    %c2_73 = arith.constant 2 : index
    %c0_74 = arith.constant 0 : index
    %c0_75 = arith.constant 0 : index
    %81 = vector.load %arg3[%c2_73, %c0_74, %c0_75] : memref<9x4x8xbf16, #tpu.memory_space<vmem>>, vector<1x4x8xbf16>
    %82 = vector.shape_cast %81 : vector<1x4x8xbf16> to vector<4x8xbf16>
    %cst_76 = arith.constant dense<0.000000e+00> : vector<288x8xf32>
    %83 = tpu.matmul %80, %82, %cst_76 {dimension_numbers = #tpu.dot_dimension_numbers<[1], [0], [0], [1], [0, 0, 1, 1], [], []>} : vector<288x4xbf16>, vector<4x8xbf16>, vector<288x8xf32> -> vector<288x8xf32>
    %84 = arith.addf %78, %83 : vector<288x8xf32>
    %c18_77 = arith.constant 18 : index
    %c0_78 = arith.constant 0 : index
    %85 = vector.load %arg8[%c18_77, %c0_78] : memref<342x4xf32, #tpu.memory_space<vmem>>, vector<288x4xf32>
    %86 = arith.truncf %85 : vector<288x4xf32> to vector<288x4xbf16>
    %c3_79 = arith.constant 3 : index
    %c0_80 = arith.constant 0 : index
    %c0_81 = arith.constant 0 : index
    %87 = vector.load %arg3[%c3_79, %c0_80, %c0_81] : memref<9x4x8xbf16, #tpu.memory_space<vmem>>, vector<1x4x8xbf16>
    %88 = vector.shape_cast %87 : vector<1x4x8xbf16> to vector<4x8xbf16>
    %cst_82 = arith.constant dense<0.000000e+00> : vector<288x8xf32>
    %89 = tpu.matmul %86, %88, %cst_82 {dimension_numbers = #tpu.dot_dimension_numbers<[1], [0], [0], [1], [0, 0, 1, 1], [], []>} : vector<288x4xbf16>, vector<4x8xbf16>, vector<288x8xf32> -> vector<288x8xf32>
    %90 = arith.addf %84, %89 : vector<288x8xf32>
    %c19_83 = arith.constant 19 : index
    %c0_84 = arith.constant 0 : index
    %91 = vector.load %arg8[%c19_83, %c0_84] : memref<342x4xf32, #tpu.memory_space<vmem>>, vector<288x4xf32>
    %92 = arith.truncf %91 : vector<288x4xf32> to vector<288x4xbf16>
    %c4_85 = arith.constant 4 : index
    %c0_86 = arith.constant 0 : index
    %c0_87 = arith.constant 0 : index
    %93 = vector.load %arg3[%c4_85, %c0_86, %c0_87] : memref<9x4x8xbf16, #tpu.memory_space<vmem>>, vector<1x4x8xbf16>
    %94 = vector.shape_cast %93 : vector<1x4x8xbf16> to vector<4x8xbf16>
    %cst_88 = arith.constant dense<0.000000e+00> : vector<288x8xf32>
    %95 = tpu.matmul %92, %94, %cst_88 {dimension_numbers = #tpu.dot_dimension_numbers<[1], [0], [0], [1], [0, 0, 1, 1], [], []>} : vector<288x4xbf16>, vector<4x8xbf16>, vector<288x8xf32> -> vector<288x8xf32>
    %96 = arith.addf %90, %95 : vector<288x8xf32>
    %c20_89 = arith.constant 20 : index
    %c0_90 = arith.constant 0 : index
    %97 = vector.load %arg8[%c20_89, %c0_90] : memref<342x4xf32, #tpu.memory_space<vmem>>, vector<288x4xf32>
    %98 = arith.truncf %97 : vector<288x4xf32> to vector<288x4xbf16>
    %c5_91 = arith.constant 5 : index
    %c0_92 = arith.constant 0 : index
    %c0_93 = arith.constant 0 : index
    %99 = vector.load %arg3[%c5_91, %c0_92, %c0_93] : memref<9x4x8xbf16, #tpu.memory_space<vmem>>, vector<1x4x8xbf16>
    %100 = vector.shape_cast %99 : vector<1x4x8xbf16> to vector<4x8xbf16>
    %cst_94 = arith.constant dense<0.000000e+00> : vector<288x8xf32>
    %101 = tpu.matmul %98, %100, %cst_94 {dimension_numbers = #tpu.dot_dimension_numbers<[1], [0], [0], [1], [0, 0, 1, 1], [], []>} : vector<288x4xbf16>, vector<4x8xbf16>, vector<288x8xf32> -> vector<288x8xf32>
    %102 = arith.addf %96, %101 : vector<288x8xf32>
    %c36_95 = arith.constant 36 : index
    %c0_96 = arith.constant 0 : index
    %103 = vector.load %arg8[%c36_95, %c0_96] : memref<342x4xf32, #tpu.memory_space<vmem>>, vector<288x4xf32>
    %104 = arith.truncf %103 : vector<288x4xf32> to vector<288x4xbf16>
    %c6_97 = arith.constant 6 : index
    %c0_98 = arith.constant 0 : index
    %c0_99 = arith.constant 0 : index
    %105 = vector.load %arg3[%c6_97, %c0_98, %c0_99] : memref<9x4x8xbf16, #tpu.memory_space<vmem>>, vector<1x4x8xbf16>
    %106 = vector.shape_cast %105 : vector<1x4x8xbf16> to vector<4x8xbf16>
    %cst_100 = arith.constant dense<0.000000e+00> : vector<288x8xf32>
    %107 = tpu.matmul %104, %106, %cst_100 {dimension_numbers = #tpu.dot_dimension_numbers<[1], [0], [0], [1], [0, 0, 1, 1], [], []>} : vector<288x4xbf16>, vector<4x8xbf16>, vector<288x8xf32> -> vector<288x8xf32>
    %108 = arith.addf %102, %107 : vector<288x8xf32>
    %c37_101 = arith.constant 37 : index
    %c0_102 = arith.constant 0 : index
    %109 = vector.load %arg8[%c37_101, %c0_102] : memref<342x4xf32, #tpu.memory_space<vmem>>, vector<288x4xf32>
    %110 = arith.truncf %109 : vector<288x4xf32> to vector<288x4xbf16>
    %c7_103 = arith.constant 7 : index
    %c0_104 = arith.constant 0 : index
    %c0_105 = arith.constant 0 : index
    %111 = vector.load %arg3[%c7_103, %c0_104, %c0_105] : memref<9x4x8xbf16, #tpu.memory_space<vmem>>, vector<1x4x8xbf16>
    %112 = vector.shape_cast %111 : vector<1x4x8xbf16> to vector<4x8xbf16>
    %cst_106 = arith.constant dense<0.000000e+00> : vector<288x8xf32>
    %113 = tpu.matmul %110, %112, %cst_106 {dimension_numbers = #tpu.dot_dimension_numbers<[1], [0], [0], [1], [0, 0, 1, 1], [], []>} : vector<288x4xbf16>, vector<4x8xbf16>, vector<288x8xf32> -> vector<288x8xf32>
    %114 = arith.addf %108, %113 : vector<288x8xf32>
    %c38_107 = arith.constant 38 : index
    %c0_108 = arith.constant 0 : index
    %115 = vector.load %arg8[%c38_107, %c0_108] : memref<342x4xf32, #tpu.memory_space<vmem>>, vector<288x4xf32>
    %116 = arith.truncf %115 : vector<288x4xf32> to vector<288x4xbf16>
    %c8_109 = arith.constant 8 : index
    %c0_110 = arith.constant 0 : index
    %c0_111 = arith.constant 0 : index
    %117 = vector.load %arg3[%c8_109, %c0_110, %c0_111] : memref<9x4x8xbf16, #tpu.memory_space<vmem>>, vector<1x4x8xbf16>
    %118 = vector.shape_cast %117 : vector<1x4x8xbf16> to vector<4x8xbf16>
    %cst_112 = arith.constant dense<0.000000e+00> : vector<288x8xf32>
    %119 = tpu.matmul %116, %118, %cst_112 {dimension_numbers = #tpu.dot_dimension_numbers<[1], [0], [0], [1], [0, 0, 1, 1], [], []>} : vector<288x4xbf16>, vector<4x8xbf16>, vector<288x8xf32> -> vector<288x8xf32>
    %120 = arith.addf %114, %119 : vector<288x8xf32>
    %cst_113 = arith.constant 2.000000e-01 : f32
    %121 = vector.broadcast %cst_113 : f32 to vector<288x8xf32>
    %122 = arith.mulf %121, %120 : vector<288x8xf32>
    %123 = arith.maximumf %120, %122 : vector<288x8xf32>
    %c0_114 = arith.constant 0 : index
    %c19_115 = arith.constant 19 : index
    %c0_116 = arith.constant 0 : index
    %124 = vector.load %arg1[%c0_114, %c19_115, %c0_116] : memref<1x342x4xbf16, #tpu.memory_space<vmem>>, vector<1x288x4xbf16>
    %125 = vector.shape_cast %124 : vector<1x288x4xbf16> to vector<288x4xbf16>
    %c0_117 = arith.constant 0 : index
    %c0_118 = arith.constant 0 : index
    %126 = vector.load %arg4[%c0_117, %c0_118] : memref<4x8xbf16, #tpu.memory_space<vmem>>, vector<4x8xbf16>
    %cst_119 = arith.constant dense<0.000000e+00> : vector<288x8xf32>
    %127 = tpu.matmul %125, %126, %cst_119 {dimension_numbers = #tpu.dot_dimension_numbers<[1], [0], [0], [1], [0, 0, 1, 1], [], []>} : vector<288x4xbf16>, vector<4x8xbf16>, vector<288x8xf32> -> vector<288x8xf32>
    %c0_120 = arith.constant 0 : index
    %c0_121 = arith.constant 0 : index
    %128 = vector.load %arg5[%c0_120, %c0_121] : memref<1x8xf32, #tpu.memory_space<vmem>>, vector<1x8xf32>
    %129 = vector.broadcast %128 : vector<1x8xf32> to vector<288x8xf32>
    %130 = arith.addf %127, %129 : vector<288x8xf32>
    %131 = arith.addf %123, %130 : vector<288x8xf32>
    %c0_122 = arith.constant 0 : index
    %c0_123 = arith.constant 0 : index
    %c0_124 = arith.constant 0 : index
    %132 = vector.load %arg7[%c0_122, %c0_123, %c0_124] : memref<1x288x8xf32, #tpu.memory_space<vmem>>, vector<1x288x8xf32>
    %133 = vector.shape_cast %132 : vector<1x288x8xf32> to vector<288x8xf32>
    %134 = vector.shape_cast %131 : vector<288x8xf32> to vector<1x288x8xf32>
    tpu.vector_store %arg7[%c0_122, %c0_123, %c0_124], %134 {strides = array<i32>} : memref<1x288x8xf32, #tpu.memory_space<vmem>>, vector<1x288x8xf32>,
    return
  }
  func.func @transform_0(%arg0: i32) -> (i32, i32, i32) {
    %c0_i32 = arith.constant 0 : i32
    %c0_i32_0 = arith.constant 0 : i32
    %c0_i32_1 = arith.constant 0 : i32
    return %arg0, %c0_i32, %c0_i32_0 : i32, i32, i32
  }
  func.func @transform_1(%arg0: i32) -> (i32, i32, i32) {
    %c0_i32 = arith.constant 0 : i32
    %c0_i32_0 = arith.constant 0 : i32
    %c0_i32_1 = arith.constant 0 : i32
    %c0_i32_2 = arith.constant 0 : i32
    return %c0_i32, %c0_i32_0, %c0_i32_1 : i32, i32, i32
  }
  func.func @transform_2(%arg0: i32) -> (i32, i32, i32) {
    %c0_i32 = arith.constant 0 : i32
    %c0_i32_0 = arith.constant 0 : i32
    %c0_i32_1 = arith.constant 0 : i32
    %c0_i32_2 = arith.constant 0 : i32
    return %c0_i32, %c0_i32_0, %c0_i32_1 : i32, i32, i32
  }
  func.func @transform_3(%arg0: i32) -> (i32, i32) {
    %c0_i32 = arith.constant 0 : i32
    %c0_i32_0 = arith.constant 0 : i32
    %c0_i32_1 = arith.constant 0 : i32
    return %c0_i32, %c0_i32_0 : i32, i32
  }
  func.func @transform_4(%arg0: i32) -> (i32, i32) {
    %c0_i32 = arith.constant 0 : i32
    %c0_i32_0 = arith.constant 0 : i32
    %c0_i32_1 = arith.constant 0 : i32
    return %c0_i32, %c0_i32_0 : i32, i32
  }
  func.func @transform_5(%arg0: i32) -> (i32, i32) {
    %c0_i32 = arith.constant 0 : i32
    %c0_i32_0 = arith.constant 0 : i32
    %c0_i32_1 = arith.constant 0 : i32
    return %c0_i32, %c0_i32_0 : i32, i32
  }
  func.func @transform_6(%arg0: i32) -> (i32, i32, i32) {
    %c0_i32 = arith.constant 0 : i32
    %c0_i32_0 = arith.constant 0 : i32
    %c0_i32_1 = arith.constant 0 : i32
    return %arg0, %c0_i32, %c0_i32_0 : i32, i32, i32
  }
}

</mosaic_0001>

<bundles_post_ra>
// kernel: resblock_forward.1
= control target key start
LH: loop header
LB: loop body
LE: loop exit
PB: predicated region body
PF: predicated region fallthrough
CT: control target
= control target key end

     0   :  { %s6988_s21 = smov 0   ;;  %s9109_s0 = inlined_call_operand.vmem [shape: bf16[2,342,4], index: 0, kind: input, shape index: {}]   ;;  %s9110_s1 = inlined_call_operand.vmem [shape: bf16[9,4,4], index: 1, kind: input, shape index: {}]   ;;  %s9111_s2 = inlined_call_operand.vmem [shape: bf16[9,4,8], index: 2, kind: input, shape index: {}]   ;;  %s9112_s3 = inlined_call_operand.vmem [shape: bf16[4,8], index: 3, kind: input, shape index: {}]   ;;  %s9113_s4 = inlined_call_operand.vmem [shape: f32[1,8], index: 4, kind: input, shape index: {}]   ;;  %s9114_s5 = inlined_call_operand.vmem [shape: f32[288,1], index: 5, kind: input, shape index: {}]   ;;  %s9115_s6 = inlined_call_operand.vmem [shape: f32[2,288,8], index: 6, kind: output, shape index: {}]  }
   0x1 LB: > { %s6188_s22 = sadd.s32 4294967295, %s6949_s21   ;;  %p6192_p0 = scmp.ge.s32.totalorder %s6949_s21, 1  ;;  %s6949_s21 = sphi %s6988_s21, %s16_s21  }
   0x2   : > { %p212_p1 = scmp.lt.s32.totalorder %s6949_s21, 3 }
   0x4   : > { %p213_p2 = pnand %p6192_p0, %p212_p1 }
   0x6   : > { %216 = sbr.rel (%p213_p2) target bundleno = 1668 (0x684), region = 44 }
   0xb   : > { %vm590_vm0 = vcmask 1041408   ;;  %v6300_v0 = vld [vmem:[%s9110_s1 + $0x4] sm:$0x3]  ;;  %v6195_v1 = vld [vmem:[%s9110_s1 + $0x2] sm:$0x3]  ;;  %p242_p3 = scmp.lt.s32.totalorder %s6188_s22, 1 }
   0xc   : > { %v930_v2 = vsel %vm590_vm0, %v6300_v0, 0  ;;  %v592_v3 = vsel %vm590_vm0, %v6195_v1, 0  ;;  %v289_v4 = vld [vmem:[%s9110_s1] sm:$0x3]  ;;  %v6406_v6 = vld [vmem:[%s9110_s1 + $0x8] sm:$0x3] }
   0xd   : > { %939 = vmatpush.bf16.msra.mxu2 %v930_v2  ;;  %601 = vmatpush.bf16.msra.mxu0 %v592_v3  ;;  %v730_v5 = vsel %vm590_vm0, %v289_v4, 0  ;;  %s9165_s22 = smov (!%p242_p3, %s6188_s22), 1  ;;  %v1660_v7 = vsel %vm590_vm0, %v6406_v6, 0  ;;  %vm535_vm1 = vcmask 31744   ;;  %vm837_vm2 = vcmask 1046528  }
   0xe   : > { %739 = vmatpush.bf16.msra.mxu1 %v730_v5  ;;  %6907 = vmatpush.bf16.msra.mxu3 %v592_v3  ;;  %s6910_s7 = smul.u32 172, %s9165_s22  ;;  %vm386_vm3 = vsmask.f32 7424  ;;  %vm1803_vm4 = vcmask 1045504   ;;  %vm1434_vm5 = vsmask.f32 6400 }
   0xf   : > { %vm2400_vm6 = vsmask.f32 5376  ;;  %vm2769_vm7 = vcmask 1044480   ;;  %vm3325_vm8 = vcmask 26624   ;;  %s6911_s9 = smul.u32 288, %s9165_s22  ;;  %vm6096_vm9 = vcmask 64512  }
  0x10   : > { %s7018_s10 = scalar_lea.vmem %s9109_s0, %s6910_s7 }
  0x11   : > { %1669 = vmatpush.bf16.msrb.mxu0 %v1660_v7  ;;  %v6904_v8 = vld [vmem:[%s7018_s10] sm:$0xf0]  ;;  %v6831_v9 = vld [vmem:[%s7018_s10 + $0x8] sm:$0xff]  ;;  %v6905_v10 = vld [vmem:[%s7018_s10] sm:$0xe]  ;;  %s8872_s13 = scalar_lea.vmem %s9115_s6, %s6911_s9 }
  0x12   : > { %6908 = vmatpush.bf16.msrb.mxu3 %v730_v5  ;;  %v6906_v11 = vor.u32 %v6905_v10, %v6904_v8  ;;  %v6901_v12 = vld [vmem:[%s7018_s10] sm:$0xff]   ;;  %v7025_v13 = vld [vmem:[%s7018_s10 + $0x70] sm:$0xff]  ;;  %v7028_v14 = vld [vmem:[%s7018_s10 + $0x78] sm:$0xff]  ;;  %v839_v15 = vrot.slane %v6831_v9, 1  ;;  %v395_v18 = vshll.u32 %v6831_v9, 16  ;;  %v399_v34 = vshrl.u32 %v6831_v9, 16 }
  0x13   : > { %v388_v16 = vshrl.u32 %v6901_v12, 16  ;;  %v390_v17 = vshll.u32 %v6901_v12, 16  ;;  %6282 = vmatmul.msk.bf16.vlgmr.msra.gmra.mxu1 %vm535_vm1, %v6901_v12  ;;  %v499_v20 = vshll.u32 %v7025_v13, 16  ;;  %v503_v21 = vshrl.u32 %v7025_v13, 16  ;;  %v6832_v32 = vld [vmem:[%s7018_s10 + $0x10] sm:$0xff]  ;;  %v7045_v33 = vld [vmem:[%s7018_s10 + $0x80] sm:$0xff] }
  0x14   : > { %v838_v19 = vrot.slane %v6906_v11, 1  ;;  %v507_v22 = vshll.u32 %v7028_v14, 16  ;;  %v397_v24 = vrot.slane %v395_v18, 1  ;;  %v403_v35 = vshll.u32 %v6832_v32, 16  ;;  %v6833_v46 = vld [vmem:[%s7018_s10 + $0x18] sm:$0xff]  ;;  %v7058_v47 = vld [vmem:[%s7018_s10 + $0x88] sm:$0xff] }
  0x15   : > { %v392_v23 = vrot.slane %v390_v17, 1  ;;  %v7035_v26 = vrot.slane %v499_v20, 1  ;;  %v841_v36 = vrot.slane %v6832_v32, 1  ;;  %v511_v37 = vshrl.u32 %v7028_v14, 16  ;;  %v290_v58 = vld [vmem:[%s7018_s10 + $0x90] sm:$0x1] }
  0x16   : > { %v840_v25 = vsel %vm837_vm2, %v838_v19, %v839_v15  ;;  %v509_v27 = vrot.slane %v507_v22, 1  ;;  %v515_v38 = vshll.u32 %v7045_v33, 16  ;;  %v401_v39 = vor.u32 %v399_v34, %v397_v24  ;;  %v6834_v62 = vld [vmem:[%s7018_s10 + $0x20] sm:$0xff]  ;;  %v6835_v12 = vld [vmem:[%s7018_s10 + $0x28] sm:$0xff]  ;;  %v6836_v22 = vld [vmem:[%s7018_s10 + $0x30] sm:$0xff] }
  0x17   : > { %6301 = vmatmul.msk.bf16.vlgmr.msra.gmra.mxu2 %vm535_vm1, %v840_v25  ;;  %v393_v28 = vor.u32 %v392_v23, %v388_v16  ;;  %v505_v29 = vor.u32 %v503_v21, %v7035_v26  ;;  %v405_v40 = vrot.slane %v403_v35, 1  ;;  %v842_v41 = vsel %vm837_vm2, %v839_v15, %v841_v36 }
  0x18   : > { %v513_v42 = vor.u32 %v511_v37, %v509_v27  ;;  %v517_v43 = vrot.slane %v515_v38, 1  ;;  %v407_v48 = vshrl.u32 %v6832_v32, 16  ;;  %v411_v49 = vshll.u32 %v6833_v46, 16 }
  0x19   : > { %v398_v30 = vsel %vm386_vm3, %v393_v28, %v397_v24  ;;  %v510_v31 = vsel %vm386_vm3, %v505_v29, %v509_v27  ;;  %v406_v44 = vsel %vm386_vm3, %v401_v39, %v405_v40  ;;  %v843_v50 = vrot.slane %v6833_v46, 1 }
  0x1a   : > { %6264 = vmatmul.msk.bf16.vlgmr.msra.gmra.mxu0 %vm535_vm1, %v398_v30  ;;  %6278 = vmatmul.msk.bf16.vlgmr.msra.gmra.mxu3 %vm535_vm1, %v510_v31  ;;  %v518_v45 = vsel %vm386_vm3, %v513_v42, %v517_v43  ;;  %v519_v51 = vshrl.u32 %v7045_v33, 16  ;;  %v523_v52 = vshll.u32 %v7058_v47, 16  ;;  %v409_v53 = vor.u32 %v407_v48, %v405_v40  ;;  %v6837_v31 = vld [vmem:[%s7018_s10 + $0x38] sm:$0xff]  ;;  %v6838_v40 = vld [vmem:[%s7018_s10 + $0x40] sm:$0xff] }
  0x1b   : > { %6909 = vmatpush.bf16.msra.mxu3 %v930_v2  ;;  %v413_v54 = vrot.slane %v411_v49, 1  ;;  %v844_v55 = vsel %vm837_vm2, %v841_v36, %v843_v50  ;;  %v366_v61 = vunpack.c.l.b16 %v290_v58  ;;  %v415_v0 = vshrl.u32 %v6833_v46, 16  ;;  %v6425_v49 = vld [vmem:[%s9110_s1 + $0xa] sm:$0x3]  ;;  %v6319_v58 = vld [vmem:[%s9110_s1 + $0x6] sm:$0x3] }
  0x1c   : > { %v521_v56 = vor.u32 %v519_v51, %v517_v43  ;;  %v525_v57 = vrot.slane %v523_v52, 1  ;;  %v419_v1 = vshll.u32 %v6834_v62, 16  ;;  %v845_v2 = vrot.slane %v6834_v62, 1 }
  0x1d   : > { %v414_v59 = vsel %vm386_vm3, %v409_v53, %v413_v54  ;;  %v7071_v63 = vpack.c.b16 %v366_v61, %v366_v61  ;;  %v527_v3 = vshrl.u32 %v7058_v47, 16  ;;  %v417_v5 = vor.u32 %v415_v0, %v413_v54  ;;  %v6839_v53 = vld [vmem:[%s7018_s10 + $0x48] sm:$0xff] }
  0x1e   : > { %v526_v60 = vsel %vm386_vm3, %v521_v56, %v525_v57  ;;  %v421_v6 = vrot.slane %v419_v1, 1  ;;  %v846_v7 = vsel %vm837_vm2, %v843_v50, %v845_v2  ;;  %v423_v15 = vshrl.u32 %v6834_v62, 16 }
  0x1f   : > { %v531_v4 = vshll.u32 %v7071_v63, 16  ;;  %v529_v8 = vor.u32 %v527_v3, %v525_v57  ;;  %v427_v16 = vshll.u32 %v6835_v12, 16  ;;  %v847_v17 = vrot.slane %v6835_v12, 1 }
  0x20   : > { %v422_v10 = vsel %vm386_vm3, %v417_v5, %v421_v6  ;;  %v425_v18 = vor.u32 %v423_v15, %v421_v6  ;;  %v431_v23 = vshrl.u32 %v6835_v12, 16  ;;  %v435_v24 = vshll.u32 %v6836_v22, 16 }
  0x21   : > { %v429_v19 = vrot.slane %v427_v16, 1  ;;  %v848_v20 = vsel %vm837_vm2, %v845_v2, %v847_v17  ;;  %v849_v25 = vrot.slane %v6836_v22, 1  ;;  %v443_v34 = vshll.u32 %v6837_v31, 16 }
  0x22   : > { %v437_v28 = vrot.slane %v435_v24, 1  ;;  %v851_v35 = vrot.slane %v6837_v31, 1  ;;  %v451_v42 = vshll.u32 %v6838_v40, 16  ;;  %v853_v43 = vrot.slane %v6838_v40, 1 }
  0x23   : > { %6283 = vmatmul.msk.bf16.gmra.mxu1 %vm535_vm1, %v6831_v9  ;;  %v533_v9 = vrot.slane %v531_v4, 1  ;;  %v430_v21 = vsel %vm386_vm3, %v425_v18, %v429_v19  ;;  %v433_v27 = vor.u32 %v431_v23, %v429_v19  ;;  %v850_v29 = vsel %vm837_vm2, %v847_v17, %v849_v25 }
  0x24   : > { %v445_v37 = vrot.slane %v443_v34, 1  ;;  %v852_v38 = vsel %vm837_vm2, %v849_v25, %v851_v35  ;;  %v453_v48 = vrot.slane %v451_v42, 1  ;;  %v854_v50 = vsel %vm837_vm2, %v851_v35, %v853_v43  ;;  %v6841_v34 = vld [vmem:[%s7018_s10 + $0x58] sm:$0xff] }
  0x25   : > { %v534_v11 = vsel %vm386_vm3, %v529_v8, %v533_v9  ;;  %v438_v30 = vsel %vm386_vm3, %v433_v27, %v437_v28  ;;  %v1896_v51 = vsel %vm590_vm0, %v6425_v49, 0  ;;  %v455_v54 = vshrl.u32 %v6838_v40, 16  ;;  %v6840_v9 = vld [vmem:[%s7018_s10 + $0x50] sm:$0xff] }
  0x26   : > { %1905 = vmatpush.bf16.msrb.mxu1 %v1896_v51  ;;  %v855_v57 = vrot.slane %v6839_v53, 1  ;;  %v865_v0 = vrot.slane %v7025_v13, 1  ;;  %v867_v1 = vrot.slane %v7028_v14, 1  ;;  %v857_v17 = vrot.slane %v6840_v9, 1 }
  0x27   : > { %6302 = vmatmul.msk.bf16.gmra.mxu2 %vm535_vm1, %v842_v41  ;;  %v447_v41 = vshrl.u32 %v6837_v31, 16  ;;  %v869_v23 = vrot.slane %v7045_v33, 1 }
  0x28   : > { %v868_v5 = vsel %vm837_vm2, %v865_v0, %v867_v1 }
  0x2a   : > { %6265 = vmatmul.msk.bf16.gmra.mxu0 %vm535_vm1, %v406_v44  ;;  %6279 = vmatmul.msk.bf16.gmra.mxu3 %vm535_vm1, %v518_v45  ;;  %v6444_v44 = vld [vmem:[%s9110_s1 + $0xc] sm:$0x3] }
  0x2b   : > { %v2257_v45 = vsel %vm590_vm0, %v6444_v44, 0 }
  0x2c   : > { %2266 = vmatpush.bf16.msrb.mxu2 %v2257_v45 }
  0x33   : > { %6284 = vmatmul.msk.bf16.gmra.mxu1 %vm535_vm1, %v6832_v32  ;;  %v439_v32 = vshrl.u32 %v6836_v22, 16 }
  0x35   : > { %v441_v36 = vor.u32 %v439_v32, %v437_v28 }
  0x37   : > { %6303 = vmatmul.msk.bf16.gmra.mxu2 %vm535_vm1, %v844_v55  ;;  %v446_v39 = vsel %vm386_vm3, %v441_v36, %v445_v37  ;;  %v459_v55 = vshll.u32 %v6839_v53, 16  ;;  %v471_v36 = vshrl.u32 %v6840_v9, 16 }
  0x39   : > { %v461_v61 = vrot.slane %v459_v55, 1 }
  0x3a   : > { %6266 = vmatmul.msk.bf16.gmra.mxu0 %vm535_vm1, %v414_v59  ;;  %6280 = vmatmul.msk.bf16.gmra.mxu3 %vm535_vm1, %v526_v60  ;;  %v1291_v59 = vsel %vm590_vm0, %v6319_v58, 0  ;;  %v457_v60 = vor.u32 %v455_v54, %v453_v48  ;;  %v479_v58 = vshrl.u32 %v6841_v34, 16 }
  0x3c   : > { %v462_v3 = vsel %vm386_vm3, %v457_v60, %v461_v61 }
  0x43   : > { %6285 = vmatmul.msk.bf16.gmra.mxu1 %vm535_vm1, %v6833_v46  ;;  %v449_v46 = vor.u32 %v447_v41, %v445_v37  ;;  %v475_v37 = vshll.u32 %v6841_v34, 16 }
  0x45   : > { %v454_v52 = vsel %vm386_vm3, %v449_v46, %v453_v48  ;;  %v477_v44 = vrot.slane %v475_v37, 1  ;;  %v871_v46 = vrot.slane %v7058_v47, 1 }
  0x47   : > { %6304 = vmatmul.msk.bf16.gmra.mxu2 %vm535_vm1, %v846_v7 }
  0x4a   : > { %6267 = vmatmul.msk.bf16.gmra.mxu0 %vm535_vm1, %v422_v10  ;;  %6281 = vmatmul.msk.bf16.gmra.mxu3 %vm535_vm1, %v534_v11  ;;  %v463_v11 = vshrl.u32 %v6839_v53, 16 }
  0x53   : > { %6286 = vmatmul.msk.bf16.gmra.mxu1 %vm535_vm1, %v6834_v62  ;;  %v856_v62 = vsel %vm837_vm2, %v853_v43, %v855_v57 }
  0x57   : > { %6305 = vmatmul.msk.bf16.gmra.mxu2 %vm535_vm1, %v848_v20  ;;  %v465_v20 = vor.u32 %v463_v11, %v461_v61 }
  0x5a   : > { %6268 = vmatmul.msk.bf16.gmra.mxu0 %vm535_vm1, %v430_v21  ;;  %6296 = vmatmul.msk.bf16.vlgmr.msrb.gmra.mxu3 %vm535_vm1, %v7025_v13 }
  0x5b   : > { %1300 = vmatpush.bf16.msrb.mxu3 %v1291_v59 }
  0x63   : > { %6287 = vmatmul.msk.bf16.gmra.mxu1 %vm535_vm1, %v6835_v12  ;;  %v467_v12 = vshll.u32 %v6840_v9, 16 }
  0x65   : > { %v469_v21 = vrot.slane %v467_v12, 1 }
  0x67   : > { %6306 = vmatmul.msk.bf16.gmra.mxu2 %vm535_vm1, %v850_v29  ;;  %v470_v27 = vsel %vm386_vm3, %v465_v20, %v469_v21  ;;  %v870_v29 = vsel %vm837_vm2, %v867_v1, %v869_v23  ;;  %v473_v43 = vor.u32 %v471_v36, %v469_v21  ;;  %v6531_v36 = vld [vmem:[%s9110_s1 + $0xe] sm:$0x3] }
  0x68   : > { %v2626_v37 = vsel %vm590_vm0, %v6531_v36, 0 }
  0x6a   : > { %6269 = vmatmul.msk.bf16.gmra.mxu0 %vm535_vm1, %v438_v30  ;;  %6297 = vmatmul.msk.bf16.gmra.mxu3 %vm535_vm1, %v7028_v14 }
  0x73   : > { %6288 = vmatmul.msk.bf16.gmra.mxu1 %vm535_vm1, %v6836_v22  ;;  %v858_v22 = vsel %vm837_vm2, %v855_v57, %v857_v17 }
  0x77   : > { %6307 = vmatmul.msk.bf16.gmra.mxu2 %vm535_vm1, %v852_v38 }
  0x7a   : > { %6270 = vmatmul.msk.bf16.gmra.mxu0 %vm535_vm1, %v446_v39  ;;  %6298 = vmatmul.msk.bf16.gmra.mxu3 %vm535_vm1, %v7045_v33 }
  0x83   : > { %6289 = vmatmul.msk.bf16.gmra.mxu1 %vm535_vm1, %v6837_v31 }
  0x87   : > { %6308 = vmatmul.msk.bf16.gmra.mxu2 %vm535_vm1, %v854_v50  ;;  %v478_v50 = vsel %vm386_vm3, %v473_v43, %v477_v44 }
  0x8a   : > { %6271 = vmatmul.msk.bf16.gmra.mxu0 %vm535_vm1, %v454_v52  ;;  %6299 = vmatmul.msk.bf16.gmra.mxu3 %vm535_vm1, %v7058_v47  ;;  %v872_v52 = vsel %vm837_vm2, %v869_v23, %v871_v46 }
  0x90   : > { %v741_v56 = vpop.f32.mrf.mxu1 }
  0x93   : > { %6290 = vmatmul.msk.bf16.gmra.mxu1 %vm535_vm1, %v6838_v40  ;;  %v859_v40 = vrot.slane %v6841_v34, 1 }
  0x95   : > { %v860_v45 = vsel %vm837_vm2, %v857_v17, %v859_v40  ;;  %v7189_v17 = vld [vmem:[%s7018_s10 + $0xc] sm:$0xf] }
  0x97   : > { %v603_v2 = vpop.f32.mrf.mxu0  ;;  %6309 = vmatmul.msk.bf16.gmra.mxu2 %vm535_vm1, %v856_v62 }
  0x98   : > { %v742_v4 = vadd.f32 %v741_v56, %v603_v2  ;;  %v743_v6 = vpop.f32.mrf.mxu1  ;;  %v6842_v56 = vld [vmem:[%s7018_s10 + $0x60] sm:$0xff] }
  0x99   : > { %v483_v59 = vshll.u32 %v6842_v56, 16  ;;  %v861_v62 = vrot.slane %v6842_v56, 1 }
  0x9a   : > { %6272 = vmatmul.msk.bf16.gmra.mxu0 %vm535_vm1, %v462_v3  ;;  %v941_v7 = vpop.f32.mrf.mxu2  ;;  %6315 = vmatmul.msk.bf16.vlgmr.msra.gmra.mxu3 %vm535_vm1, %v868_v5  ;;  %v481_v3 = vor.u32 %v479_v58, %v477_v44 }
  0x9b   : > { %v7137_v8 = vadd.f32 %v941_v7, %v742_v4  ;;  %v485_v4 = vrot.slane %v483_v59, 1  ;;  %v862_v5 = vsel %vm837_vm2, %v859_v40, %v861_v62  ;;  %2635 = vmatpush.bf16.msra.mxu3 %v2626_v37 }
  0x9d   : > { %v7141_v14 = vpop.f32.mrf.mxu3 }
  0x9f   : > { %v605_v10 = vpop.f32.mrf.mxu0 }
  0xa0   : > { %v744_v15 = vadd.f32 %v743_v6, %v605_v10  ;;  %v746_v16 = vpop.f32.mrf.mxu1  ;;  %v873_v6 = vrot.slane %v7071_v63, 1  ;;  %v486_v10 = vsel %vm386_vm3, %v481_v3, %v485_v4  ;;  %v6843_v63 = vld [vmem:[%s7018_s10 + $0x68] sm:$0xff] }
  0xa2   : > { %v943_v18 = vpop.f32.mrf.mxu2  ;;  %v874_v12 = vsel %vm837_vm2, %v871_v46, %v873_v6 }
  0xa3   : > { %v7143_v19 = vadd.f32 %v943_v18, %v744_v15  ;;  %6291 = vmatmul.msk.bf16.gmra.mxu1 %vm535_vm1, %v6839_v53 }
  0xa5   : > { %v7148_v24 = vpop.f32.mrf.mxu3 }
  0xa7   : > { %v608_v25 = vpop.f32.mrf.mxu0  ;;  %6310 = vmatmul.msk.bf16.gmra.mxu2 %vm535_vm1, %v858_v22  ;;  %v1144_v22 = vunpack.c.l.b16 %v7189_v17 }
  0xa8   : > { %v747_v28 = vadd.f32 %v746_v16, %v608_v25  ;;  %v748_v30 = vpop.f32.mrf.mxu1  ;;  %v1067_v16 = vld [vmem:[%s7018_s10 + $0x8] sm:$0xe] }
  0xa9   : > { %v1143_v21 = vunpack.c.l.b16 %v1067_v16  ;;  %v7243_v16 = vld [vmem:[%s7018_s10 + $0x14] sm:$0xf] }
  0xaa   : > { %6273 = vmatmul.msk.bf16.gmra.mxu0 %vm535_vm1, %v470_v27  ;;  %v946_v31 = vpop.f32.mrf.mxu2  ;;  %6316 = vmatmul.msk.bf16.gmra.mxu3 %vm535_vm1, %v870_v29  ;;  %v487_v27 = vshrl.u32 %v6842_v56, 16 }
  0xab   : > { %v7154_v32 = vadd.f32 %v946_v31, %v747_v28  ;;  %v491_v28 = vshll.u32 %v6843_v63, 16  ;;  %v863_v31 = vrot.slane %v6843_v63, 1 }
  0xac   : > { %v489_v40 = vor.u32 %v487_v27, %v485_v4 }
  0xad   : > { %v7158_v33 = vpop.f32.mrf.mxu3  ;;  %v864_v43 = vsel %vm837_vm2, %v861_v62, %v863_v31  ;;  %v495_v62 = vshrl.u32 %v6843_v63, 16 }
  0xaf   : > { %v610_v35 = vpop.f32.mrf.mxu0 }
  0xb0   : > { %v749_v38 = vadd.f32 %v748_v30, %v610_v35  ;;  %v751_v39 = vpop.f32.mrf.mxu1  ;;  %v7202_v35 = vpack.c.b16 %v1144_v22, %v1143_v21 }
  0xb2   : > { %v948_v41 = vpop.f32.mrf.mxu2  ;;  %v1199_v44 = vrot.slane %v7202_v35, 1 }
  0xb3   : > { %v7160_v42 = vadd.f32 %v948_v41, %v749_v38  ;;  %6292 = vmatmul.msk.bf16.gmra.mxu1 %vm535_vm1, %v6840_v9  ;;  %v493_v41 = vrot.slane %v491_v28, 1  ;;  %v9116_v28 = vunpack.c.l.b16 %v7243_v16 }
  0xb5   : > { %v7165_v48 = vpop.f32.mrf.mxu3 }
  0xb7   : > { %v613_v49 = vpop.f32.mrf.mxu0  ;;  %6311 = vmatmul.msk.bf16.gmra.mxu2 %vm535_vm1, %v860_v45 }
  0xb8   : > { %v752_v51 = vadd.f32 %v751_v39, %v613_v49  ;;  %v753_v53 = vpop.f32.mrf.mxu1 }
  0xba   : > { %6274 = vmatmul.msk.bf16.gmra.mxu0 %vm535_vm1, %v478_v50  ;;  %v951_v54 = vpop.f32.mrf.mxu2  ;;  %6317 = vmatmul.msk.bf16.gmra.mxu3 %vm535_vm1, %v872_v52  ;;  %v494_v50 = vsel %vm386_vm3, %v489_v40, %v493_v41 }
  0xbb   : > { %v7171_v55 = vadd.f32 %v951_v54, %v752_v51 }
  0xbd   : > { %v7175_v47 = vpop.f32.mrf.mxu3 }
  0xbf   : > { %v615_v57 = vpop.f32.mrf.mxu0 }
  0xc0   : > { %v754_v60 = vadd.f32 %v753_v53, %v615_v57  ;;  %v756_v61 = vpop.f32.mrf.mxu1 }
  0xc2   : > { %v953_v1 = vpop.f32.mrf.mxu2 }
  0xc3   : > { %v7177_v2 = vadd.f32 %v953_v1, %v754_v60  ;;  %6293 = vmatmul.msk.bf16.gmra.mxu1 %vm535_vm1, %v6841_v34  ;;  %v7200_v34 = vld [vmem:[%s7018_s10 + $0x10] sm:$0xff]  ;;  %v7231_v1 = vld [vmem:[%s7018_s10 + $0x18] sm:$0xff] }
  0xc4   : > { %v1200_v45 = vrot.slane %v7200_v34, 1  ;;  %v1447_v37 = vshll.u32 %v7200_v34, 16 }
  0xc5   : > { %v7182_v7 = vpop.f32.mrf.mxu3 }
  0xc6   : > { %v1201_v52 = vsel %vm837_vm2, %v1199_v44, %v1200_v45 }
  0xc7   : > { %v618_v9 = vpop.f32.mrf.mxu0  ;;  %6312 = vmatmul.msk.bf16.gmra.mxu2 %vm535_vm1, %v862_v5  ;;  %v1797_v5 = vld [vmem:[%s7018_s10 + $0x8] sm:$0xc] }
  0xc8   : > { %v757_v11 = vadd.f32 %v756_v61, %v618_v9  ;;  %v758_v15 = vpop.f32.mrf.mxu1 }
  0xca   : > { %6275 = vmatmul.msk.bf16.gmra.mxu0 %vm535_vm1, %v486_v10  ;;  %v956_v18 = vpop.f32.mrf.mxu2  ;;  %6318 = vmatmul.msk.bf16.gmra.mxu3 %vm535_vm1, %v874_v12  ;;  %v497_v10 = vor.u32 %v495_v62, %v493_v41  ;;  %v866_v12 = vsel %vm837_vm2, %v863_v31, %v865_v0  ;;  %v1439_v31 = vshll.u32 %v7202_v35, 16  ;;  %v1805_v41 = vrot.slane %v7200_v34, 2 }
  0xcb   : > { %v7192_v20 = vadd.f32 %v956_v18, %v757_v11  ;;  %v1202_v11 = vrot.slane %v7231_v1, 1 }
  0xcd   : > { %v7197_v23 = vpop.f32.mrf.mxu3 }
  0xcf   : > { %v620_v25 = vpop.f32.mrf.mxu0 }
  0xd0   : > { %v759_v29 = vadd.f32 %v758_v15, %v620_v25  ;;  %v761_v30 = vpop.f32.mrf.mxu1  ;;  %v2033_v15 = vld [vmem:[%s7018_s10 + $0x10] sm:$0xc]  ;;  %v1203_v25 = vsel %vm837_vm2, %v1200_v45, %v1202_v11 }
  0xd1   : > { %v2109_v0 = vunpack.c.l.b16 %v2033_v15 }
  0xd2   : > { %v958_v38 = vpop.f32.mrf.mxu2 }
  0xd3   : > { %v7208_v39 = vadd.f32 %v958_v38, %v759_v29  ;;  %6294 = vmatmul.msk.bf16.gmra.mxu1 %vm535_vm1, %v6842_v56  ;;  %v6550_v56 = vld [vmem:[%s9110_s1 + $0x10] sm:$0x3]  ;;  %v6865_v38 = vld [vmem:[%s7018_s10 + $0x18] sm:$0xff] }
  0xd4   : > { %v2862_v58 = vsel %vm590_vm0, %v6550_v56, 0  ;;  %v2166_v56 = vrot.slane %v6865_v38, 2  ;;  %v7298_v38 = vld [vmem:[%s7018_s10 + $0x28] sm:$0xff] }
  0xd5   : > { %v7214_v46 = vpop.f32.mrf.mxu3  ;;  %2871 = vmatpush.bf16.msra.mxu0 %v2862_v58  ;;  %v7272_v58 = vld [vmem:[%s7018_s10 + $0x20] sm:$0xff] }
  0xd7   : > { %v623_v49 = vpop.f32.mrf.mxu0  ;;  %6313 = vmatmul.msk.bf16.gmra.mxu2 %vm535_vm1, %v864_v43 }
  0xd8   : > { %v762_v51 = vadd.f32 %v761_v30, %v623_v49  ;;  %v763_v53 = vpop.f32.mrf.mxu1 }
  0xda   : > { %6276 = vmatmul.msk.bf16.gmra.mxu0 %vm535_vm1, %v494_v50  ;;  %v961_v54 = vpop.f32.mrf.mxu2  ;;  %6388 = vmatmul.msk.bf16.vlgmr.msrb.gmra.mxu3 %vm535_vm1, %v1201_v52 }
  0xdb   : > { %v7223_v57 = vadd.f32 %v961_v54, %v762_v51  ;;  %v1449_v51 = vrot.slane %v1447_v37, 2 }
  0xdd   : > { %v811_v59 = vpop.f32.mrf.mxu3 }
  0xde   : > { %v7228_v61 = vadd.f32 %v811_v59, %v7141_v14  ;;  %v1801_v14 = vunpack.c.l.b16 %v1797_v5 }
  0xdf   : > { %v625_v60 = vpop.f32.mrf.mxu0 }
  0xe0   : > { %v764_v3 = vadd.f32 %v763_v53, %v625_v60  ;;  %v766_v4 = vpop.f32.mrf.mxu1  ;;  %v1802_v29 = vpack.c.b16 %v1144_v22, %v1801_v14  ;;  %v7264_v22 = vpack.c.b16 %v9116_v28, %v2109_v0 }
  0xe2   : > { %v963_v6 = vpop.f32.mrf.mxu2  ;;  %v1804_v40 = vrot.slane %v1802_v29, 2  ;;  %v2165_v54 = vrot.slane %v7264_v22, 2 }
  0xe3   : > { %v7234_v9 = vadd.f32 %v963_v6, %v764_v3  ;;  %6295 = vmatmul.msk.bf16.gmra.mxu1 %vm535_vm1, %v6843_v63  ;;  %v502_v63 = vsel %vm386_vm3, %v497_v10, %v7035_v26  ;;  %v1444_v26 = vshrl.u32 %v7200_v34, 16 }
  0xe4   : > { %v1806_v59 = vsel %vm1803_vm4, %v1804_v40, %v1805_v41 }
  0xe5   : > { %v813_v17 = vpop.f32.mrf.mxu3  ;;  %v1446_v50 = vrot.slane %v1444_v26, 1 }
  0xe6   : > { %v7246_v21 = vadd.f32 %v813_v17, %v7148_v24  ;;  %v1436_v24 = vshrl.u32 %v7202_v35, 16  ;;  %v1441_v35 = vrot.slane %v1439_v31, 2 }
  0xe7   : > { %v628_v18 = vpop.f32.mrf.mxu0  ;;  %6314 = vmatmul.msk.bf16.gmra.mxu2 %vm535_vm1, %v866_v12  ;;  %v1450_v3 = vor.u32 %v1449_v51, %v1446_v50 }
  0xe8   : > { %v767_v13 = vadd.f32 %v766_v4, %v628_v18  ;;  %v768_v27 = vpop.f32.mrf.mxu1  ;;  %v1438_v44 = vrot.slane %v1436_v24, 1  ;;  %v1204_v4 = vrot.slane %v7272_v58, 1 }
  0xea   : > { %6277 = vmatmul.msk.bf16.gmra.mxu0 %vm535_vm1, %v502_v63  ;;  %v966_v30 = vpop.f32.mrf.mxu2  ;;  %6389 = vmatmul.msk.bf16.gmra.mxu3 %vm535_vm1, %v1203_v25  ;;  %v1442_v62 = vor.u32 %v1441_v35, %v1438_v44  ;;  %v1205_v15 = vsel %vm837_vm2, %v1202_v11, %v1204_v4  ;;  %v1453_v25 = vshrl.u32 %v7231_v1, 16 }
  0xeb   : > { %v7256_v36 = vadd.f32 %v966_v30, %v767_v13  ;;  %v6866_v13 = vld [vmem:[%s7018_s10 + $0x20] sm:$0xff] }
  0xec   : > { %v1451_v12 = vsel %vm1434_vm5, %v1442_v62, %v1450_v3  ;;  %v1455_v30 = vrot.slane %v1453_v25, 1  ;;  %v2168_v37 = vrot.slane %v6866_v13, 2  ;;  %v6867_v62 = vld [vmem:[%s7018_s10 + $0x28] sm:$0xff] }
  0xed   : > { %v816_v43 = vpop.f32.mrf.mxu3 }
  0xee   : > { %v7268_v49 = vadd.f32 %v816_v43, %v7158_v33  ;;  %v2167_v33 = vsel %vm1803_vm4, %v2165_v54, %v2166_v56 }
  0xef   : > { %v630_v45 = vpop.f32.mrf.mxu0 }
  0xf0   : > { %v769_v52 = vadd.f32 %v768_v27, %v630_v45  ;;  %v771_v53 = vpop.f32.mrf.mxu1  ;;  %v1807_v27 = vrot.slane %v7231_v1, 2 }
  0xf2   : > { %v968_v34 = vpop.f32.mrf.mxu2  ;;  %v1808_v40 = vsel %vm1803_vm4, %v1805_v41, %v1807_v27 }
  0xf3   : > { %v7275_v60 = vadd.f32 %v968_v34, %v769_v52  ;;  %6426 = vmatmul.msk.bf16.vlgmr.msrb.gmra.mxu1 %vm535_vm1, %v1806_v59  ;;  %v1462_v34 = vshrl.u32 %v7272_v58, 16 }
  0xf5   : > { %v818_v5 = vpop.f32.mrf.mxu3 }
  0xf6   : > { %v7281_v10 = vadd.f32 %v818_v5, %v7165_v48  ;;  %v1456_v48 = vshll.u32 %v7231_v1, 16  ;;  %v2169_v1 = vsel %vm1803_vm4, %v2166_v56, %v2168_v37 }
  0xf7   : > { %v633_v6 = vpop.f32.mrf.mxu0  ;;  %6513 = vmatmul.msk.bf16.vlgmr.msrb.gmra.mxu2 %vm535_vm1, %v2167_v33  ;;  %v1809_v33 = vrot.slane %v7272_v58, 2 }
  0xf8   : > { %v772_v14 = vadd.f32 %v771_v53, %v633_v6  ;;  %v773_v17 = vpop.f32.mrf.mxu1  ;;  %v1458_v24 = vrot.slane %v1456_v48, 2  ;;  %v1464_v6 = vrot.slane %v1462_v34, 1 }
  0xf9   : > { %v1810_v25 = vsel %vm1803_vm4, %v1807_v27, %v1809_v33 }
  0xfa   : > { %6407 = vmatmul.msk.bf16.vlgmr.msrb.gmra.mxu0 %vm535_vm1, %v1451_v12  ;;  %v971_v18 = vpop.f32.mrf.mxu2  ;;  %6390 = vmatmul.msk.bf16.gmra.mxu3 %vm535_vm1, %v1205_v15  ;;  %v1459_v35 = vor.u32 %v1458_v24, %v1455_v30 }
  0xfb   : > { %v7287_v63 = vadd.f32 %v971_v18, %v772_v14  ;;  %v7324_v18 = vld [vmem:[%s7018_s10 + $0x30] sm:$0xff] }
  0xfc   : > { %v1460_v41 = vsel %vm1434_vm5, %v1450_v3, %v1459_v35 }
  0xfd   : > { %v821_v0 = vpop.f32.mrf.mxu3 }
  0xfe   : > { %v7295_v11 = vadd.f32 %v821_v0, %v7175_v47  ;;  %v1206_v47 = vrot.slane %v7298_v38, 1 }
  0xff   : > { %v635_v29 = vpop.f32.mrf.mxu0 }
 0x100   : > { %v774_v31 = vadd.f32 %v773_v17, %v635_v29  ;;  %v776_v26 = vpop.f32.mrf.mxu1  ;;  %v1207_v53 = vsel %vm837_vm2, %v1204_v4, %v1206_v47  ;;  %v2170_v17 = vrot.slane %v6867_v62, 2 }
 0x102   : > { %v973_v43 = vpop.f32.mrf.mxu2 }
 0x103   : > { %v7301_v44 = vadd.f32 %v973_v43, %v774_v31  ;;  %6427 = vmatmul.msk.bf16.gmra.mxu1 %vm535_vm1, %v1808_v40 }
 0x105   : > { %v823_v45 = vpop.f32.mrf.mxu3 }
 0x106   : > { %v7307_v51 = vadd.f32 %v823_v45, %v7182_v7  ;;  %v1465_v7 = vshll.u32 %v7272_v58, 16  ;;  %v2171_v58 = vsel %vm1803_vm4, %v2168_v37, %v2170_v17  ;;  %v6868_v45 = vld [vmem:[%s7018_s10 + $0x30] sm:$0xff] }
 0x107   : > { %v638_v50 = vpop.f32.mrf.mxu0  ;;  %6514 = vmatmul.msk.bf16.gmra.mxu2 %vm535_vm1, %v2169_v1  ;;  %v1471_v1 = vshrl.u32 %v7298_v38, 16  ;;  %v2172_v34 = vrot.slane %v6868_v45, 2 }
 0x108   : > { %v777_v52 = vadd.f32 %v776_v26, %v638_v50  ;;  %v778_v54 = vpop.f32.mrf.mxu1  ;;  %v1467_v12 = vrot.slane %v1465_v7, 2  ;;  %v1811_v50 = vrot.slane %v7298_v38, 2  ;;  %v7350_v7 = vld [vmem:[%s7018_s10 + $0x38] sm:$0xff] }
 0x10a   : > { %6408 = vmatmul.msk.bf16.gmra.mxu0 %vm535_vm1, %v1460_v41  ;;  %v976_v56 = vpop.f32.mrf.mxu2  ;;  %6391 = vmatmul.msk.bf16.gmra.mxu3 %vm535_vm1, %v1207_v53  ;;  %v1468_v0 = vor.u32 %v1467_v12, %v1464_v6  ;;  %v1812_v62 = vsel %vm1803_vm4, %v1809_v33, %v1811_v50 }
 0x10b   : > { %v7313_v59 = vadd.f32 %v976_v56, %v777_v52  ;;  %v1473_v52 = vrot.slane %v1471_v1, 1 }
 0x10c   : > { %v1469_v27 = vsel %vm1434_vm5, %v1459_v35, %v1468_v0 }
 0x10d   : > { %v826_v3 = vpop.f32.mrf.mxu3 }
 0x10e   : > { %v7321_v4 = vadd.f32 %v826_v3, %v7197_v23  ;;  %v1208_v23 = vrot.slane %v7324_v18, 1 }
 0x10f   : > { %v640_v5 = vpop.f32.mrf.mxu0 }
 0x110   : > { %v779_v14 = vadd.f32 %v778_v54, %v640_v5  ;;  %v781_v15 = vpop.f32.mrf.mxu1  ;;  %v1209_v26 = vsel %vm837_vm2, %v1206_v47, %v1208_v23 }
 0x112   : > { %v978_v48 = vpop.f32.mrf.mxu2 }
 0x113   : > { %v7327_v13 = vadd.f32 %v978_v48, %v779_v14  ;;  %6428 = vmatmul.msk.bf16.gmra.mxu1 %vm535_vm1, %v1810_v25 }
 0x115   : > { %v828_v29 = vpop.f32.mrf.mxu3 }
 0x116   : > { %v7333_v24 = vadd.f32 %v828_v29, %v7214_v46  ;;  %v1474_v46 = vshll.u32 %v7298_v38, 16  ;;  %v2173_v38 = vsel %vm1803_vm4, %v2170_v17, %v2172_v34 }
 0x117   : > { %v643_v30 = vpop.f32.mrf.mxu0  ;;  %6515 = vmatmul.msk.bf16.gmra.mxu2 %vm535_vm1, %v2171_v58 }
 0x118   : > { %v782_v31 = vadd.f32 %v781_v15, %v643_v30  ;;  %v783_v40 = vpop.f32.mrf.mxu1  ;;  %v1476_v53 = vrot.slane %v1474_v46, 2  ;;  %v1480_v30 = vshrl.u32 %v7324_v18, 16 }
 0x11a   : > { %6409 = vmatmul.msk.bf16.gmra.mxu0 %vm535_vm1, %v1469_v27  ;;  %v981_v37 = vpop.f32.mrf.mxu2  ;;  %6392 = vmatmul.msk.bf16.gmra.mxu3 %vm535_vm1, %v1209_v26  ;;  %v1477_v6 = vor.u32 %v1476_v53, %v1473_v52  ;;  %v6869_v27 = vld [vmem:[%s7018_s10 + $0x38] sm:$0xff] }
 0x11b   : > { %v7339_v43 = vadd.f32 %v981_v37, %v782_v31  ;;  %v1813_v31 = vrot.slane %v7324_v18, 2  ;;  %v2174_v45 = vrot.slane %v6869_v27, 2 }
 0x11c   : > { %v1478_v33 = vsel %vm1434_vm5, %v1468_v0, %v1477_v6 }
 0x11d   : > { %v1011_v35 = vpop.f32.mrf.mxu3 }
 0x11e   : > { %v7347_v47 = vadd.f32 %v1011_v35, %v7228_v61  ;;  %v1210_v61 = vrot.slane %v7350_v7, 1  ;;  %v7376_v35 = vld [vmem:[%s7018_s10 + $0x40] sm:$0xff] }
 0x11f   : > { %v645_v41 = vpop.f32.mrf.mxu0 }
 0x120   : > { %v784_v54 = vadd.f32 %v783_v40, %v645_v41  ;;  %v786_v56 = vpop.f32.mrf.mxu1  ;;  %v1211_v48 = vsel %vm837_vm2, %v1208_v23, %v1210_v61  ;;  %v1482_v40 = vrot.slane %v1480_v30, 1  ;;  %v1814_v41 = vsel %vm1803_vm4, %v1811_v50, %v1813_v31 }
 0x122   : > { %v983_v3 = vpop.f32.mrf.mxu2 }
 0x123   : > { %v7353_v5 = vadd.f32 %v983_v3, %v784_v54  ;;  %6429 = vmatmul.msk.bf16.gmra.mxu1 %vm535_vm1, %v1812_v62 }
 0x125   : > { %v1013_v12 = vpop.f32.mrf.mxu3 }
 0x126   : > { %v7359_v15 = vadd.f32 %v1013_v12, %v7246_v21  ;;  %v1483_v21 = vshll.u32 %v7324_v18, 16  ;;  %v2175_v18 = vsel %vm1803_vm4, %v2172_v34, %v2174_v45 }
 0x127   : > { %v648_v14 = vpop.f32.mrf.mxu0  ;;  %6516 = vmatmul.msk.bf16.gmra.mxu2 %vm535_vm1, %v2173_v38 }
 0x128   : > { %v787_v25 = vadd.f32 %v786_v56, %v648_v14  ;;  %v788_v58 = vpop.f32.mrf.mxu1  ;;  %v1485_v37 = vrot.slane %v1483_v21, 2 }
 0x12a   : > { %6410 = vmatmul.msk.bf16.gmra.mxu0 %vm535_vm1, %v1478_v33  ;;  %v986_v17 = vpop.f32.mrf.mxu2  ;;  %6393 = vmatmul.msk.bf16.gmra.mxu3 %vm535_vm1, %v1211_v48  ;;  %v1486_v54 = vor.u32 %v1485_v37, %v1482_v40  ;;  %v6870_v48 = vld [vmem:[%s7018_s10 + $0x40] sm:$0xff]  ;;  %v7402_v40 = vld [vmem:[%s7018_s10 + $0x48] sm:$0xff] }
 0x12b   : > { %v7365_v29 = vadd.f32 %v986_v17, %v787_v25  ;;  %v1489_v25 = vshrl.u32 %v7350_v7, 16 }
 0x12c   : > { %v1487_v50 = vsel %vm1434_vm5, %v1477_v6, %v1486_v54 }
 0x12d   : > { %v1016_v0 = vpop.f32.mrf.mxu3  ;;  %v1491_v30 = vrot.slane %v1489_v25, 1  ;;  %v1817_v25 = vrot.slane %v7376_v35, 2 }
 0x12e   : > { %v7373_v23 = vadd.f32 %v1016_v0, %v7268_v49  ;;  %v1212_v49 = vrot.slane %v7376_v35, 1 }
 0x12f   : > { %v650_v26 = vpop.f32.mrf.mxu0 }
 0x130   : > { %v789_v1 = vadd.f32 %v788_v58, %v650_v26  ;;  %v791_v46 = vpop.f32.mrf.mxu1  ;;  %v1213_v12 = vsel %vm837_vm2, %v1210_v61, %v1212_v49  ;;  %v1815_v58 = vrot.slane %v7350_v7, 2  ;;  %v2176_v26 = vrot.slane %v6870_v48, 2 }
 0x132   : > { %v988_v52 = vpop.f32.mrf.mxu2  ;;  %v1816_v37 = vsel %vm1803_vm4, %v1813_v31, %v1815_v58 }
 0x133   : > { %v7379_v53 = vadd.f32 %v988_v52, %v789_v1  ;;  %6430 = vmatmul.msk.bf16.gmra.mxu1 %vm535_vm1, %v1814_v41 }
 0x135   : > { %v1018_v56 = vpop.f32.mrf.mxu3 }
 0x136   : > { %v7385_v3 = vadd.f32 %v1018_v56, %v7281_v10  ;;  %v1492_v10 = vshll.u32 %v7350_v7, 16  ;;  %v2177_v7 = vsel %vm1803_vm4, %v2174_v45, %v2176_v26 }
 0x137   : > { %v653_v62 = vpop.f32.mrf.mxu0  ;;  %6517 = vmatmul.msk.bf16.gmra.mxu2 %vm535_vm1, %v2175_v18 }
 0x138   : > { %v792_v38 = vadd.f32 %v791_v46, %v653_v62  ;;  %v793_v14 = vpop.f32.mrf.mxu1  ;;  %v1494_v21 = vrot.slane %v1492_v10, 2 }
 0x13a   : > { %6411 = vmatmul.msk.bf16.gmra.mxu0 %vm535_vm1, %v1487_v50  ;;  %v991_v34 = vpop.f32.mrf.mxu2  ;;  %6394 = vmatmul.msk.bf16.gmra.mxu3 %vm535_vm1, %v1213_v12  ;;  %v1495_v41 = vor.u32 %v1494_v21, %v1491_v30 }
 0x13b   : > { %v7391_v33 = vadd.f32 %v991_v34, %v792_v38  ;;  %v6871_v34 = vld [vmem:[%s7018_s10 + $0x48] sm:$0xff] }
 0x13c   : > { %v1496_v31 = vsel %vm1434_vm5, %v1486_v54, %v1495_v41  ;;  %v2178_v21 = vrot.slane %v6871_v34, 2  ;;  %v1819_v34 = vrot.slane %v7402_v40, 2 }
 0x13d   : > { %v1021_v6 = vpop.f32.mrf.mxu3 }
 0x13e   : > { %v7399_v61 = vadd.f32 %v1021_v6, %v7295_v11  ;;  %v1214_v11 = vrot.slane %v7402_v40, 1 }
 0x13f   : > { %v655_v17 = vpop.f32.mrf.mxu0 }
 0x140   : > { %v794_v27 = vadd.f32 %v793_v14, %v655_v17  ;;  %v796_v0 = vpop.f32.mrf.mxu1  ;;  %v1215_v50 = vsel %vm837_vm2, %v1212_v49, %v1214_v11  ;;  %v1498_v14 = vshrl.u32 %v7376_v35, 16 }
 0x142   : > { %v993_v1 = vpop.f32.mrf.mxu2  ;;  %v1500_v48 = vrot.slane %v1498_v14, 1  ;;  %v1507_v14 = vshrl.u32 %v7402_v40, 16 }
 0x143   : > { %v7405_v46 = vadd.f32 %v993_v1, %v794_v27  ;;  %6431 = vmatmul.msk.bf16.gmra.mxu1 %vm535_vm1, %v1816_v37  ;;  %v7428_v27 = vld [vmem:[%s7018_s10 + $0x50] sm:$0xff] }
 0x145   : > { %v1023_v52 = vpop.f32.mrf.mxu3 }
 0x146   : > { %v7411_v56 = vadd.f32 %v1023_v52, %v7307_v51  ;;  %v1501_v51 = vshll.u32 %v7376_v35, 16  ;;  %v2179_v35 = vsel %vm1803_vm4, %v2176_v26, %v2178_v21 }
 0x147   : > { %v658_v18 = vpop.f32.mrf.mxu0  ;;  %6518 = vmatmul.msk.bf16.gmra.mxu2 %vm535_vm1, %v2177_v7 }
 0x148   : > { %v797_v62 = vadd.f32 %v796_v0, %v658_v18  ;;  %v798_v38 = vpop.f32.mrf.mxu1  ;;  %v1503_v6 = vrot.slane %v1501_v51, 2  ;;  %v1818_v0 = vsel %vm1803_vm4, %v1815_v58, %v1817_v25  ;;  %v6872_v51 = vld [vmem:[%s7018_s10 + $0x50] sm:$0xff] }
 0x14a   : > { %6412 = vmatmul.msk.bf16.gmra.mxu0 %vm535_vm1, %v1496_v31  ;;  %v996_v45 = vpop.f32.mrf.mxu2  ;;  %6395 = vmatmul.msk.bf16.gmra.mxu3 %vm535_vm1, %v1215_v50  ;;  %v1504_v7 = vor.u32 %v1503_v6, %v1500_v48 }
 0x14b   : > { %v7417_v12 = vadd.f32 %v996_v45, %v797_v62 }
 0x14c   : > { %v1505_v58 = vsel %vm1434_vm5, %v1495_v41, %v1504_v7 }
 0x14d   : > { %v1026_v54 = vpop.f32.mrf.mxu3 }
 0x14e   : > { %v7425_v49 = vadd.f32 %v1026_v54, %v7321_v4  ;;  %v1216_v4 = vrot.slane %v7428_v27, 1 }
 0x14f   : > { %v660_v10 = vpop.f32.mrf.mxu0 }
 0x150   : > { %v799_v17 = vadd.f32 %v798_v38, %v660_v10  ;;  %v801_v30 = vpop.f32.mrf.mxu1  ;;  %v1217_v50 = vsel %vm837_vm2, %v1214_v11, %v1216_v4  ;;  %v1509_v10 = vrot.slane %v1507_v14, 1 }
 0x152   : > { %v998_v37 = vpop.f32.mrf.mxu2 }
 0x153   : > { %v7431_v1 = vadd.f32 %v998_v37, %v799_v17  ;;  %6432 = vmatmul.msk.bf16.gmra.mxu1 %vm535_vm1, %v1818_v0  ;;  %v7452_v0 = vld [vmem:[%s7018_s10 + $0x58] sm:$0xff]  ;;  %v1820_v37 = vsel %vm1803_vm4, %v1817_v25, %v1819_v34  ;;  %v6569_v25 = vld [vmem:[%s9111_s2 + $0x2] sm:$0x3] }
 0x155   : > { %v1028_v52 = vpop.f32.mrf.mxu3 }
 0x156   : > { %v7437_v31 = vadd.f32 %v1028_v52, %v7333_v24  ;;  %v1510_v24 = vshll.u32 %v7402_v40, 16  ;;  %v3422_v52 = vld [vmem:[%s9111_s2] sm:$0x3] }
 0x157   : > { %v663_v18 = vpop.f32.mrf.mxu0  ;;  %6519 = vmatmul.msk.bf16.gmra.mxu2 %vm535_vm1, %v2179_v35 }
 0x158   : > { %v802_v62 = vadd.f32 %v801_v30, %v663_v18  ;;  %v803_v38 = vpop.f32.mrf.mxu1  ;;  %v1512_v48 = vrot.slane %v1510_v24, 2  ;;  %v2180_v30 = vrot.slane %v6872_v51, 2 }
 0x15a   : > { %6413 = vmatmul.msk.bf16.gmra.mxu0 %vm535_vm1, %v1505_v58  ;;  %v1001_v26 = vpop.f32.mrf.mxu2  ;;  %6396 = vmatmul.msk.bf16.gmra.mxu3 %vm535_vm1, %v1217_v50  ;;  %v1513_v40 = vor.u32 %v1512_v48, %v1509_v10  ;;  %v2181_v58 = vsel %vm1803_vm4, %v2178_v21, %v2180_v30  ;;  %v3534_v50 = vsel %vm590_vm0, %v6569_v25, 0  ;;  %v1516_v48 = vshrl.u32 %v7428_v27, 16 }
 0x15b   : > { %v7443_v45 = vadd.f32 %v1001_v26, %v802_v62  ;;  %v1218_v62 = vrot.slane %v7452_v0, 1  ;;  %3543 = vmatpush.bf16.msra.mxu1 %v3534_v50  ;;  %v7482_v50 = vld [vmem:[%s7018_s10 + $0x60] sm:$0xff] }
 0x15c   : > { %v1514_v24 = vsel %vm1434_vm5, %v1504_v7, %v1513_v40 }
 0x15d   : > { %v1302_v41 = vpop.f32.mrf.mxu3  ;;  %v1219_v51 = vsel %vm837_vm2, %v1216_v4, %v1218_v62 }
 0x15e   : > { %v1392_v11 = vadd.f32 %v1302_v41, %v7137_v8  ;;  %v3690_v8 = vsel %vm590_vm0, %v3422_v52, 0 }
 0x15f   : > { %v665_v54 = vpop.f32.mrf.mxu0  ;;  %3699 = vmatpush.bf16.msra.mxu2 %v3690_v8 }
 0x160   : > { %v804_v6 = vadd.f32 %v803_v38, %v665_v54  ;;  %v806_v17 = vpop.f32.mrf.mxu1 }
 0x162   : > { %v1003_v35 = vpop.f32.mrf.mxu2 }
 0x163   : > { %v7458_v18 = vadd.f32 %v1003_v35, %v804_v6  ;;  %6433 = vmatmul.msk.bf16.gmra.mxu1 %vm535_vm1, %v1820_v37  ;;  %v6873_v6 = vld [vmem:[%s7018_s10 + $0x58] sm:$0xff]  ;;  %v1821_v37 = vrot.slane %v7428_v27, 2  ;;  %v1518_v35 = vrot.slane %v1516_v48, 1 }
 0x165   : > { %v1304_v38 = vpop.f32.mrf.mxu3 }
 0x166   : > { %v1393_v14 = vadd.f32 %v1304_v38, %v7143_v19  ;;  %v1519_v19 = vshll.u32 %v7428_v27, 16  ;;  %v1822_v38 = vsel %vm1803_vm4, %v1819_v34, %v1821_v37 }
 0x167   : > { %v668_v26 = vpop.f32.mrf.mxu0  ;;  %6520 = vmatmul.msk.bf16.gmra.mxu2 %vm535_vm1, %v2181_v58  ;;  %v2182_v58 = vrot.slane %v6873_v6, 2 }
 0x168   : > { %v807_v21 = vadd.f32 %v806_v17, %v668_v26  ;;  %v808_v41 = vpop.f32.mrf.mxu1  ;;  %v1521_v52 = vrot.slane %v1519_v19, 2 }
 0x169   : > { %v2183_v27 = vsel %vm1803_vm4, %v2180_v30, %v2182_v58 }
 0x16a   : > { %6414 = vmatmul.msk.bf16.gmra.mxu0 %vm535_vm1, %v1514_v24  ;;  %v1006_v54 = vpop.f32.mrf.mxu2  ;;  %6397 = vmatmul.msk.bf16.gmra.mxu3 %vm535_vm1, %v1219_v51  ;;  %v1220_v51 = vrot.slane %v7482_v50, 1 }
 0x16b   : > { %v7473_v10 = vadd.f32 %v1006_v54, %v807_v21  ;;  %v1522_v21 = vor.u32 %v1521_v52, %v1518_v35  ;;  %v6874_v52 = vld [vmem:[%s7018_s10 + $0x60] sm:$0xff] }
 0x16c   : > { %v1221_v19 = vsel %vm837_vm2, %v1218_v62, %v1220_v51 }
 0x16d   : > { %v1307_v7 = vpop.f32.mrf.mxu3  ;;  %v1523_v48 = vsel %vm1434_vm5, %v1513_v40, %v1522_v21  ;;  %v1823_v40 = vrot.slane %v7452_v0, 2 }
 0x16e   : > { %v1394_v4 = vadd.f32 %v1307_v7, %v7154_v32 }
 0x16f   : > { %v670_v17 = vpop.f32.mrf.mxu0 }
 0x170   : > { %v809_v8 = vadd.f32 %v808_v41, %v670_v17  ;;  %v1907_v25 = vpop.f32.mrf.mxu1  ;;  %v1525_v17 = vshrl.u32 %v7452_v0, 16 }
 0x172   : > { %v1008_v26 = vpop.f32.mrf.mxu2 }
 0x173   : > { %v7485_v24 = vadd.f32 %v1008_v26, %v809_v8  ;;  %6434 = vmatmul.msk.bf16.gmra.mxu1 %vm535_vm1, %v1822_v38 }
 0x175   : > { %v1309_v32 = vpop.f32.mrf.mxu3 }
 0x176   : > { %v1395_v41 = vadd.f32 %v1309_v32, %v7160_v42  ;;  %v1528_v42 = vshll.u32 %v7452_v0, 16 }
 0x177   : > { %v1671_v54 = vpop.f32.mrf.mxu0  ;;  %6521 = vmatmul.msk.bf16.gmra.mxu2 %vm535_vm1, %v2183_v27  ;;  %v2184_v27 = vrot.slane %v6874_v52, 2 }
 0x178   : > { %v1761_v34 = vadd.f32 %v1671_v54, %v1392_v11  ;;  %v1909_v6 = vpop.f32.mrf.mxu1  ;;  %v1530_v38 = vrot.slane %v1528_v42, 2  ;;  %v7504_v54 = vld [vmem:[%s7018_s10 + $0x68] sm:$0xff] }
 0x179   : > { %v2185_v0 = vsel %vm1803_vm4, %v2182_v58, %v2184_v27 }
 0x17a   : > { %v1997_v7 = vadd.f32 %v1907_v25, %v1761_v34  ;;  %6415 = vmatmul.msk.bf16.gmra.mxu0 %vm535_vm1, %v1523_v48  ;;  %v2268_v30 = vpop.f32.mrf.mxu2  ;;  %6398 = vmatmul.msk.bf16.gmra.mxu3 %vm535_vm1, %v1221_v19  ;;  %v1527_v25 = vrot.slane %v1525_v17, 1  ;;  %v1824_v48 = vsel %vm1803_vm4, %v1821_v37, %v1823_v40 }
 0x17c   : > { %v7498_v35 = vadd.f32 %v2268_v30, %v1997_v7  ;;  %v1531_v7 = vor.u32 %v1530_v38, %v1527_v25  ;;  %v1534_v25 = vshrl.u32 %v7482_v50, 16 }
 0x17d   : > { %v1312_v11 = vpop.f32.mrf.mxu3 }
 0x17e   : > { %v1396_v62 = vadd.f32 %v1312_v11, %v7171_v55  ;;  %v1222_v55 = vrot.slane %v7504_v54, 1  ;;  %v1532_v37 = vsel %vm1434_vm5, %v1522_v21, %v1531_v7  ;;  %v1825_v21 = vrot.slane %v7482_v50, 2 }
 0x17f   : > { %v1673_v8 = vpop.f32.mrf.mxu0 }
 0x180   : > { %v1762_v26 = vadd.f32 %v1673_v8, %v1393_v14  ;;  %v1912_v32 = vpop.f32.mrf.mxu1  ;;  %v1223_v52 = vsel %vm837_vm2, %v1220_v51, %v1222_v55 }
 0x182   : > { %v1998_v34 = vadd.f32 %v1909_v6, %v1762_v26  ;;  %v2270_v19 = vpop.f32.mrf.mxu2  ;;  %v6875_v26 = vld [vmem:[%s7018_s10 + $0x68] sm:$0xff] }
 0x183   : > { %6435 = vmatmul.msk.bf16.gmra.mxu1 %vm535_vm1, %v1824_v48 }
 0x184   : > { %v7508_v30 = vadd.f32 %v2270_v19, %v1998_v34 }
 0x185   : > { %v1314_v17 = vpop.f32.mrf.mxu3 }
 0x186   : > { %v1397_v14 = vadd.f32 %v1314_v17, %v7177_v2  ;;  %v1537_v2 = vshll.u32 %v7482_v50, 16 }
 0x187   : > { %v1676_v42 = vpop.f32.mrf.mxu0  ;;  %6522 = vmatmul.msk.bf16.gmra.mxu2 %vm535_vm1, %v2185_v0  ;;  %v2186_v0 = vrot.slane %v6875_v26, 2 }
 0x188   : > { %v1763_v6 = vadd.f32 %v1676_v42, %v1394_v4  ;;  %v1914_v11 = vpop.f32.mrf.mxu1  ;;  %v1539_v34 = vrot.slane %v1537_v2, 2  ;;  %v7526_v42 = vld [vmem:[%s7018_s10 + $0x70] sm:$0xff] }
 0x189   : > { %v2187_v50 = vsel %vm1803_vm4, %v2184_v27, %v2186_v0 }
 0x18a   : > { %v1999_v8 = vadd.f32 %v1912_v32, %v1763_v6  ;;  %6416 = vmatmul.msk.bf16.gmra.mxu0 %vm535_vm1, %v1532_v37  ;;  %v2273_v58 = vpop.f32.mrf.mxu2  ;;  %6399 = vmatmul.msk.bf16.gmra.mxu3 %vm535_vm1, %v1223_v52  ;;  %v1536_v32 = vrot.slane %v1534_v25, 1  ;;  %v1826_v37 = vsel %vm1803_vm4, %v1823_v40, %v1825_v21 }
 0x18c   : > { %v7520_v38 = vadd.f32 %v2273_v58, %v1999_v8  ;;  %v1540_v8 = vor.u32 %v1539_v34, %v1536_v32  ;;  %v1543_v32 = vshrl.u32 %v7504_v54, 16 }
 0x18d   : > { %v1317_v4 = vpop.f32.mrf.mxu3 }
 0x18e   : > { %v1398_v51 = vadd.f32 %v1317_v4, %v7192_v20  ;;  %v1224_v20 = vrot.slane %v7526_v42, 1  ;;  %v1541_v40 = vsel %vm1434_vm5, %v1531_v7, %v1540_v8  ;;  %v1827_v7 = vrot.slane %v7504_v54, 2 }
 0x18f   : > { %v1678_v48 = vpop.f32.mrf.mxu0 }
 0x190   : > { %v1764_v19 = vadd.f32 %v1678_v48, %v1395_v41  ;;  %v1917_v17 = vpop.f32.mrf.mxu1  ;;  %v1225_v26 = vsel %vm837_vm2, %v1222_v55, %v1224_v20 }
 0x192   : > { %v2000_v6 = vadd.f32 %v1914_v11, %v1764_v19  ;;  %v2275_v52 = vpop.f32.mrf.mxu2  ;;  %v6876_v19 = vld [vmem:[%s7018_s10 + $0x70] sm:$0xff] }
 0x193   : > { %6436 = vmatmul.msk.bf16.gmra.mxu1 %vm535_vm1, %v1826_v37 }
 0x194   : > { %v7530_v58 = vadd.f32 %v2275_v52, %v2000_v6 }
 0x195   : > { %v1319_v25 = vpop.f32.mrf.mxu3 }
 0x196   : > { %v1399_v41 = vadd.f32 %v1319_v25, %v7208_v39  ;;  %v1546_v39 = vshll.u32 %v7504_v54, 16 }
 0x197   : > { %v1681_v2 = vpop.f32.mrf.mxu0  ;;  %6523 = vmatmul.msk.bf16.gmra.mxu2 %vm535_vm1, %v2187_v50  ;;  %v2188_v50 = vrot.slane %v6876_v19, 2 }
 0x198   : > { %v1765_v11 = vadd.f32 %v1681_v2, %v1396_v62  ;;  %v1919_v4 = vpop.f32.mrf.mxu1  ;;  %v1548_v6 = vrot.slane %v1546_v39, 2  ;;  %v7548_v2 = vld [vmem:[%s7018_s10 + $0x78] sm:$0xff] }
 0x199   : > { %v2189_v54 = vsel %vm1803_vm4, %v2186_v0, %v2188_v50 }
 0x19a   : > { %v2001_v48 = vadd.f32 %v1917_v17, %v1765_v11  ;;  %6417 = vmatmul.msk.bf16.gmra.mxu0 %vm535_vm1, %v1541_v40  ;;  %v2278_v27 = vpop.f32.mrf.mxu2  ;;  %6400 = vmatmul.msk.bf16.gmra.mxu3 %vm535_vm1, %v1225_v26  ;;  %v1545_v17 = vrot.slane %v1543_v32, 1  ;;  %v1828_v40 = vsel %vm1803_vm4, %v1825_v21, %v1827_v7 }
 0x19c   : > { %v7542_v34 = vadd.f32 %v2278_v27, %v2001_v48  ;;  %v1549_v48 = vor.u32 %v1548_v6, %v1545_v17  ;;  %v1552_v17 = vshrl.u32 %v7526_v42, 16 }
 0x19d   : > { %v1322_v62 = vpop.f32.mrf.mxu3 }
 0x19e   : > { %v1400_v55 = vadd.f32 %v1322_v62, %v7223_v57  ;;  %v1226_v57 = vrot.slane %v7548_v2, 1  ;;  %v1550_v21 = vsel %vm1434_vm5, %v1540_v8, %v1549_v48 }
 0x19f   : > { %v1683_v37 = vpop.f32.mrf.mxu0 }
 0x1a0   : > { %v1766_v52 = vadd.f32 %v1683_v37, %v1397_v14  ;;  %v1922_v25 = vpop.f32.mrf.mxu1  ;;  %v1227_v19 = vsel %vm837_vm2, %v1224_v20, %v1226_v57 }
 0x1a2   : > { %v2002_v11 = vadd.f32 %v1919_v4, %v1766_v52  ;;  %v2280_v26 = vpop.f32.mrf.mxu2  ;;  %v7569_v52 = vld [vmem:[%s7018_s10 + $0x78] sm:$0xff] }
 0x1a3   : > { %6437 = vmatmul.msk.bf16.gmra.mxu1 %vm535_vm1, %v1828_v40  ;;  %v1554_v40 = vrot.slane %v1552_v17, 1 }
 0x1a4   : > { %v7552_v27 = vadd.f32 %v2280_v26, %v2002_v11 }
 0x1a5   : > { %v1324_v32 = vpop.f32.mrf.mxu3 }
 0x1a6   : > { %v7557_v14 = vadd.f32 %v1324_v32, %v7234_v9  ;;  %v1555_v9 = vshll.u32 %v7526_v42, 16 }
 0x1a7   : > { %v1686_v39 = vpop.f32.mrf.mxu0  ;;  %6524 = vmatmul.msk.bf16.gmra.mxu2 %vm535_vm1, %v2189_v54  ;;  %v2190_v54 = vrot.slane %v7569_v52, 2 }
 0x1a8   : > { %v1767_v4 = vadd.f32 %v1686_v39, %v1398_v51  ;;  %v1924_v62 = vpop.f32.mrf.mxu1  ;;  %v1829_v51 = vrot.slane %v7526_v42, 2  ;;  %v1557_v11 = vrot.slane %v1555_v9, 2  ;;  %v7577_v39 = vld [vmem:[%s7018_s10 + $0x80] sm:$0xff] }
 0x1a9   : > { %v1228_v17 = vrot.slane %v7577_v39, 1 }
 0x1aa   : > { %v2003_v37 = vadd.f32 %v1922_v25, %v1767_v4  ;;  %6418 = vmatmul.msk.bf16.gmra.mxu0 %vm535_vm1, %v1550_v21  ;;  %v2283_v0 = vpop.f32.mrf.mxu2  ;;  %6401 = vmatmul.msk.bf16.gmra.mxu3 %vm535_vm1, %v1227_v19  ;;  %v1830_v21 = vsel %vm1803_vm4, %v1827_v7, %v1829_v51  ;;  %v1558_v42 = vor.u32 %v1557_v11, %v1554_v40 }
 0x1ac   : > { %v7566_v6 = vadd.f32 %v2283_v0, %v2003_v37  ;;  %v6951_v37 = vmov 0   ;;  %v2191_v0 = vsel %vm1803_vm4, %v2188_v50, %v2190_v54  ;;  %v1559_v52 = vsel %vm1434_vm5, %v1549_v48, %v1558_v42  ;;  %v7604_v48 = vld [vmem:[%s7018_s10 + $0x80] sm:$0xff] }
 0x1ad   : > { %v1327_v8 = vpop.f32.mrf.mxu3  ;;  %6922 = vset.pattern.permute.xlu0 %v6951_v37  ;;  %6923 = vset.pattern.permute.xlu1 %v6951_v37 }
 0x1ae   : > { %v7573_v20 = vadd.f32 %v1327_v8, %v7256_v36  ;;  %v3071_v36 = vld [vmem:[%s9114_s5] sm:$0xff]  ;;  %6924 = vset.pattern.permute.xlu2 %v6951_v37 }
 0x1af   : > { %v1688_v25 = vpop.f32.mrf.mxu0  ;;  %3109 = vperm.xlu0 %6922, %v3071_v36  }
 0x1b0   : > { %v1768_v26 = vadd.f32 %v1688_v25, %v1399_v41  ;;  %v1927_v32 = vpop.f32.mrf.mxu1  ;;  %v1229_v25 = vsel %vm837_vm2, %v1226_v57, %v1228_v17  ;;  %v1831_v57 = vrot.slane %v7548_v2, 2 }
 0x1b2   : > { %v2004_v4 = vadd.f32 %v1924_v62, %v1768_v26  ;;  %v2285_v19 = vpop.f32.mrf.mxu2  ;;  %v3072_v26 = vld [vmem:[%s9114_s5 + $0x8] sm:$0xff] }
 0x1b3   : > { %6438 = vmatmul.msk.bf16.gmra.mxu1 %vm535_vm1, %v1830_v21  ;;  %v1564_v21 = vshll.u32 %v7548_v2, 16 }
 0x1b4   : > { %v7584_v41 = vadd.f32 %v2285_v19, %v2004_v4 }
 0x1b5   : > { %v1329_v7 = vpop.f32.mrf.mxu3  ;;  %v1566_v36 = vrot.slane %v1564_v21, 2 }
 0x1b6   : > { %v7589_v62 = vadd.f32 %v1329_v7, %v7275_v60  ;;  %v1561_v60 = vshrl.u32 %v7548_v2, 16  ;;  %v2192_v7 = vrot.slane %v7604_v48, 2  ;;  %v3073_v2 = vld [vmem:[%s9114_s5 + $0x10] sm:$0xff] }
 0x1b7   : > { %v1691_v9 = vpop.f32.mrf.mxu0  ;;  %6525 = vmatmul.msk.bf16.gmra.mxu2 %vm535_vm1, %v2191_v0  ;;  %3114 = vperm.xlu0 %6922, %v3072_v26  }
 0x1b8   : > { %v1769_v8 = vadd.f32 %v1691_v9, %v1400_v55  ;;  %v1929_v40 = vpop.f32.mrf.mxu1  ;;  %v1563_v37 = vrot.slane %v1561_v60, 1  ;;  %3119 = vperm.xlu1 %6923, %v3073_v2   ;;  %v2193_v26 = vsel %vm1803_vm4, %v2190_v54, %v2192_v7 }
 0x1ba   : > { %v2005_v11 = vadd.f32 %v1927_v32, %v1769_v8  ;;  %6419 = vmatmul.msk.bf16.gmra.mxu0 %vm535_vm1, %v1559_v52  ;;  %v2288_v50 = vpop.f32.mrf.mxu2  ;;  %6402 = vmatmul.msk.bf16.gmra.mxu3 %vm535_vm1, %v1229_v25  ;;  %v7613_v52 = vld [vmem:[%s7018_s10 + $0x88] sm:$0xff]  ;;  %v1832_v8 = vsel %vm1803_vm4, %v1829_v51, %v1831_v57 }
 0x1bb   : > { %v1230_v51 = vrot.slane %v7613_v52, 1 }
 0x1bc   : > { %v7601_v55 = vadd.f32 %v2288_v50, %v2005_v11  ;;  %v1567_v50 = vor.u32 %v1566_v36, %v1563_v37 }
 0x1bd   : > { %v1332_v32 = vpop.f32.mrf.mxu3 }
 0x1be   : > { %v7608_v4 = vadd.f32 %v1332_v32, %v7287_v63  ;;  %v3077_v63 = vld [vmem:[%s9114_s5 + $0x30] sm:$0xff]  ;;  %v1568_v48 = vsel %vm1434_vm5, %v1558_v42, %v1567_v50  ;;  %v1573_v42 = vshll.u32 %v7577_v39, 16 }
 0x1bf   : > { %v1693_v19 = vpop.f32.mrf.mxu0  ;;  %3139 = vperm.xlu0 %6922, %v3077_v63  }
 0x1c0   : > { %v1770_v0 = vadd.f32 %v1693_v19, %v7557_v14  ;;  %v1932_v9 = vpop.f32.mrf.mxu1  ;;  %v1231_v19 = vsel %vm837_vm2, %v1228_v17, %v1230_v51 }
 0x1c2   : > { %v2006_v25 = vadd.f32 %v1929_v40, %v1770_v0  ;;  %v2290_v11 = vpop.f32.mrf.mxu2  ;;  %v3080_v0 = vld [vmem:[%s9114_s5 + $0x48] sm:$0xff] }
 0x1c3   : > { %6439 = vmatmul.msk.bf16.gmra.mxu1 %vm535_vm1, %v1832_v8  ;;  %v1833_v8 = vrot.slane %v7577_v39, 2 }
 0x1c4   : > { %v7623_v14 = vadd.f32 %v2290_v11, %v2006_v25 }
 0x1c5   : > { %v1334_v40 = vpop.f32.mrf.mxu3 }
 0x1c6   : > { %v7628_v60 = vadd.f32 %v1334_v40, %v7301_v44  ;;  %v3074_v44 = vld [vmem:[%s9114_s5 + $0x18] sm:$0xff] }
 0x1c7   : > { %v1696_v21 = vpop.f32.mrf.mxu0  ;;  %6526 = vmatmul.msk.bf16.gmra.mxu2 %vm535_vm1, %v2193_v26  ;;  %3124 = vperm.xlu1 %6923, %v3074_v44   ;;  %v1575_v26 = vrot.slane %v1573_v42, 2 }
 0x1c8   : > { %v1771_v32 = vadd.f32 %v1696_v21, %v7573_v20  ;;  %v1934_v37 = vpop.f32.mrf.mxu1  ;;  %v1570_v20 = vshrl.u32 %v7577_v39, 16  ;;  %3154 = vperm.xlu0 %6922, %v3080_v0   ;;  %v3078_v39 = vld [vmem:[%s9114_s5 + $0x38] sm:$0xff] }
 0x1ca   : > { %v2007_v36 = vadd.f32 %v1932_v9, %v1771_v32  ;;  %6420 = vmatmul.msk.bf16.gmra.mxu0 %vm535_vm1, %v1568_v48  ;;  %v2293_v54 = vpop.f32.mrf.mxu2  ;;  %6403 = vmatmul.msk.bf16.gmra.mxu3 %vm535_vm1, %v1231_v19  ;;  %v7647_v9 = vld [vmem:[%s7018_s10 + $0x88] sm:$0xff]  ;;  %v1572_v63 = vrot.slane %v1570_v20, 1  ;;  %v7656_v32 = vld [vmem:[%s7018_s10 + $0x90] sm:$0xff]  ;;  %v1834_v19 = vsel %vm1803_vm4, %v1831_v57, %v1833_v8 }
 0x1cb   : > { %v2194_v21 = vrot.slane %v7647_v9, 2  ;;  %v1232_v57 = vrot.slane %v7656_v32, 1 }
 0x1cc   : > { %v7644_v17 = vadd.f32 %v2293_v54, %v2007_v36  ;;  %v1576_v44 = vor.u32 %v1575_v26, %v1572_v63 }
 0x1cd   : > { %v1337_v25 = vpop.f32.mrf.mxu3  ;;  %v2195_v0 = vsel %vm1803_vm4, %v2192_v7, %v2194_v21  ;;  %v1103_v7 = vld [vmem:[%s7018_s10 + $0x98] sm:$0x1] }
 0x1ce   : > { %v7651_v11 = vadd.f32 %v1337_v25, %v7313_v59  ;;  %v3083_v59 = vld [vmem:[%s9114_s5 + $0x60] sm:$0xff]  ;;  %v1577_v9 = vsel %vm1434_vm5, %v1567_v50, %v1576_v44  ;;  %v1582_v50 = vshll.u32 %v7613_v52, 16 }
 0x1cf   : > { %v1698_v2 = vpop.f32.mrf.mxu0  ;;  %3144 = vperm.xlu1 %6923, %v3078_v39  }
 0x1d0   : > { %v1772_v40 = vadd.f32 %v1698_v2, %v7589_v62  ;;  %v1937_v48 = vpop.f32.mrf.mxu1  ;;  %3169 = vperm.xlu0 %6922, %v3083_v59   ;;  %v1233_v2 = vsel %vm837_vm2, %v1230_v51, %v1232_v57 }
 0x1d2   : > { %v2008_v36 = vadd.f32 %v1934_v37, %v1772_v40  ;;  %v2295_v54 = vpop.f32.mrf.mxu2 }
 0x1d3   : > { %6440 = vmatmul.msk.bf16.gmra.mxu1 %vm535_vm1, %v1834_v19  ;;  %v3086_v19 = vld [vmem:[%s9114_s5 + $0x78] sm:$0xff] }
 0x1d4   : > { %v7666_v62 = vadd.f32 %v2295_v54, %v2008_v36  ;;  %v1179_v36 = vunpack.c.l.b16 %v1103_v7  ;;  %v1835_v54 = vrot.slane %v7613_v52, 2 }
 0x1d5   : > { %v1339_v37 = vpop.f32.mrf.mxu3 }
 0x1d6   : > { %v7671_v20 = vadd.f32 %v1339_v37, %v7327_v13  ;;  %v3081_v13 = vld [vmem:[%s9114_s5 + $0x50] sm:$0xff] }
 0x1d7   : > { %v1701_v42 = vpop.f32.mrf.mxu0  ;;  %6527 = vmatmul.msk.bf16.gmra.mxu2 %vm535_vm1, %v2195_v0  ;;  %3159 = vperm.xlu1 %6923, %v3081_v13  }
 0x1d8   : > { %v1773_v25 = vadd.f32 %v1701_v42, %v7608_v4  ;;  %v7677_v63 = vpop.f32.mrf.mxu1  ;;  %v1579_v4 = vshrl.u32 %v7613_v52, 16  ;;  %3184 = vperm.xlu0 %6922, %v3086_v19   ;;  %v1584_v42 = vrot.slane %v1582_v50, 2  ;;  %v3084_v52 = vld [vmem:[%s9114_s5 + $0x68] sm:$0xff] }
 0x1da   : > { %v2009_v26 = vadd.f32 %v1937_v48, %v1773_v25  ;;  %6421 = vmatmul.msk.bf16.gmra.mxu0 %vm535_vm1, %v1577_v9  ;;  %v2298_v40 = vpop.f32.mrf.mxu2  ;;  %6404 = vmatmul.msk.bf16.gmra.mxu3 %vm535_vm1, %v1233_v2  ;;  %v7693_v48 = vld [vmem:[%s7018_s10 + $0x90] sm:$0xff]  ;;  %v1581_v37 = vrot.slane %v1579_v4, 1 }
 0x1db   : > { %v9117_v25 = vrot.slane %v7693_v48, 2 }
 0x1dc   : > { %v7690_v51 = vadd.f32 %v2298_v40, %v2009_v26  ;;  %v1198_v26 = vpack.c.b16 %v1179_v36, %v1179_v36  ;;  %v1836_v40 = vsel %vm1803_vm4, %v1833_v8, %v1835_v54  ;;  %v7712_v13 = vor.u32 %v1584_v42, %v1581_v37 }
 0x1dd   : > { %v1342_v39 = vpop.f32.mrf.mxu3 }
 0x1de   : > { %v7697_v59 = vadd.f32 %v1342_v39, %v7339_v43  ;;  %v3089_v43 = vld [vmem:[%s9114_s5 + $0x90] sm:$0xff]  ;;  %v1234_v8 = vrot.slane %v1198_v26, 1  ;;  %v1586_v36 = vsel %vm1434_vm5, %v1576_v44, %v7712_v13  ;;  %v1588_v26 = vshrl.u32 %v7656_v32, 16  ;;  %v3092_v44 = vld [vmem:[%s9114_s5 + $0xa8] sm:$0xff] }
 0x1df   : > { %v1703_v0 = vpop.f32.mrf.mxu0  ;;  %3174 = vperm.xlu1 %6923, %v3084_v52   ;;  %v2405_v52 = vshll.u32 %v7264_v22, 16 }
 0x1e0   : > { %v7700_v9 = vadd.f32 %v1703_v0, %v7628_v60  ;;  %v1942_v2 = vpop.f32.mrf.mxu1  ;;  %v2197_v60 = vsel %vm1803_vm4, %v2194_v21, %v9117_v25  ;;  %3199 = vperm.xlu0 %6922, %v3089_v43   ;;  %v1235_v0 = vsel %vm837_vm2, %v1232_v57, %v1234_v8  ;;  %v7729_v21 = vld [vmem:[%s7018_s10 + $0x98] sm:$0xff]  ;;  %v1591_v57 = vshll.u32 %v7656_v32, 16 }
 0x1e1   : > { %v7750_v8 = vld [vmem:[%s7018_s10 + $0x18] sm:$0xff]  ;;  %v2407_v28 = vrot.slane %v2405_v52, 3  ;;  %v9123_v52 = vrot.slane %v7693_v48, 2 }
 0x1e2   : > { %v7704_v7 = vpop.f32.mrf.mxu2 }
 0x1e3   : > { %6441 = vmatmul.msk.bf16.gmra.mxu1 %vm535_vm1, %v1836_v40  ;;  %v3075_v40 = vld [vmem:[%s9114_s5 + $0x20] sm:$0xff] }
 0x1e4   : > { %3129 = vperm.xlu2 %6924, %v3075_v40  }
 0x1e5   : > { %v1344_v19 = vpop.f32.mrf.mxu3 }
 0x1e6   : > { %v7719_v4 = vadd.f32 %v1344_v19, %v7353_v5  ;;  %v2410_v19 = vshrl.u32 %v7750_v8, 16 }
 0x1e7   : > { %v1706_v50 = vpop.f32.mrf.mxu0  ;;  %6528 = vmatmul.msk.bf16.gmra.mxu2 %vm535_vm1, %v2197_v60 }
 0x1e8   : > { %v1775_v39 = vadd.f32 %v1706_v50, %v7651_v11  ;;  %v7726_v37 = vpop.f32.mrf.mxu1  ;;  %v3087_v11 = vld [vmem:[%s9114_s5 + $0x80] sm:$0xff]  ;;  %v2413_v50 = vshll.u32 %v7750_v8, 16  ;;  %3214 = vperm.xlu0 %6922, %v3092_v44   ;;  %v2412_v44 = vrot.slane %v2410_v19, 2 }
 0x1e9   : > { %9118 = vst [vmem:[#allocation3_spill] sm:$0xff] %v7726_v37  ;;  %3189 = vperm.xlu1 %6923, %v3087_v11   ;;  %v9120_v37 = vrot.slane %v7656_v32, 2 }
 0x1ea   : > { %v2011_v42 = vadd.f32 %v1942_v2, %v1775_v39  ;;  %6422 = vmatmul.msk.bf16.gmra.mxu0 %vm535_vm1, %v1586_v36  ;;  %v2303_v5 = vpop.f32.mrf.mxu2  ;;  %6405 = vmatmul.msk.bf16.gmra.mxu3 %vm535_vm1, %v1235_v0  ;;  %v2402_v2 = vshrl.u32 %v7264_v22, 16  ;;  %v1590_v0 = vrot.slane %v1588_v26, 1  ;;  %v1428_v39 = vld [vmem:[%s7018_s10 + $0x98] sm:$0x3] }
 0x1eb   : > { %v1838_v11 = vsel %vm1803_vm4, %v1835_v54, %v9120_v37  ;;  %v1432_v54 = vunpack.c.l.b16 %v1428_v39  ;;  %v9122_v37 = vrot.slane %v7729_v21, 2 }
 0x1ec   : > { %v7746_v43 = vadd.f32 %v2303_v5, %v2011_v42  ;;  %v1593_v5 = vrot.slane %v1591_v57, 2  ;;  %v2404_v40 = vrot.slane %v2402_v2, 2  ;;  %v3095_v57 = vld [vmem:[%s9114_s5 + $0xc0] sm:$0xff] }
 0x1ed   : > { %v1347_v36 = vpop.f32.mrf.mxu3  ;;  %v2199_v19 = vsel %vm1803_vm4, %v9123_v52, %v9122_v37  ;;  %v7810_v37 = vld [vmem:[%s7018_s10 + $0x20] sm:$0xff] }
 0x1ee   : > { %9119 = vst [vmem:[#allocation4_spill] sm:$0xff] %v7746_v43  ;;  %v7756_v22 = vadd.f32 %v1347_v36, %v7365_v29  ;;  %v2415_v43 = vrot.slane %v2413_v50, 3  ;;  %v3076_v29 = vld [vmem:[%s9114_s5 + $0x28] sm:$0xff]  ;;  %v7776_v2 = vor.u32 %v1593_v5, %v1590_v0  ;;  %v2408_v50 = vor.u32 %v2407_v28, %v2404_v40 }
 0x1ef   : > { %v1708_v42 = vpop.f32.mrf.mxu0  ;;  %3134 = vperm.xlu2 %6924, %v3076_v29   ;;  %v2419_v52 = vshrl.u32 %v7810_v37, 16 }
 0x1f0   : > { %v7759_v25 = vadd.f32 %v1708_v42, %v7671_v20  ;;  %v1947_v60 = vpop.f32.mrf.mxu1  ;;  %v3090_v20 = vld [vmem:[%s9114_s5 + $0x98] sm:$0xff]  ;;  %v2416_v36 = vor.u32 %v2415_v43, %v2412_v44  ;;  %v2069_v42 = vld [vmem:[%s7018_s10 + $0xa0] sm:$0x3]  ;;  %3229 = vperm.xlu0 %6922, %v3095_v57   ;;  %v1595_v39 = vsel %vm1434_vm5, %v7712_v13, %v7776_v2  ;;  %v3093_v13 = vld [vmem:[%s9114_s5 + $0xb0] sm:$0xff] }
 0x1f1   : > { %3204 = vperm.xlu1 %6923, %v3090_v20   ;;  %v2145_v48 = vunpack.c.l.b16 %v2069_v42 }
 0x1f2   : > { %v7765_v26 = vpop.f32.mrf.mxu2  ;;  %v2417_v43 = vsel %vm2400_vm6, %v2408_v50, %v2416_v36 }
 0x1f3   : > { %9121 = vst [vmem:[#allocation5_spill] sm:$0xff] %v7765_v26  ;;  %6442 = vmatmul.msk.bf16.gmra.mxu1 %vm535_vm1, %v1838_v11  ;;  %v1433_v11 = vpack.c.b16 %v1432_v54, %v1432_v54  ;;  %v2164_v29 = vpack.c.b16 %v2145_v48, %v2145_v48 }
 0x1f5   : > { %v1349_v26 = vpop.f32.mrf.mxu3  ;;  %v1597_v20 = vshrl.u32 %v1433_v11, 16  ;;  %v1839_v54 = vrot.slane %v1433_v11, 2 }
 0x1f6   : > { %v7786_v0 = vadd.f32 %v1349_v26, %v7379_v53  ;;  %v3079_v26 = vld [vmem:[%s9114_s5 + $0x40] sm:$0xff] }
 0x1f7   : > { %v1711_v5 = vpop.f32.mrf.mxu0  ;;  %6529 = vmatmul.msk.bf16.gmra.mxu2 %vm535_vm1, %v2199_v19  ;;  %3149 = vperm.xlu2 %6924, %v3079_v26   ;;  %v2422_v19 = vshll.u32 %v7810_v37, 16  ;;  %v1599_v48 = vrot.slane %v1597_v20, 1  ;;  %v2421_v26 = vrot.slane %v2419_v52, 2 }
 0x1f8   : > { %v1777_v28 = vadd.f32 %v1711_v5, %v7697_v59  ;;  %v7794_v40 = vpop.f32.mrf.mxu1  ;;  %v3098_v59 = vld [vmem:[%s9114_s5 + $0xd8] sm:$0xff] }
 0x1f9   : > { %9124 = vst [vmem:[#allocation6_spill] sm:$0xff] %v7794_v40  ;;  %3219 = vperm.xlu1 %6923, %v3093_v13   ;;  %3244 = vperm.xlu0 %6922, %v3098_v59   ;;  %v2424_v40 = vrot.slane %v2422_v19, 3  ;;  %v3096_v59 = vld [vmem:[%s9114_s5 + $0xc8] sm:$0xff] }
 0x1fa   : > { %v2013_v44 = vadd.f32 %v1947_v60, %v1777_v28  ;;  %6423 = vmatmul.msk.bf16.gmra.mxu0 %vm535_vm1, %v1595_v39  ;;  %v2308_v53 = vpop.f32.mrf.mxu2  ;;  %6532 = vmatmul.msk.bf16.vlgmr.msra.gmra.mxu3 %vm535_vm1, %v2417_v43  ;;  %v1600_v60 = vshll.u32 %v1433_v11, 16  ;;  %v2200_v39 = vrot.slane %v2164_v29, 2  ;;  %v9126_v29 = vrot.slane %v7729_v21, 2 }
 0x1fc   : > { %v7807_v57 = vadd.f32 %v2308_v53, %v2013_v44  ;;  %v1602_v28 = vrot.slane %v1600_v60, 2  ;;  %v9125_v44 = vrot.slane %v7656_v32, 2  ;;  %v2201_v20 = vsel %vm1803_vm4, %v9126_v29, %v2200_v39  ;;  %v2763_v39 = vld [vmem:[%s7018_s10 + $0x10] sm:$0x8] }
 0x1fd   : > { %v1352_v50 = vpop.f32.mrf.mxu3  ;;  %v2425_v60 = vor.u32 %v2424_v40, %v2421_v26 }
 0x1fe   : > { %v7815_v42 = vadd.f32 %v1352_v50, %v7391_v33  ;;  %v1840_v53 = vsel %vm1803_vm4, %v9125_v44, %v1839_v54  ;;  %v3082_v33 = vld [vmem:[%s9114_s5 + $0x58] sm:$0xff]  ;;  %v1603_v32 = vor.u32 %v1602_v28, %v1599_v48  ;;  %v3099_v44 = vld [vmem:[%s9114_s5 + $0xe0] sm:$0xff] }
 0x1ff   : > { %v1713_v5 = vpop.f32.mrf.mxu0  ;;  %3164 = vperm.xlu2 %6924, %v3082_v33   ;;  %v2426_v48 = vsel %vm2400_vm6, %v2416_v36, %v2425_v60 }
 0x200   : > { %v7818_v43 = vadd.f32 %v1713_v5, %v7719_v4  ;;  %v1952_v11 = vpop.f32.mrf.mxu1  ;;  %v3101_v4 = vld [vmem:[%s9114_s5 + $0xf0] sm:$0xff]  ;;  %v1604_v50 = vsel %vm1434_vm5, %v7776_v2, %v1603_v32  ;;  %v2767_v2 = vunpack.c.l.b16 %v2763_v39  ;;  %v9127_v32 = vunpack.c.l.b16 %v7243_v16 }
 0x201   : > { %3234 = vperm.xlu1 %6923, %v3096_v59   ;;  %3259 = vperm.xlu0 %6922, %v3101_v4   ;;  %v2771_v16 = vrot.slane %v7750_v8, 3 }
 0x202   : > { %v7823_v13 = vpop.f32.mrf.mxu2  ;;  %v2768_v29 = vpack.c.b16 %v9127_v32, %v2767_v2 }
 0x203   : > { %6443 = vmatmul.msk.bf16.gmra.mxu1 %vm535_vm1, %v1840_v53 }
 0x204   : > { %v2770_v39 = vrot.slane %v2768_v29, 3 }
 0x205   : > { %v1354_v54 = vpop.f32.mrf.mxu3 }
 0x206   : > { %v1413_v52 = vadd.f32 %v1354_v54, %v7405_v46  ;;  %v3085_v46 = vld [vmem:[%s9114_s5 + $0x70] sm:$0xff] }
 0x207   : > { %v1716_v19 = vpop.f32.mrf.mxu0  ;;  %6530 = vmatmul.msk.bf16.gmra.mxu2 %vm535_vm1, %v2201_v20  ;;  %3179 = vperm.xlu2 %6924, %v3085_v46  }
 0x208   : > { %v1779_v5 = vadd.f32 %v1716_v19, %v7756_v22  ;;  %v7844_v21 = vpop.f32.mrf.mxu1  ;;  %v3104_v22 = vld [vmem:[%s9114_s5 + $0x108] sm:$0xff] }
 0x209   : > { %3249 = vperm.xlu1 %6923, %v3099_v44   ;;  %3274 = vperm.xlu0 %6922, %v3104_v22   ;;  %v2772_v44 = vsel %vm2769_vm7, %v2770_v39, %v2771_v16 }
 0x20a   : > { %v2015_v40 = vadd.f32 %v1952_v11, %v1779_v5  ;;  %6424 = vmatmul.msk.bf16.gmra.mxu0 %vm535_vm1, %v1604_v50  ;;  %v2313_v28 = vpop.f32.mrf.mxu2  ;;  %6533 = vmatmul.msk.bf16.gmra.mxu3 %vm535_vm1, %v2426_v48  ;;  %v7861_v11 = vld [vmem:[%s7018_s10 + $0x28] sm:$0xff] }
 0x20b   : > { %v2428_v53 = vshrl.u32 %v7861_v11, 16  ;;  %v2431_v26 = vshll.u32 %v7861_v11, 16  ;;  %v3088_v48 = vld [vmem:[%s9114_s5 + $0x88] sm:$0xff] }
 0x20c   : > { %v7858_v36 = vadd.f32 %v2313_v28, %v2015_v40 }
 0x20d   : > { %v1357_v33 = vpop.f32.mrf.mxu3  ;;  %v2430_v19 = vrot.slane %v2428_v53, 2  ;;  %v2433_v50 = vrot.slane %v2431_v26, 3 }
 0x20e   : > { %v1414_v59 = vadd.f32 %v1357_v33, %v7417_v12  ;;  %v3102_v12 = vld [vmem:[%s9114_s5 + $0xf8] sm:$0xff]  ;;  %v3091_v33 = vld [vmem:[%s9114_s5 + $0xa0] sm:$0xff] }
 0x20f   : > { %v1718_v4 = vpop.f32.mrf.mxu0  ;;  %3194 = vperm.xlu2 %6924, %v3088_v48  }
 0x210   : > { %v7869_v20 = vadd.f32 %v1718_v4, %v7786_v0  ;;  %v1957_v54 = vpop.f32.mrf.mxu1  ;;  %v2434_v0 = vor.u32 %v2433_v50, %v2430_v19 }
 0x211   : > { %3264 = vperm.xlu1 %6923, %v3102_v12  }
 0x212   : > { %v7871_v5 = vpop.f32.mrf.mxu2  ;;  %v2435_v2 = vsel %vm2400_vm6, %v2425_v60, %v2434_v0  ;;  %v7897_v60 = vld [vmem:[%s7018_s10 + $0x30] sm:$0xff] }
 0x213   : > { %v2437_v4 = vshrl.u32 %v7897_v60, 16  ;;  %v2440_v32 = vshll.u32 %v7897_v60, 16 }
 0x215   : > { %v1359_v40 = vpop.f32.mrf.mxu3  ;;  %v2439_v12 = vrot.slane %v2437_v4, 2  ;;  %v2442_v39 = vrot.slane %v2440_v32, 3 }
 0x216   : > { %v1415_v28 = vadd.f32 %v1359_v40, %v7431_v1  ;;  %v3105_v1 = vld [vmem:[%s9114_s5 + $0x110] sm:$0xff] }
 0x217   : > { %v1721_v46 = vpop.f32.mrf.mxu0  ;;  %3209 = vperm.xlu2 %6924, %v3091_v33  }
 0x218   : > { %v1781_v22 = vadd.f32 %v1721_v46, %v7815_v42  ;;  %v7884_v53 = vpop.f32.mrf.mxu1  ;;  %v3094_v46 = vld [vmem:[%s9114_s5 + $0xb8] sm:$0xff] }
 0x219   : > { %3279 = vperm.xlu1 %6923, %v3105_v1  }
 0x21a   : > { %v2017_v26 = vadd.f32 %v1957_v54, %v1781_v22  ;;  %6551 = vmatmul.msk.bf16.vlgmr.msra.gmra.mxu0 %vm535_vm1, %v2772_v44  ;;  %v2318_v8 = vpop.f32.mrf.mxu2  ;;  %6534 = vmatmul.msk.bf16.gmra.mxu3 %vm535_vm1, %v2435_v2  ;;  %v2773_v44 = vrot.slane %v7810_v37, 3  ;;  %v2443_v22 = vor.u32 %v2442_v39, %v2439_v12  ;;  %v3097_v37 = vld [vmem:[%s9114_s5 + $0xd0] sm:$0xff] }
 0x21c   : > { %v7894_v42 = vadd.f32 %v2318_v8, %v2017_v26  ;;  %v2444_v33 = vsel %vm2400_vm6, %v2434_v0, %v2443_v22 }
 0x21d   : > { %v1362_v29 = vpop.f32.mrf.mxu3 }
 0x21e   : > { %v1416_v54 = vadd.f32 %v1362_v29, %v7443_v45  ;;  %v7923_v29 = vld [vmem:[%s7018_s10 + $0x38] sm:$0xff] }
 0x21f   : > { %v1723_v19 = vpop.f32.mrf.mxu0  ;;  %3224 = vperm.xlu2 %6924, %v3094_v46  }
 0x220   : > { %v7902_v50 = vadd.f32 %v1723_v19, %v1413_v52  ;;  %v1962_v48 = vpop.f32.mrf.mxu1  ;;  %v2774_v52 = vsel %vm2769_vm7, %v2771_v16, %v2773_v44  ;;  %v2449_v16 = vshll.u32 %v7923_v29, 16 }
 0x222   : > { %v7904_v40 = vpop.f32.mrf.mxu2 }
 0x225   : > { %v1364_v2 = vpop.f32.mrf.mxu3 }
 0x226   : > { %v1417_v45 = vadd.f32 %v1364_v2, %v7458_v18  ;;  %v2451_v2 = vrot.slane %v2449_v16, 3 }
 0x227   : > { %v1726_v26 = vpop.f32.mrf.mxu0  ;;  %3239 = vperm.xlu2 %6924, %v3097_v37  }
 0x228   : > { %v1783_v8 = vadd.f32 %v1726_v26, %v1414_v59  ;;  %v7913_v1 = vpop.f32.mrf.mxu1  ;;  %v2446_v59 = vshrl.u32 %v7923_v29, 16 }
 0x22a   : > { %v2019_v4 = vadd.f32 %v1962_v48, %v1783_v8  ;;  %6552 = vmatmul.msk.bf16.gmra.mxu0 %vm535_vm1, %v2774_v52  ;;  %v2323_v32 = vpop.f32.mrf.mxu2  ;;  %6535 = vmatmul.msk.bf16.gmra.mxu3 %vm535_vm1, %v2444_v33  ;;  %v2448_v46 = vrot.slane %v2446_v59, 2  ;;  %v3100_v52 = vld [vmem:[%s9114_s5 + $0xe8] sm:$0xff]  ;;  %v2775_v8 = vrot.slane %v7861_v11, 3  ;;  %v3103_v11 = vld [vmem:[%s9114_s5 + $0x100] sm:$0xff] }
 0x22c   : > { %v7920_v18 = vadd.f32 %v2323_v32, %v2019_v4  ;;  %v2452_v33 = vor.u32 %v2451_v2, %v2448_v46  ;;  %v7949_v46 = vld [vmem:[%s7018_s10 + $0x40] sm:$0xff] }
 0x22d   : > { %v1367_v0 = vpop.f32.mrf.mxu3 }
 0x22e   : > { %v1418_v19 = vadd.f32 %v1367_v0, %v7473_v10  ;;  %v2453_v59 = vsel %vm2400_vm6, %v2443_v22, %v2452_v33 }
 0x22f   : > { %v1728_v48 = vpop.f32.mrf.mxu0  ;;  %3254 = vperm.xlu2 %6924, %v3100_v52  }
 0x230   : > { %v7928_v12 = vadd.f32 %v1728_v48, %v1415_v28  ;;  %v1967_v39 = vpop.f32.mrf.mxu1  ;;  %v2776_v28 = vsel %vm2769_vm7, %v2773_v44, %v2775_v8  ;;  %v2458_v44 = vshll.u32 %v7949_v46, 16 }
 0x232   : > { %v7930_v26 = vpop.f32.mrf.mxu2 }
 0x235   : > { %v1369_v4 = vpop.f32.mrf.mxu3 }
 0x236   : > { %v1419_v10 = vadd.f32 %v1369_v4, %v7485_v24 }
 0x237   : > { %v1731_v32 = vpop.f32.mrf.mxu0  ;;  %3269 = vperm.xlu2 %6924, %v3103_v11  }
 0x238   : > { %v1785_v37 = vadd.f32 %v1731_v32, %v1416_v54  ;;  %v7939_v16 = vpop.f32.mrf.mxu1  ;;  %v2455_v54 = vshrl.u32 %v7949_v46, 16 }
 0x239   : > { %9128 = vst [vmem:[#allocation7_spill] sm:$0xff] %v7939_v16 }
 0x23a   : > { %v2021_v0 = vadd.f32 %v1967_v39, %v1785_v37  ;;  %6553 = vmatmul.msk.bf16.gmra.mxu0 %vm535_vm1, %v2776_v28  ;;  %v2328_v48 = vpop.f32.mrf.mxu2  ;;  %6536 = vmatmul.msk.bf16.gmra.mxu3 %vm535_vm1, %v2453_v59  ;;  %v2457_v32 = vrot.slane %v2455_v54, 2  ;;  %v2460_v28 = vrot.slane %v2458_v44, 3  ;;  %v3106_v59 = vld [vmem:[%s9114_s5 + $0x118] sm:$0xff] }
 0x23c   : > { %v7946_v24 = vadd.f32 %v2328_v48, %v2021_v0  ;;  %v2777_v0 = vrot.slane %v7897_v60, 3  ;;  %v2461_v48 = vor.u32 %v2460_v28, %v2457_v32  ;;  %v7972_v32 = vld [vmem:[%s7018_s10 + $0x48] sm:$0xff] }
 0x23d   : > { %v1372_v22 = vpop.f32.mrf.mxu3  ;;  %v2467_v28 = vshll.u32 %v7972_v32, 16 }
 0x23e   : > { %v1420_v39 = vadd.f32 %v1372_v22, %v7347_v47  ;;  %v2462_v54 = vsel %vm2400_vm6, %v2452_v33, %v2461_v48 }
 0x23f   : > { %v1733_v2 = vpop.f32.mrf.mxu0  ;;  %3284 = vperm.xlu2 %6924, %v3106_v59  }
 0x240   : > { %v7954_v52 = vadd.f32 %v1733_v2, %v1417_v45  ;;  %v1972_v4 = vpop.f32.mrf.mxu1  ;;  %v2778_v45 = vsel %vm2769_vm7, %v2775_v8, %v2777_v0 }
 0x242   : > { %9129 = vst [vmem:[#allocation8_spill] sm:$0xff] %v7954_v52  ;;  %v7956_v37 = vpop.f32.mrf.mxu2 }
 0x243   : > { %9130 = vst [vmem:[#allocation9_spill] sm:$0xff] %v7956_v37 }
 0x245   : > { %v1374_v11 = vpop.f32.mrf.mxu3 }
 0x246   : > { %v1421_v47 = vadd.f32 %v1374_v11, %v7359_v15  ;;  %v2464_v15 = vshrl.u32 %v7972_v32, 16 }
 0x247   : > { %v1736_v22 = vpop.f32.mrf.mxu0 }
 0x248   : > { %v1787_v2 = vadd.f32 %v1736_v22, %v1418_v19  ;;  %v7965_v44 = vpop.f32.mrf.mxu1  ;;  %v2466_v11 = vrot.slane %v2464_v15, 2  ;;  %v2469_v22 = vrot.slane %v2467_v28, 3 }
 0x249   : > { %9131 = vst [vmem:[#allocation10_spill] sm:$0xff] %v7965_v44 }
 0x24a   : > { %v2023_v37 = vadd.f32 %v1972_v4, %v1787_v2  ;;  %6554 = vmatmul.msk.bf16.gmra.mxu0 %vm535_vm1, %v2778_v45  ;;  %v2333_v16 = vpop.f32.mrf.mxu2  ;;  %6537 = vmatmul.msk.bf16.gmra.mxu3 %vm535_vm1, %v2462_v54 }
 0x24c   : > { %v7969_v60 = vadd.f32 %v2333_v16, %v2023_v37  ;;  %v2779_v16 = vrot.slane %v7923_v29, 3  ;;  %v2470_v37 = vor.u32 %v2469_v22, %v2466_v11  ;;  %v7992_v29 = vld [vmem:[%s7018_s10 + $0x50] sm:$0xff]  ;;  %v2781_v22 = vrot.slane %v7949_v46, 3  ;;  %v8012_v46 = vld [vmem:[%s7018_s10 + $0x58] sm:$0xff] }
 0x24d   : > { %v1377_v8 = vpop.f32.mrf.mxu3 }
 0x24e   : > { %9132 = vst [vmem:[#allocation11_spill] sm:$0xff] %v7969_v60  ;;  %v1422_v19 = vadd.f32 %v1377_v8, %v7373_v23  ;;  %v2780_v60 = vsel %vm2769_vm7, %v2777_v0, %v2779_v16  ;;  %v2471_v23 = vsel %vm2400_vm6, %v2461_v48, %v2470_v37 }
 0x24f   : > { %v1738_v33 = vpop.f32.mrf.mxu0 }
 0x250   : > { %v7977_v59 = vadd.f32 %v1738_v33, %v1419_v10  ;;  %v1977_v4 = vpop.f32.mrf.mxu1  ;;  %v2476_v33 = vshll.u32 %v7992_v29, 16 }
 0x252   : > { %v7979_v45 = vpop.f32.mrf.mxu2 }
 0x255   : > { %v1379_v2 = vpop.f32.mrf.mxu3 }
 0x256   : > { %v1423_v54 = vadd.f32 %v1379_v2, %v7385_v3  ;;  %v2473_v3 = vshrl.u32 %v7992_v29, 16 }
 0x257   : > { %v1741_v44 = vpop.f32.mrf.mxu0 }
 0x258   : > { %v1789_v52 = vadd.f32 %v1741_v44, %v1420_v39  ;;  %v7985_v10 = vpop.f32.mrf.mxu1 }
 0x259   : > { %9133 = vst [vmem:[#allocation12_spill] sm:$0xff] %v7985_v10  ;;  %v2782_v10 = vsel %vm2769_vm7, %v2779_v16, %v2781_v22  ;;  %v6952_v16 = vmov 0.0  }
 0x25a   : > { %v2025_v8 = vadd.f32 %v1977_v4, %v1789_v52  ;;  %6555 = vmatmul.msk.bf16.gmra.mxu0 %vm535_vm1, %v2780_v60  ;;  %v2338_v15 = vpop.f32.mrf.mxu2  ;;  %6538 = vmatmul.msk.bf16.gmra.mxu3 %vm535_vm1, %v2471_v23  ;;  %v2475_v4 = vrot.slane %v2473_v3, 2  ;;  %v2478_v60 = vrot.slane %v2476_v33, 3  ;;  %3323 = vst.msk [vmem:[#allocation2] sm:$0xff] %vm535_vm1, %v6952_v16 }
 0x25b   : > { %3324 = vst.msk [vmem:[#allocation2 + $0x8] sm:$0xff] %vm535_vm1, %v6952_v16 }
 0x25c   : > { %v7989_v28 = vadd.f32 %v2338_v15, %v2025_v8  ;;  %v2479_v2 = vor.u32 %v2478_v60, %v2475_v4  ;;  %3327 = vst.msk [vmem:[#allocation2 + $0x133] sm:$0xff] %vm535_vm1, %v6952_v16 }
 0x25d   : > { %v1382_v0 = vpop.f32.mrf.mxu3  ;;  %3328 = vst.msk [vmem:[#allocation2 + $0x13b] sm:$0xff] %vm535_vm1, %v6952_v16 }
 0x25e   : > { %9134 = vst [vmem:[#allocation13_spill] sm:$0xff] %v7989_v28  ;;  %v1424_v39 = vadd.f32 %v1382_v0, %v7399_v61  ;;  %v2480_v61 = vsel %vm2400_vm6, %v2470_v37, %v2479_v2 }
 0x25f   : > { %v1743_v48 = vpop.f32.mrf.mxu0  ;;  %3329 = vst.msk [vmem:[#allocation2 + $0x143] sm:$0xff] %vm535_vm1, %v6952_v16 }
 0x260   : > { %v7997_v44 = vadd.f32 %v1743_v48, %v1421_v47  ;;  %v1982_v52 = vpop.f32.mrf.mxu1  ;;  %v2485_v48 = vshll.u32 %v8012_v46, 16  ;;  %3326 = vst.msk [vmem:[#allocation2 + $0x10] sm:$0x7] %vm3325_vm8, %v6952_v16 }
 0x262   : > { %v7999_v11 = vpop.f32.mrf.mxu2  ;;  %v2487_v4 = vrot.slane %v2485_v48, 3  ;;  %v3423_v16 = vld [vmem:[#allocation2 + $0x1] sm:$0xff] }
 0x265   : > { %v1384_v23 = vpop.f32.mrf.mxu3 }
 0x266   : > { %v1425_v8 = vadd.f32 %v1384_v23, %v7411_v56  ;;  %v2482_v56 = vshrl.u32 %v8012_v46, 16 }
 0x267   : > { %v1746_v15 = vpop.f32.mrf.mxu0 }
 0x268   : > { %v1791_v28 = vadd.f32 %v1746_v15, %v1422_v19  ;;  %v8005_v47 = vpop.f32.mrf.mxu1  ;;  %v2783_v15 = vrot.slane %v7972_v32, 3 }
 0x269   : > { %9135 = vst [vmem:[#allocation14_spill] sm:$0xff] %v8005_v47  ;;  %v3424_v47 = vld [vmem:[#allocation2 + $0x9] sm:$0xff] }
 0x26a   : > { %v2027_v0 = vadd.f32 %v1982_v52, %v1791_v28  ;;  %6556 = vmatmul.msk.bf16.gmra.mxu0 %vm535_vm1, %v2782_v10  ;;  %v2343_v3 = vpop.f32.mrf.mxu2  ;;  %6539 = vmatmul.msk.bf16.gmra.mxu3 %vm535_vm1, %v2480_v61  ;;  %v2484_v52 = vrot.slane %v2482_v56, 2  ;;  %v3368_v61 = vld [vmem:[#allocation2] sm:$0xff] }
 0x26c   : > { %v8009_v33 = vadd.f32 %v2343_v3, %v2027_v0  ;;  %v3369_v0 = vld [vmem:[#allocation2 + $0x8] sm:$0xff] }
 0x26d   : > { %v1387_v19 = vpop.f32.mrf.mxu3  ;;  %v3404_v3 = vpack.c.bf16 %v3369_v0, %v3368_v61 }
 0x26e   : > { %v1426_v37 = vadd.f32 %v1387_v19, %v7425_v49  ;;  %v2488_v49 = vor.u32 %v2487_v4, %v2484_v52  ;;  %v2784_v19 = vsel %vm2769_vm7, %v2781_v22, %v2783_v15  ;;  %v3459_v52 = vpack.c.bf16 %v3424_v47, %v3423_v16 }
 0x26f   : > { %v1748_v10 = vpop.f32.mrf.mxu0  ;;  %6588 = vmatmul.msk.bf16.vlgmr.msra.gmra.mxu2 %vm535_vm1, %v3404_v3 }
 0x270   : > { %v8020_v28 = vadd.f32 %v1748_v10, %v1423_v54  ;;  %v1987_v23 = vpop.f32.mrf.mxu1  ;;  %6570 = vmatmul.msk.bf16.vlgmr.msra.gmra.mxu1 %vm535_vm1, %v3459_v52 }
 0x272   : > { %9136 = vst [vmem:[#allocation15_spill] sm:$0xff] %v8020_v28  ;;  %v8024_v60 = vpop.f32.mrf.mxu2 }
 0x273   : > { %9137 = vst [vmem:[#allocation16_spill] sm:$0xff] %v8024_v60  ;;  %v2489_v60 = vsel %vm2400_vm6, %v2479_v2, %v2488_v49 }
 0x275   : > { %v1389_v54 = vpop.f32.mrf.mxu3 }
 0x276   : > { %v1427_v56 = vadd.f32 %v1389_v54, %v7437_v31  ;;  %v8036_v31 = vld [vmem:[%s7018_s10 + $0x60] sm:$0xff] }
 0x277   : > { %v1751_v48 = vpop.f32.mrf.mxu0  ;;  %v2491_v22 = vshrl.u32 %v8036_v31, 16  ;;  %v2494_v61 = vshll.u32 %v8036_v31, 16 }
 0x278   : > { %v1793_v10 = vadd.f32 %v1751_v48, %v1424_v39  ;;  %v8041_v39 = vpop.f32.mrf.mxu1  ;;  %v2785_v48 = vrot.slane %v7992_v29, 3  ;;  %v6644_v29 = vld [vmem:[%s9111_s2 + $0x8] sm:$0x3] }
 0x279   : > { %9139 = vst [vmem:[#allocation18_spill] sm:$0xff] %v8041_v39  ;;  %v2493_v3 = vrot.slane %v2491_v22, 2  ;;  %v2496_v47 = vrot.slane %v2494_v61, 3  ;;  %v6625_v61 = vld [vmem:[%s9111_s2 + $0x6] sm:$0x3] }
 0x27a   : > { %v2029_v28 = vadd.f32 %v1987_v23, %v1793_v10  ;;  %6557 = vmatmul.msk.bf16.gmra.mxu0 %vm535_vm1, %v2784_v19  ;;  %v2348_v32 = vpop.f32.mrf.mxu2  ;;  %6540 = vmatmul.msk.bf16.gmra.mxu3 %vm535_vm1, %v2489_v60 }
 0x27b   : > { %v2497_v19 = vor.u32 %v2496_v47, %v2493_v3  ;;  %v4150_v3 = vsel %vm590_vm0, %v6625_v61, 0 }
 0x27c   : > { %v8033_v4 = vadd.f32 %v2348_v32, %v2029_v28  ;;  %v6606_v28 = vld [vmem:[%s9111_s2 + $0x4] sm:$0x3]  ;;  %4159 = vmatpush.bf16.msrb.mxu0 %v4150_v3 }
 0x27d   : > { %v2637_v2 = vpop.f32.mrf.mxu3  ;;  %v3902_v60 = vsel %vm590_vm0, %v6606_v28, 0  ;;  %v2498_v22 = vsel %vm2400_vm6, %v2488_v49, %v2497_v19 }
 0x27e   : > { %9138 = vst [vmem:[#allocation17_spill] sm:$0xff] %v8033_v4  ;;  %3911 = vmatpush.bf16.msrb.mxu3 %v3902_v60  ;;  %v8071_v60 = vld [vmem:[%s7018_s10 + $0x68] sm:$0xff]  ;;  %v2727_v3 = vadd.f32 %v2637_v2, %v7498_v35 }
 0x27f   : > { %v1753_v23 = vpop.f32.mrf.mxu0  ;;  %v2503_v61 = vshll.u32 %v8071_v60, 16 }
 0x280   : > { %v8043_v0 = vadd.f32 %v1753_v23, %v1425_v8  ;;  %v1992_v32 = vpop.f32.mrf.mxu1  ;;  %v2786_v8 = vsel %vm2769_vm7, %v2783_v15, %v2785_v48  ;;  %v6663_v23 = vld [vmem:[%s9111_s2 + $0xa] sm:$0x3] }
 0x281   : > { %v4646_v15 = vsel %vm590_vm0, %v6663_v23, 0 }
 0x282   : > { %9140 = vst [vmem:[#allocation19_spill] sm:$0xff] %v8043_v0  ;;  %v8049_v54 = vpop.f32.mrf.mxu2  ;;  %4655 = vmatpush.bf16.msrb.mxu2 %v4646_v15 }
 0x283   : > { %9141 = vst [vmem:[#allocation20_spill] sm:$0xff] %v8049_v54 }
 0x285   : > { %v2639_v10 = vpop.f32.mrf.mxu3 }
 0x286   : > { %v2728_v2 = vadd.f32 %v2639_v10, %v7508_v30 }
 0x287   : > { %v1756_v16 = vpop.f32.mrf.mxu0 }
 0x288   : > { %v1795_v52 = vadd.f32 %v1756_v16, %v1426_v37  ;;  %v4398_v37 = vsel %vm590_vm0, %v6644_v29, 0  ;;  %v2500_v16 = vshrl.u32 %v8071_v60, 16 }
 0x289   : > { %4407 = vmatpush.bf16.msrb.mxu1 %v4398_v37 }
 0x28a   : > { %v2031_v47 = vadd.f32 %v1992_v32, %v1795_v52  ;;  %6558 = vmatmul.msk.bf16.gmra.mxu0 %vm535_vm1, %v2786_v8  ;;  %v2353_v49 = vpop.f32.mrf.mxu2  ;;  %6541 = vmatmul.msk.bf16.gmra.mxu3 %vm535_vm1, %v2498_v22  ;;  %v2502_v32 = vrot.slane %v2500_v16, 2  ;;  %v2505_v8 = vrot.slane %v2503_v61, 3  ;;  %v2787_v52 = vrot.slane %v8012_v46, 3  ;;  %v8084_v16 = vld [vmem:[%s7018_s10 + $0x70] sm:$0xff] }
 0x28b   : > { %v2509_v46 = vshrl.u32 %v8084_v16, 16  ;;  %v2512_v35 = vshll.u32 %v8084_v16, 16 }
 0x28c   : > { %v8068_v28 = vadd.f32 %v2353_v49, %v2031_v47  ;;  %v2506_v22 = vor.u32 %v2505_v8, %v2502_v32  ;;  %v2788_v49 = vsel %vm2769_vm7, %v2785_v48, %v2787_v52 }
 0x28d   : > { %v2642_v23 = vpop.f32.mrf.mxu3  ;;  %v2511_v8 = vrot.slane %v2509_v46, 2 }
 0x28e   : > { %9142 = vst [vmem:[#allocation21_spill] sm:$0xff] %v8068_v28  ;;  %v2507_v39 = vsel %vm2400_vm6, %v2497_v19, %v2506_v22 }
 0x28f   : > { %v1758_v54 = vpop.f32.mrf.mxu0 }
 0x290   : > { %v8075_v29 = vadd.f32 %v1758_v54, %v1427_v56  ;;  %v3110_v56 = vpop.permute.xlu0 %3109 }
 0x292   : > { %9143 = vst [vmem:[#allocation22_spill] sm:$0xff] %v8075_v29  ;;  %v2729_v29 = vadd.f32 %v2642_v23, %v7520_v38 }
 0x295   : > { %v2644_v15 = vpop.f32.mrf.mxu3 }
 0x297   : > { %v2873_v47 = vpop.f32.mrf.mxu0 }
 0x298   : > { %v2963_v28 = vadd.f32 %v2873_v47, %v2727_v3  ;;  %v2514_v3 = vrot.slane %v2512_v35, 3  ;;  %v8098_v35 = vld [vmem:[%s7018_s10 + $0x78] sm:$0xff] }
 0x299   : > { %v2518_v38 = vshrl.u32 %v8098_v35, 16 }
 0x29a   : > { %v2999_v37 = vmul.f32 0.2, %v2963_v28  ;;  %6559 = vmatmul.msk.bf16.gmra.mxu0 %vm535_vm1, %v2788_v49  ;;  %6542 = vmatmul.msk.bf16.gmra.mxu3 %vm535_vm1, %v2507_v39  ;;  %v2789_v39 = vrot.slane %v8036_v31, 3  ;;  %v2515_v49 = vor.u32 %v2514_v3, %v2511_v8  ;;  %v3120_v31 = vpop.permute.xlu1 %3119 }
 0x29b   : > { %v2520_v3 = vrot.slane %v2518_v38, 2 }
 0x29c   : > { %v3035_v54 = vmax.f32 %v2963_v28, %v2999_v37  ;;  %v3115_v37 = vpop.permute.xlu0 %3114  ;;  %v2790_v10 = vsel %vm2769_vm7, %v2787_v52, %v2789_v39  ;;  %v2730_v52 = vadd.f32 %v2644_v15, %v7530_v58  ;;  %v2791_v58 = vrot.slane %v8071_v60, 3  ;;  %v3130_v60 = vpop.permute.xlu2 %3129 }
 0x29d   : > { %v2647_v48 = vpop.f32.mrf.mxu3 }
 0x29e   : > { %v3287_v61 = vmul.f32 %v3110_v56, %v3035_v54  ;;  %v2516_v54 = vsel %vm2400_vm6, %v2506_v22, %v2515_v49 }
 0x29f   : > { %v2875_v32 = vpop.f32.mrf.mxu0 }
 0x2a0   : > { %3332 = vst.msk [vmem:[#allocation2 + $0x13] sm:$0xff] %vm535_vm1, %v3287_v61  ;;  %v2964_v19 = vadd.f32 %v2875_v32, %v2728_v2  ;;  %v2521_v2 = vshll.u32 %v8098_v35, 16 }
 0x2a2   : > { %v3000_v47 = vmul.f32 0.2, %v2964_v19 }
 0x2a4   : > { %v3036_v28 = vmax.f32 %v2964_v19, %v3000_v47 }
 0x2a5   : > { %v2649_v4 = vpop.f32.mrf.mxu3 }
 0x2a6   : > { %v3288_v0 = vmul.f32 %v3115_v37, %v3036_v28 }
 0x2a7   : > { %v2878_v30 = vpop.f32.mrf.mxu0  ;;  %v3370_v19 = vld [vmem:[#allocation2 + $0x10] sm:$0xff] }
 0x2a8   : > { %3333 = vst.msk [vmem:[#allocation2 + $0x1b] sm:$0xff] %vm535_vm1, %v3288_v0  ;;  %v2965_v56 = vadd.f32 %v2878_v30, %v2729_v29  ;;  %v3425_v29 = vld [vmem:[#allocation2 + $0x11] sm:$0xff]  ;;  %v2523_v30 = vrot.slane %v2521_v2, 3 }
 0x2aa   : > { %v3001_v46 = vmul.f32 0.2, %v2965_v56  ;;  %6560 = vmatmul.msk.bf16.gmra.mxu0 %vm535_vm1, %v2790_v10  ;;  %6543 = vmatmul.msk.bf16.gmra.mxu3 %vm535_vm1, %v2516_v54  ;;  %v3125_v54 = vpop.permute.xlu1 %3124 }
 0x2ac   : > { %v3037_v23 = vmax.f32 %v2965_v56, %v3001_v46  ;;  %v2524_v56 = vor.u32 %v2523_v30, %v2520_v3  ;;  %v2731_v46 = vadd.f32 %v2647_v48, %v7542_v34 }
 0x2ad   : > { %v2652_v0 = vpop.f32.mrf.mxu3 }
 0x2ae   : > { %v3289_v61 = vmul.f32 %v3120_v31, %v3037_v23 }
 0x2af   : > { %v2880_v32 = vpop.f32.mrf.mxu0  ;;  %v3426_v22 = vld [vmem:[#allocation2 + $0x19] sm:$0xff] }
 0x2b0   : > { %v3371_v8 = vld [vmem:[#allocation2 + $0x18] sm:$0xff]  ;;  %3334 = vst.msk [vmem:[#allocation2 + $0x23] sm:$0xff] %vm535_vm1, %v3289_v61  ;;  %v2966_v47 = vadd.f32 %v2880_v32, %v2730_v52  ;;  %v3460_v28 = vpack.c.bf16 %v3426_v22, %v3425_v29  ;;  %v2792_v52 = vsel %vm2769_vm7, %v2789_v39, %v2791_v58  ;;  %v2525_v61 = vsel %vm2400_vm6, %v2515_v49, %v2524_v56  ;;  %v8114_v32 = vld [vmem:[%s7018_s10 + $0x80] sm:$0xff] }
 0x2b1   : > { %v3405_v37 = vpack.c.bf16 %v3371_v8, %v3370_v19  ;;  %v2527_v34 = vshrl.u32 %v8114_v32, 16  ;;  %v2530_v22 = vshll.u32 %v8114_v32, 16  ;;  %v2732_v39 = vadd.f32 %v2649_v4, %v7552_v27 }
 0x2b2   : > { %v3002_v10 = vmul.f32 0.2, %v2966_v47  ;;  %6571 = vmatmul.msk.bf16.gmra.mxu1 %vm535_vm1, %v3460_v28  ;;  %v2793_v27 = vrot.slane %v8084_v16, 3  ;;  %v8130_v16 = vld [vmem:[%s7018_s10 + $0x88] sm:$0xff] }
 0x2b3   : > { %6589 = vmatmul.msk.bf16.gmra.mxu2 %vm535_vm1, %v3405_v37  ;;  %v2529_v30 = vrot.slane %v2527_v34, 2 }
 0x2b4   : > { %v3038_v15 = vmax.f32 %v2966_v47, %v3002_v10  ;;  %v2794_v34 = vsel %vm2769_vm7, %v2791_v58, %v2793_v27 }
 0x2b5   : > { %v2654_v38 = vpop.f32.mrf.mxu3 }
 0x2b6   : > { %v3290_v31 = vmul.f32 %v3125_v54, %v3038_v15  ;;  %v2734_v58 = vadd.f32 %v2654_v38, %v7584_v41  ;;  %v2795_v41 = vrot.slane %v8098_v35, 3  ;;  %v8146_v35 = vld [vmem:[%s7018_s10 + $0x90] sm:$0xff] }
 0x2b7   : > { %v2883_v23 = vpop.f32.mrf.mxu0  ;;  %v3427_v3 = vld [vmem:[#allocation2 + $0x21] sm:$0xff] }
 0x2b8   : > { %3335 = vst.msk [vmem:[#allocation2 + $0x2b] sm:$0xff] %vm535_vm1, %v3290_v31  ;;  %v2967_v2 = vadd.f32 %v2883_v23, %v2731_v46  ;;  %v3372_v28 = vld [vmem:[#allocation2 + $0x20] sm:$0xff]  ;;  %v2532_v46 = vrot.slane %v2530_v22, 3 }
 0x2ba   : > { %v3003_v29 = vmul.f32 0.2, %v2967_v2  ;;  %6561 = vmatmul.msk.bf16.gmra.mxu0 %vm535_vm1, %v2792_v52  ;;  %6544 = vmatmul.msk.bf16.gmra.mxu3 %vm535_vm1, %v2525_v61  ;;  %v2533_v23 = vor.u32 %v2532_v46, %v2529_v30  ;;  %v3135_v52 = vpop.permute.xlu2 %3134 }
 0x2bc   : > { %v3039_v48 = vmax.f32 %v2967_v2, %v3003_v29  ;;  %v2733_v2 = vadd.f32 %v2652_v0, %v7566_v6  ;;  %v2534_v22 = vsel %vm2400_vm6, %v2524_v56, %v2533_v23  ;;  %v2539_v0 = vshll.u32 %v8130_v16, 16 }
 0x2bd   : > { %v2657_v8 = vpop.f32.mrf.mxu3 }
 0x2be   : > { %v3291_v19 = vmul.f32 %v3130_v60, %v3039_v48 }
 0x2bf   : > { %v2885_v47 = vpop.f32.mrf.mxu0  ;;  %v3428_v49 = vld [vmem:[#allocation2 + $0x29] sm:$0xff] }
 0x2c0   : > { %v3373_v37 = vld [vmem:[#allocation2 + $0x28] sm:$0xff]  ;;  %3336 = vst.msk [vmem:[#allocation2 + $0x33] sm:$0xff] %vm535_vm1, %v3291_v19  ;;  %v2968_v10 = vadd.f32 %v2885_v47, %v2732_v39  ;;  %v3461_v15 = vpack.c.bf16 %v3428_v49, %v3427_v3  ;;  %v2536_v19 = vshrl.u32 %v8130_v16, 16  ;;  %v3140_v3 = vpop.permute.xlu0 %3139 }
 0x2c1   : > { %v3406_v54 = vpack.c.bf16 %v3373_v37, %v3372_v28 }
 0x2c2   : > { %v3004_v31 = vmul.f32 0.2, %v2968_v10  ;;  %6572 = vmatmul.msk.bf16.gmra.mxu1 %vm535_vm1, %v3461_v15  ;;  %v2538_v15 = vrot.slane %v2536_v19, 2 }
 0x2c3   : > { %6590 = vmatmul.msk.bf16.gmra.mxu2 %vm535_vm1, %v3406_v54 }
 0x2c4   : > { %v3040_v4 = vmax.f32 %v2968_v10, %v3004_v31 }
 0x2c5   : > { %v2659_v29 = vpop.f32.mrf.mxu3 }
 0x2c6   : > { %v3292_v61 = vmul.f32 %v3135_v52, %v3040_v4  ;;  %v2541_v4 = vrot.slane %v2539_v0, 3 }
 0x2c7   : > { %v2888_v60 = vpop.f32.mrf.mxu0  ;;  %v3429_v28 = vld [vmem:[#allocation2 + $0x31] sm:$0xff] }
 0x2c8   : > { %3337 = vst.msk [vmem:[#allocation2 + $0x3b] sm:$0xff] %vm535_vm1, %v3292_v61  ;;  %v2969_v48 = vadd.f32 %v2888_v60, %v2733_v2  ;;  %v3374_v30 = vld [vmem:[#allocation2 + $0x30] sm:$0xff]  ;;  %v2542_v2 = vor.u32 %v2541_v4, %v2538_v15  ;;  %v3145_v61 = vpop.permute.xlu1 %3144  ;;  %v2735_v60 = vadd.f32 %v2657_v8, %v7601_v55  ;;  %v2548_v8 = vshll.u32 %v8146_v35, 16 }
 0x2ca   : > { %v3005_v39 = vmul.f32 0.2, %v2969_v48  ;;  %6562 = vmatmul.msk.bf16.gmra.mxu0 %vm535_vm1, %v2794_v34  ;;  %6545 = vmatmul.msk.bf16.gmra.mxu3 %vm535_vm1, %v2534_v22  ;;  %v2550_v4 = vrot.slane %v2548_v8, 3 }
 0x2cc   : > { %v3041_v6 = vmax.f32 %v2969_v48, %v3005_v39  ;;  %v2796_v39 = vsel %vm2769_vm7, %v2793_v27, %v2795_v41  ;;  %v2736_v27 = vadd.f32 %v2659_v29, %v7623_v14  ;;  %v2797_v14 = vrot.slane %v8114_v32, 3  ;;  %v8162_v32 = vld [vmem:[%s7018_s10 + $0x98] sm:$0xff] }
 0x2cd   : > { %v2662_v49 = vpop.f32.mrf.mxu3 }
 0x2ce   : > { %v3293_v47 = vmul.f32 %v3140_v3, %v3041_v6  ;;  %v2543_v6 = vsel %vm2400_vm6, %v2533_v23, %v2542_v2  ;;  %v2545_v3 = vshrl.u32 %v8146_v35, 16 }
 0x2cf   : > { %v2890_v37 = vpop.f32.mrf.mxu0  ;;  %v3430_v56 = vld [vmem:[#allocation2 + $0x39] sm:$0xff] }
 0x2d0   : > { %v3375_v10 = vld [vmem:[#allocation2 + $0x38] sm:$0xff]  ;;  %3338 = vst.msk [vmem:[#allocation2 + $0x43] sm:$0xff] %vm535_vm1, %v3293_v47  ;;  %v2970_v54 = vadd.f32 %v2890_v37, %v2734_v58  ;;  %v3462_v46 = vpack.c.bf16 %v3430_v56, %v3429_v28  ;;  %v3150_v58 = vpop.permute.xlu2 %3149  ;;  %v2547_v15 = vrot.slane %v2545_v3, 2  ;;  %v3160_v8 = vpop.permute.xlu1 %3159 }
 0x2d1   : > { %v3407_v31 = vpack.c.bf16 %v3375_v10, %v3374_v30 }
 0x2d2   : > { %v3006_v52 = vmul.f32 0.2, %v2970_v54  ;;  %6573 = vmatmul.msk.bf16.gmra.mxu1 %vm535_vm1, %v3462_v46 }
 0x2d3   : > { %6591 = vmatmul.msk.bf16.gmra.mxu2 %vm535_vm1, %v3407_v31 }
 0x2d4   : > { %v3042_v38 = vmax.f32 %v2970_v54, %v3006_v52 }
 0x2d5   : > { %v2664_v48 = vpop.f32.mrf.mxu3 }
 0x2d6   : > { %v3294_v34 = vmul.f32 %v3145_v61, %v3042_v38  ;;  %v2551_v38 = vor.u32 %v2550_v4, %v2547_v15  ;;  %v3155_v61 = vpop.permute.xlu0 %3154 }
 0x2d7   : > { %v2893_v22 = vpop.f32.mrf.mxu0  ;;  %v3431_v37 = vld [vmem:[#allocation2 + $0x41] sm:$0xff] }
 0x2d8   : > { %3339 = vst.msk [vmem:[#allocation2 + $0x4b] sm:$0xff] %vm535_vm1, %v3294_v34  ;;  %v2971_v19 = vadd.f32 %v2893_v22, %v2735_v60  ;;  %v3376_v30 = vld [vmem:[#allocation2 + $0x40] sm:$0xff]  ;;  %v2737_v60 = vadd.f32 %v2662_v49, %v7644_v17  ;;  %v2557_v49 = vshll.u32 %v8162_v32, 16 }
 0x2da   : > { %v3007_v0 = vmul.f32 0.2, %v2971_v19  ;;  %6563 = vmatmul.msk.bf16.gmra.mxu0 %vm535_vm1, %v2796_v39  ;;  %6546 = vmatmul.msk.bf16.gmra.mxu3 %vm535_vm1, %v2543_v6 }
 0x2dc   : > { %v3043_v55 = vmax.f32 %v2971_v19, %v3007_v0  ;;  %v2798_v19 = vsel %vm2769_vm7, %v2795_v41, %v2797_v14  ;;  %v2552_v0 = vsel %vm2400_vm6, %v2542_v2, %v2551_v38  ;;  %v2738_v41 = vadd.f32 %v2664_v48, %v7666_v62 }
 0x2dd   : > { %v2667_v28 = vpop.f32.mrf.mxu3  ;;  %v2799_v62 = vrot.slane %v8130_v16, 3  ;;  %v2010_v16 = vadd.f32 %v7677_v63, %v7700_v9 }
 0x2de   : > { %v3295_v47 = vmul.f32 %v3150_v58, %v3043_v55  ;;  %v2554_v55 = vshrl.u32 %v8162_v32, 16 }
 0x2df   : > { %v2895_v56 = vpop.f32.mrf.mxu0  ;;  %v3432_v23 = vld [vmem:[#allocation2 + $0x49] sm:$0xff] }
 0x2e0   : > { %v3377_v10 = vld [vmem:[#allocation2 + $0x48] sm:$0xff]  ;;  %3340 = vst.msk [vmem:[#allocation2 + $0x53] sm:$0xff] %vm535_vm1, %v3295_v47  ;;  %v2972_v54 = vadd.f32 %v2895_v56, %v2736_v27  ;;  %v3463_v46 = vpack.c.bf16 %v3432_v23, %v3431_v37 }
 0x2e1   : > { %v3408_v31 = vpack.c.bf16 %v3377_v10, %v3376_v30  ;;  %v2556_v30 = vrot.slane %v2554_v55, 2 }
 0x2e2   : > { %v3008_v52 = vmul.f32 0.2, %v2972_v54  ;;  %6574 = vmatmul.msk.bf16.gmra.mxu1 %vm535_vm1, %v3463_v46  ;;  %v2559_v46 = vrot.slane %v2557_v49, 3 }
 0x2e3   : > { %6592 = vmatmul.msk.bf16.gmra.mxu2 %vm535_vm1, %v3408_v31  ;;  %v2394_v31 = vld [vmem:[%s7018_s10 + $0xa0] sm:$0x7] }
 0x2e4   : > { %v3044_v29 = vmax.f32 %v2972_v54, %v3008_v52  ;;  %v2398_v48 = vunpack.c.l.b16 %v2394_v31 }
 0x2e5   : > { %v2669_v22 = vpop.f32.mrf.mxu3 }
 0x2e6   : > { %v3296_v34 = vmul.f32 %v3155_v61, %v3044_v29  ;;  %v2560_v29 = vor.u32 %v2559_v46, %v2556_v30  ;;  %v3165_v61 = vpop.permute.xlu2 %3164  ;;  %v8180_v55 = vpack.c.b16 %v2398_v48, %v2398_v48 }
 0x2e7   : > { %v2898_v39 = vpop.f32.mrf.mxu0  ;;  %v3433_v2 = vld [vmem:[#allocation2 + $0x51] sm:$0xff] }
 0x2e8   : > { %3341 = vst.msk [vmem:[#allocation2 + $0x5b] sm:$0xff] %vm535_vm1, %v3296_v34  ;;  %v2973_v6 = vadd.f32 %v2898_v39, %v2737_v60  ;;  %v3378_v56 = vld [vmem:[#allocation2 + $0x50] sm:$0xff]  ;;  %v8174_v60 = vpop.f32.mrf.mxu1  ;;  %v2739_v34 = vadd.f32 %v2667_v28, %v7690_v51  ;;  %v2561_v49 = vsel %vm2400_vm6, %v2551_v38, %v2560_v29  ;;  %v2563_v51 = vshrl.u32 %v8180_v55, 16 }
 0x2e9   : > { %v2566_v28 = vshll.u32 %v8180_v55, 16 }
 0x2ea   : > { %v3009_v3 = vmul.f32 0.2, %v2973_v6  ;;  %6564 = vmatmul.msk.bf16.gmra.mxu0 %vm535_vm1, %v2798_v19  ;;  %6547 = vmatmul.msk.bf16.gmra.mxu3 %vm535_vm1, %v2552_v0 }
 0x2ec   : > { %v3045_v17 = vmax.f32 %v2973_v6, %v3009_v3  ;;  %v8177_v6 = vpop.f32.mrf.mxu2  ;;  %v2800_v3 = vsel %vm2769_vm7, %v2797_v14, %v2799_v62  ;;  %v2371_v14 = vadd.f32 %v7704_v7, %v2010_v16 }
 0x2ed   : > { %v8167_v27 = vpop.f32.mrf.mxu3 }
 0x2ee   : > { %v3297_v58 = vmul.f32 %v3160_v8, %v3045_v17 }
 0x2ef   : > { %v2900_v47 = vpop.f32.mrf.mxu0  ;;  %v3434_v37 = vld [vmem:[#allocation2 + $0x59] sm:$0xff] }
 0x2f0   : > { %v3379_v23 = vld [vmem:[#allocation2 + $0x58] sm:$0xff]  ;;  %3342 = vst.msk [vmem:[#allocation2 + $0x63] sm:$0xff] %vm535_vm1, %v3297_v58  ;;  %v2974_v10 = vadd.f32 %v2900_v47, %v2738_v41  ;;  %v3464_v15 = vpack.c.bf16 %v3434_v37, %v3433_v2  ;;  %v3170_v58 = vpop.permute.xlu0 %3169  ;;  %v2740_v2 = vadd.f32 %v2669_v22, %v2371_v14  ;;  %v3545_v37 = vpop.f32.mrf.mxu1  ;;  %v2801_v22 = vrot.slane %v8146_v35, 3 }
 0x2f1   : > { %v3409_v54 = vpack.c.bf16 %v3379_v23, %v3378_v56 }
 0x2f2   : > { %v3010_v4 = vmul.f32 0.2, %v2974_v10  ;;  %6575 = vmatmul.msk.bf16.gmra.mxu1 %vm535_vm1, %v3464_v15  ;;  %v2568_v15 = vrot.slane %v2566_v28, 3 }
 0x2f3   : > { %6593 = vmatmul.msk.bf16.gmra.mxu2 %vm535_vm1, %v3409_v54 }
 0x2f4   : > { %v3046_v52 = vmax.f32 %v2974_v10, %v3010_v4  ;;  %v2565_v10 = vrot.slane %v2563_v51, 2  ;;  %v3701_v54 = vpop.f32.mrf.mxu2 }
 0x2f5   : > { %v2674_v19 = vpop.f32.mrf.mxu3  ;;  %v8192_v7 = vadd.f32 %v3701_v54, %v3545_v37  ;;  %v2803_v54 = vrot.slane %v8162_v32, 3 }
 0x2f6   : > { %v3298_v39 = vmul.f32 %v3165_v61, %v3046_v52  ;;  %v2569_v61 = vor.u32 %v2568_v15, %v2565_v10 }
 0x2f7   : > { %v2903_v0 = vpop.f32.mrf.mxu0  ;;  %v3435_v47 = vld [vmem:[#allocation2 + $0x61] sm:$0xff] }
 0x2f8   : > { %3343 = vst.msk [vmem:[#allocation2 + $0x6b] sm:$0xff] %vm535_vm1, %v3298_v39  ;;  %v2975_v17 = vadd.f32 %v2903_v0, %v2739_v34  ;;  %v3380_v23 = vld [vmem:[#allocation2 + $0x60] sm:$0xff]  ;;  %v3175_v34 = vpop.permute.xlu1 %3174  ;;  %v2570_v14 = vsel %vm2400_vm6, %v2560_v29, %v2569_v61 }
 0x2f9   : > { %v9144_v39 = vld [vmem:[#allocation4_spill] sm:$0xff] }
 0x2fa   : > { %v3011_v8 = vmul.f32 0.2, %v2975_v17  ;;  %6565 = vmatmul.msk.bf16.gmra.mxu0 %vm535_vm1, %v2800_v3  ;;  %6548 = vmatmul.msk.bf16.gmra.mxu3 %vm535_vm1, %v2561_v49  ;;  %v2741_v0 = vadd.f32 %v8167_v27, %v9144_v39  ;;  %v2802_v49 = vsel %vm2769_vm7, %v2799_v62, %v2801_v22  ;;  %v2804_v39 = vsel %vm2769_vm7, %v2801_v22, %v2803_v54 }
 0x2fc   : > { %v3047_v41 = vmax.f32 %v2975_v17, %v3011_v8  ;;  %v9145_v8 = vld [vmem:[#allocation3_spill] sm:$0xff] }
 0x2fd   : > { %v2677_v9 = vpop.f32.mrf.mxu3  ;;  %v2012_v51 = vadd.f32 %v9145_v8, %v7759_v25 }
 0x2fe   : > { %v3299_v63 = vmul.f32 %v3170_v58, %v3047_v41  ;;  %v9146_v41 = vld [vmem:[#allocation5_spill] sm:$0xff] }
 0x2ff   : > { %v2905_v56 = vpop.f32.mrf.mxu0  ;;  %v3436_v38 = vld [vmem:[#allocation2 + $0x69] sm:$0xff]  ;;  %v2373_v27 = vadd.f32 %v9146_v41, %v2012_v51 }
 0x300   : > { %v3381_v30 = vld [vmem:[#allocation2 + $0x68] sm:$0xff]  ;;  %3344 = vst.msk [vmem:[#allocation2 + $0x73] sm:$0xff] %vm535_vm1, %v3299_v63  ;;  %v2976_v46 = vadd.f32 %v2905_v56, %v2740_v2  ;;  %v3465_v31 = vpack.c.bf16 %v3436_v38, %v3435_v47  ;;  %v3180_v2 = vpop.permute.xlu2 %3179 }
 0x301   : > { %v3410_v4 = vpack.c.bf16 %v3381_v30, %v3380_v23  ;;  %v2742_v63 = vadd.f32 %v2674_v19, %v2373_v27 }
 0x302   : > { %v3012_v48 = vmul.f32 0.2, %v2976_v46  ;;  %6576 = vmatmul.msk.bf16.gmra.mxu1 %vm535_vm1, %v3465_v31  ;;  %v3792_v31 = vld [vmem:[#allocation2 + $0xa] sm:$0xff] }
 0x303   : > { %6594 = vmatmul.msk.bf16.gmra.mxu2 %vm535_vm1, %v3410_v4  ;;  %v3185_v4 = vpop.permute.xlu0 %3184 }
 0x304   : > { %v3048_v52 = vmax.f32 %v2976_v46, %v3012_v48  ;;  %v3791_v46 = vld [vmem:[#allocation2 + $0x2] sm:$0xff]  ;;  %v2743_v48 = vadd.f32 %v2677_v9, %v7807_v57  ;;  %v3190_v9 = vpop.permute.xlu1 %3189 }
 0x305   : > { %v2679_v16 = vpop.f32.mrf.mxu3 }
 0x306   : > { %v3300_v3 = vmul.f32 %v3175_v34, %v3048_v52 }
 0x307   : > { %v2908_v17 = vpop.f32.mrf.mxu0  ;;  %v3437_v37 = vld [vmem:[#allocation2 + $0x71] sm:$0xff] }
 0x308   : > { %3345 = vst.msk [vmem:[#allocation2 + $0x7b] sm:$0xff] %vm535_vm1, %v3300_v3  ;;  %v2977_v28 = vadd.f32 %v2908_v17, %v2741_v0  ;;  %v3382_v38 = vld [vmem:[#allocation2 + $0x70] sm:$0xff]  ;;  %v3827_v0 = vpack.c.bf16 %v3792_v31, %v3791_v46 }
 0x309   : > { %v9147_v3 = vld [vmem:[#allocation6_spill] sm:$0xff] }
 0x30a   : > { %v3013_v35 = vmul.f32 0.2, %v2977_v28  ;;  %6566 = vmatmul.msk.bf16.gmra.mxu0 %vm535_vm1, %v2802_v49  ;;  %6549 = vmatmul.msk.bf16.gmra.mxu3 %vm535_vm1, %v2570_v14  ;;  %v2014_v17 = vadd.f32 %v9147_v3, %v7818_v43  ;;  %v3793_v46 = vld [vmem:[#allocation2 + $0x12] sm:$0xff] }
 0x30c   : > { %v3049_v58 = vmax.f32 %v2977_v28, %v3013_v35  ;;  %v2375_v32 = vadd.f32 %v7823_v13, %v2014_v17  ;;  %v2805_v13 = vrot.slane %v8180_v55, 3 }
 0x30d   : > { %v2682_v62 = vpop.f32.mrf.mxu3 }
 0x30e   : > { %v3301_v47 = vmul.f32 %v3180_v2, %v3049_v58  ;;  %v2744_v51 = vadd.f32 %v2679_v16, %v2375_v32 }
 0x30f   : > { %v2910_v56 = vpop.f32.mrf.mxu0  ;;  %v3438_v25 = vld [vmem:[#allocation2 + $0x79] sm:$0xff] }
 0x310   : > { %v3383_v23 = vld [vmem:[#allocation2 + $0x78] sm:$0xff]  ;;  %3346 = vst.msk [vmem:[#allocation2 + $0x83] sm:$0xff] %vm535_vm1, %v3301_v47  ;;  %v2978_v29 = vadd.f32 %v2910_v56, %v2742_v63  ;;  %v3466_v30 = vpack.c.bf16 %v3438_v25, %v3437_v37  ;;  %v3195_v37 = vpop.permute.xlu2 %3194  ;;  %v2745_v56 = vadd.f32 %v2682_v62, %v7858_v36 }
 0x311   : > { %v3411_v10 = vpack.c.bf16 %v3383_v23, %v3382_v38  ;;  %v3794_v23 = vld [vmem:[#allocation2 + $0x1a] sm:$0xff] }
 0x312   : > { %v3014_v15 = vmul.f32 0.2, %v2978_v29  ;;  %6577 = vmatmul.msk.bf16.gmra.mxu1 %vm535_vm1, %v3466_v30  ;;  %v3828_v55 = vpack.c.bf16 %v3794_v23, %v3793_v46 }
 0x313   : > { %6595 = vmatmul.msk.bf16.gmra.mxu2 %vm535_vm1, %v3411_v10  ;;  %v2806_v10 = vsel %vm2769_vm7, %v2803_v54, %v2805_v13 }
 0x314   : > { %v3050_v19 = vmax.f32 %v2978_v29, %v3014_v15  ;;  %v8224_v29 = vpop.f32.mrf.mxu1  ;;  %v2016_v15 = vadd.f32 %v7844_v21, %v7869_v20 }
 0x315   : > { %v2684_v61 = vpop.f32.mrf.mxu3 }
 0x316   : > { %v3302_v52 = vmul.f32 %v3185_v4, %v3050_v19  ;;  %v2377_v36 = vadd.f32 %v7871_v5, %v2016_v15  ;;  %v3200_v4 = vpop.permute.xlu0 %3199 }
 0x317   : > { %v2913_v34 = vpop.f32.mrf.mxu0  ;;  %v3439_v22 = vld [vmem:[#allocation2 + $0x81] sm:$0xff] }
 0x318   : > { %3347 = vst.msk [vmem:[#allocation2 + $0x8b] sm:$0xff] %vm535_vm1, %v3302_v52  ;;  %v2979_v49 = vadd.f32 %v2913_v34, %v2743_v48  ;;  %v3384_v27 = vld [vmem:[#allocation2 + $0x80] sm:$0xff]  ;;  %v8233_v48 = vpop.f32.mrf.mxu2  ;;  %v2746_v54 = vadd.f32 %v2684_v61, %v2377_v36  ;;  %v3205_v61 = vpop.permute.xlu1 %3204 }
 0x31a   : > { %v3015_v8 = vmul.f32 0.2, %v2979_v49  ;;  %6567 = vmatmul.msk.bf16.gmra.mxu0 %vm535_vm1, %v2804_v39  ;;  %6607 = vmatmul.msk.bf16.vlgmr.msrb.gmra.mxu3 %vm535_vm1, %v3827_v0 }
 0x31c   : > { %v3051_v57 = vmax.f32 %v2979_v49, %v3015_v8 }
 0x31d   : > { %v2687_v14 = vpop.f32.mrf.mxu3 }
 0x31e   : > { %v3303_v28 = vmul.f32 %v3190_v9, %v3051_v57 }
 0x31f   : > { %v2915_v35 = vpop.f32.mrf.mxu0  ;;  %v3440_v41 = vld [vmem:[#allocation2 + $0x89] sm:$0xff] }
 0x320   : > { %v3385_v43 = vld [vmem:[#allocation2 + $0x88] sm:$0xff]  ;;  %3348 = vst.msk [vmem:[#allocation2 + $0x93] sm:$0xff] %vm535_vm1, %v3303_v28  ;;  %v2980_v58 = vadd.f32 %v2915_v35, %v2744_v51  ;;  %v3467_v2 = vpack.c.bf16 %v3440_v41, %v3439_v22  ;;  %v2747_v51 = vadd.f32 %v2687_v14, %v7894_v42 }
 0x321   : > { %v3412_v63 = vpack.c.bf16 %v3385_v43, %v3384_v27  ;;  %v3796_v41 = vld [vmem:[#allocation2 + $0x2a] sm:$0xff] }
 0x322   : > { %v3016_v47 = vmul.f32 0.2, %v2980_v58  ;;  %6578 = vmatmul.msk.bf16.gmra.mxu1 %vm535_vm1, %v3467_v2 }
 0x323   : > { %6596 = vmatmul.msk.bf16.gmra.mxu2 %vm535_vm1, %v3412_v63  ;;  %v3795_v63 = vld [vmem:[#allocation2 + $0x22] sm:$0xff] }
 0x324   : > { %v3052_v16 = vmax.f32 %v2980_v58, %v3016_v47  ;;  %v2018_v58 = vadd.f32 %v7884_v53, %v7902_v50  ;;  %v3829_v47 = vpack.c.bf16 %v3796_v41, %v3795_v63 }
 0x325   : > { %v2689_v38 = vpop.f32.mrf.mxu3 }
 0x326   : > { %v3304_v25 = vmul.f32 %v3195_v37, %v3052_v16  ;;  %v2379_v42 = vadd.f32 %v7904_v40, %v2018_v58  ;;  %v3210_v16 = vpop.permute.xlu2 %3209 }
 0x327   : > { %v2918_v30 = vpop.f32.mrf.mxu0  ;;  %v3441_v21 = vld [vmem:[#allocation2 + $0x91] sm:$0xff] }
 0x328   : > { %3349 = vst.msk [vmem:[#allocation2 + $0x9b] sm:$0xff] %vm535_vm1, %v3304_v25  ;;  %v2981_v19 = vadd.f32 %v2918_v30, %v2745_v56  ;;  %v3386_v3 = vld [vmem:[#allocation2 + $0x90] sm:$0xff]  ;;  %v2748_v56 = vadd.f32 %v2689_v38, %v2379_v42 }
 0x32a   : > { %v3017_v31 = vmul.f32 0.2, %v2981_v19  ;;  %6568 = vmatmul.msk.bf16.gmra.mxu0 %vm535_vm1, %v2806_v10  ;;  %6608 = vmatmul.msk.bf16.gmra.mxu3 %vm535_vm1, %v3828_v55 }
 0x32c   : > { %v3053_v62 = vmax.f32 %v2981_v19, %v3017_v31 }
 0x32d   : > { %v2692_v34 = vpop.f32.mrf.mxu3 }
 0x32e   : > { %v3305_v52 = vmul.f32 %v3200_v4, %v3053_v62  ;;  %v3215_v62 = vpop.permute.xlu0 %3214  ;;  %v3225_v42 = vpop.permute.xlu2 %3224 }
 0x32f   : > { %v2920_v20 = vpop.f32.mrf.mxu0  ;;  %v3550_v39 = vpop.f32.mrf.mxu1  ;;  %v3442_v0 = vld [vmem:[#allocation2 + $0x99] sm:$0xff] }
 0x330   : > { %v3387_v17 = vld [vmem:[#allocation2 + $0x98] sm:$0xff]  ;;  %3350 = vst.msk [vmem:[#allocation2 + $0xa3] sm:$0xff] %vm535_vm1, %v3305_v52  ;;  %v2982_v49 = vadd.f32 %v2920_v20, %v2746_v54  ;;  %v3468_v8 = vpack.c.bf16 %v3442_v0, %v3441_v21  ;;  %v2749_v54 = vadd.f32 %v2692_v34, %v7920_v18 }
 0x331   : > { %v3413_v32 = vpack.c.bf16 %v3387_v17, %v3386_v3  ;;  %v2020_v17 = vadd.f32 %v7913_v1, %v7928_v12 }
 0x332   : > { %v3018_v57 = vmul.f32 0.2, %v2982_v49  ;;  %6579 = vmatmul.msk.bf16.gmra.mxu1 %vm535_vm1, %v3468_v8  ;;  %v3797_v8 = vld [vmem:[#allocation2 + $0x32] sm:$0xff] }
 0x333   : > { %6597 = vmatmul.msk.bf16.gmra.mxu2 %vm535_vm1, %v3413_v32  ;;  %v2381_v18 = vadd.f32 %v7930_v26, %v2020_v17 }
 0x334   : > { %v3054_v5 = vmax.f32 %v2982_v49, %v3018_v57 }
 0x335   : > { %v2694_v35 = vpop.f32.mrf.mxu3 }
 0x336   : > { %v3706_v9 = vpop.f32.mrf.mxu2  ;;  %v3306_v28 = vmul.f32 %v3205_v61, %v3054_v5  ;;  %v3220_v5 = vpop.permute.xlu1 %3219 }
 0x337   : > { %v8239_v22 = vadd.f32 %v3706_v9, %v3550_v39  ;;  %v2923_v27 = vpop.f32.mrf.mxu0  ;;  %v3552_v43 = vpop.f32.mrf.mxu1  ;;  %v3443_v50 = vld [vmem:[#allocation2 + $0xa1] sm:$0xff]  ;;  %v2750_v9 = vadd.f32 %v2694_v35, %v2381_v18 }
 0x338   : > { %3351 = vst.msk [vmem:[#allocation2 + $0xab] sm:$0xff] %vm535_vm1, %v3306_v28  ;;  %v2983_v2 = vadd.f32 %v2923_v27, %v2747_v51  ;;  %v3388_v19 = vld [vmem:[#allocation2 + $0xa0] sm:$0xff] }
 0x339   : > { %v3798_v39 = vld [vmem:[#allocation2 + $0x3a] sm:$0xff] }
 0x33a   : > { %v3019_v13 = vmul.f32 0.2, %v2983_v2  ;;  %6626 = vmatmul.msk.bf16.vlgmr.msrb.gmra.mxu0 %vm535_vm1, %v3828_v55  ;;  %6609 = vmatmul.msk.bf16.gmra.mxu3 %vm535_vm1, %v3829_v47  ;;  %v3830_v32 = vpack.c.bf16 %v3798_v39, %v3797_v8 }
 0x33c   : > { %v3055_v14 = vmax.f32 %v2983_v2, %v3019_v13 }
 0x33d   : > { %v2697_v53 = vpop.f32.mrf.mxu3 }
 0x33e   : > { %v3708_v37 = vpop.f32.mrf.mxu2  ;;  %v3307_v25 = vmul.f32 %v3210_v16, %v3055_v14  ;;  %v2751_v16 = vadd.f32 %v2697_v53, %v7946_v24  ;;  %v9150_v24 = vld [vmem:[#allocation9_spill] sm:$0xff] }
 0x33f   : > { %v8247_v23 = vadd.f32 %v3708_v37, %v3552_v43  ;;  %v2925_v30 = vpop.f32.mrf.mxu0  ;;  %v3555_v10 = vpop.f32.mrf.mxu1  ;;  %v3444_v15 = vld [vmem:[#allocation2 + $0xa9] sm:$0xff] }
 0x340   : > { %v3389_v46 = vld [vmem:[#allocation2 + $0xa8] sm:$0xff]  ;;  %3352 = vst.msk [vmem:[#allocation2 + $0xb3] sm:$0xff] %vm535_vm1, %v3307_v25  ;;  %v2984_v55 = vadd.f32 %v2925_v30, %v2748_v56  ;;  %v3469_v31 = vpack.c.bf16 %v3444_v15, %v3443_v50  ;;  %v9148_v15 = vld [vmem:[#allocation8_spill] sm:$0xff] }
 0x341   : > { %v3414_v36 = vpack.c.bf16 %v3389_v46, %v3388_v19  ;;  %v3800_v50 = vld [vmem:[#allocation2 + $0x4a] sm:$0xff]  ;;  %v9149_v19 = vld [vmem:[#allocation7_spill] sm:$0xff] }
 0x342   : > { %v3020_v40 = vmul.f32 0.2, %v2984_v55  ;;  %6580 = vmatmul.msk.bf16.gmra.mxu1 %vm535_vm1, %v3469_v31  ;;  %v2022_v46 = vadd.f32 %v9149_v19, %v9148_v15  ;;  %v3799_v31 = vld [vmem:[#allocation2 + $0x42] sm:$0xff] }
 0x343   : > { %6598 = vmatmul.msk.bf16.gmra.mxu2 %vm535_vm1, %v3414_v36  ;;  %v3831_v36 = vpack.c.bf16 %v3800_v50, %v3799_v31  ;;  %v3240_v50 = vpop.permute.xlu2 %3239 }
 0x344   : > { %v3056_v38 = vmax.f32 %v2984_v55, %v3020_v40  ;;  %v2383_v53 = vadd.f32 %v9150_v24, %v2022_v46 }
 0x345   : > { %v2699_v20 = vpop.f32.mrf.mxu3 }
 0x346   : > { %v3711_v4 = vpop.f32.mrf.mxu2  ;;  %v3308_v52 = vmul.f32 %v3215_v62, %v3056_v38  ;;  %v3230_v62 = vpop.permute.xlu0 %3229 }
 0x347   : > { %v8253_v21 = vadd.f32 %v3711_v4, %v3555_v10  ;;  %v2928_v0 = vpop.f32.mrf.mxu0  ;;  %v3557_v3 = vpop.f32.mrf.mxu1  ;;  %v3445_v12 = vld [vmem:[#allocation2 + $0xb1] sm:$0xff] }
 0x348   : > { %3353 = vst.msk [vmem:[#allocation2 + $0xbb] sm:$0xff] %vm535_vm1, %v3308_v52  ;;  %v2985_v49 = vadd.f32 %v2928_v0, %v2749_v54  ;;  %v3390_v58 = vld [vmem:[#allocation2 + $0xb0] sm:$0xff]  ;;  %v2752_v54 = vadd.f32 %v2699_v20, %v2383_v53 }
 0x34a   : > { %v3021_v57 = vmul.f32 0.2, %v2985_v49  ;;  %6627 = vmatmul.msk.bf16.gmra.mxu0 %vm535_vm1, %v3829_v47  ;;  %6610 = vmatmul.msk.bf16.gmra.mxu3 %vm535_vm1, %v3830_v32 }
 0x34c   : > { %v3057_v34 = vmax.f32 %v2985_v49, %v3021_v57 }
 0x34d   : > { %v2702_v1 = vpop.f32.mrf.mxu3 }
 0x34e   : > { %v3713_v61 = vpop.f32.mrf.mxu2  ;;  %v3309_v51 = vmul.f32 %v3220_v5, %v3057_v34 }
 0x34f   : > { %v8261_v28 = vadd.f32 %v3713_v61, %v3557_v3  ;;  %v2930_v41 = vpop.f32.mrf.mxu0  ;;  %v3560_v27 = vpop.f32.mrf.mxu1  ;;  %v3446_v43 = vld [vmem:[#allocation2 + $0xb9] sm:$0xff] }
 0x350   : > { %v3391_v2 = vld [vmem:[#allocation2 + $0xb8] sm:$0xff]  ;;  %3354 = vst.msk [vmem:[#allocation2 + $0xc3] sm:$0xff] %vm535_vm1, %v3309_v51  ;;  %v2986_v63 = vadd.f32 %v2930_v41, %v2750_v9  ;;  %v3470_v47 = vpack.c.bf16 %v3446_v43, %v3445_v12  ;;  %v3235_v9 = vpop.permute.xlu1 %3234 }
 0x351   : > { %v3415_v13 = vpack.c.bf16 %v3391_v2, %v3390_v58  ;;  %v9151_v12 = vld [vmem:[#allocation11_spill] sm:$0xff] }
 0x352   : > { %v3022_v26 = vmul.f32 0.2, %v2986_v63  ;;  %6581 = vmatmul.msk.bf16.gmra.mxu1 %vm535_vm1, %v3470_v47  ;;  %v2753_v41 = vadd.f32 %v2702_v1, %v9151_v12  ;;  %v3802_v2 = vld [vmem:[#allocation2 + $0x5a] sm:$0xff] }
 0x353   : > { %6599 = vmatmul.msk.bf16.gmra.mxu2 %vm535_vm1, %v3415_v13  ;;  %v9152_v13 = vld [vmem:[#allocation10_spill] sm:$0xff] }
 0x354   : > { %v3058_v35 = vmax.f32 %v2986_v63, %v3022_v26  ;;  %v2024_v26 = vadd.f32 %v9152_v13, %v7977_v59 }
 0x355   : > { %v2704_v25 = vpop.f32.mrf.mxu3 }
 0x356   : > { %v3716_v14 = vpop.f32.mrf.mxu2  ;;  %v3310_v37 = vmul.f32 %v3225_v42, %v3058_v35  ;;  %v3801_v42 = vld [vmem:[#allocation2 + $0x52] sm:$0xff]  ;;  %v2385_v1 = vadd.f32 %v7979_v45, %v2024_v26 }
 0x357   : > { %v8267_v56 = vadd.f32 %v3716_v14, %v3560_v27  ;;  %v2933_v30 = vpop.f32.mrf.mxu0  ;;  %v3562_v10 = vpop.f32.mrf.mxu1  ;;  %v3447_v3 = vld [vmem:[#allocation2 + $0xc1] sm:$0xff]  ;;  %v3832_v14 = vpack.c.bf16 %v3802_v2, %v3801_v42 }
 0x358   : > { %3355 = vst.msk [vmem:[#allocation2 + $0xcb] sm:$0xff] %vm535_vm1, %v3310_v37  ;;  %v2987_v55 = vadd.f32 %v2933_v30, %v2751_v16  ;;  %v3392_v57 = vld [vmem:[#allocation2 + $0xc0] sm:$0xff] }
 0x35a   : > { %v3023_v40 = vmul.f32 0.2, %v2987_v55  ;;  %6628 = vmatmul.msk.bf16.gmra.mxu0 %vm535_vm1, %v3830_v32  ;;  %6611 = vmatmul.msk.bf16.gmra.mxu3 %vm535_vm1, %v3831_v36 }
 0x35c   : > { %v3059_v38 = vmax.f32 %v2987_v55, %v3023_v40 }
 0x35d   : > { %v2707_v0 = vpop.f32.mrf.mxu3 }
 0x35e   : > { %v3718_v4 = vpop.f32.mrf.mxu2  ;;  %v3311_v52 = vmul.f32 %v3230_v62, %v3059_v38 }
 0x35f   : > { %v8275_v39 = vadd.f32 %v3718_v4, %v3562_v10  ;;  %v2935_v17 = vpop.f32.mrf.mxu0  ;;  %v3565_v49 = vpop.f32.mrf.mxu1  ;;  %v3448_v8 = vld [vmem:[#allocation2 + $0xc9] sm:$0xff]  ;;  %v2754_v10 = vadd.f32 %v2704_v25, %v2385_v1 }
 0x360   : > { %v3393_v18 = vld [vmem:[#allocation2 + $0xc8] sm:$0xff]  ;;  %3356 = vst.msk [vmem:[#allocation2 + $0xd3] sm:$0xff] %vm535_vm1, %v3311_v52  ;;  %v2988_v32 = vadd.f32 %v2935_v17, %v2752_v54  ;;  %v3471_v34 = vpack.c.bf16 %v3448_v8, %v3447_v3  ;;  %v3245_v4 = vpop.permute.xlu0 %3244 }
 0x361   : > { %v3416_v5 = vpack.c.bf16 %v3393_v18, %v3392_v57  ;;  %v9153_v52 = vld [vmem:[#allocation13_spill] sm:$0xff] }
 0x362   : > { %v3024_v61 = vmul.f32 0.2, %v2988_v32  ;;  %6582 = vmatmul.msk.bf16.gmra.mxu1 %vm535_vm1, %v3471_v34  ;;  %v2755_v3 = vadd.f32 %v2707_v0, %v9153_v52  ;;  %v3804_v57 = vld [vmem:[#allocation2 + $0x6a] sm:$0xff]  ;;  %v9154_v34 = vld [vmem:[#allocation12_spill] sm:$0xff] }
 0x363   : > { %6600 = vmatmul.msk.bf16.gmra.mxu2 %vm535_vm1, %v3416_v5  ;;  %v2026_v5 = vadd.f32 %v9154_v34, %v7997_v44 }
 0x364   : > { %v3060_v20 = vmax.f32 %v2988_v32, %v3024_v61 }
 0x365   : > { %v2709_v58 = vpop.f32.mrf.mxu3  ;;  %v2387_v0 = vadd.f32 %v7999_v11, %v2026_v5 }
 0x366   : > { %v3721_v51 = vpop.f32.mrf.mxu2  ;;  %v3312_v27 = vmul.f32 %v3235_v9, %v3060_v20  ;;  %v3803_v20 = vld [vmem:[#allocation2 + $0x62] sm:$0xff] }
 0x367   : > { %v8281_v43 = vadd.f32 %v3721_v51, %v3565_v49  ;;  %v2938_v63 = vpop.f32.mrf.mxu0  ;;  %v3567_v47 = vpop.f32.mrf.mxu1  ;;  %v3449_v46 = vld [vmem:[#allocation2 + $0xd1] sm:$0xff]  ;;  %v3833_v9 = vpack.c.bf16 %v3804_v57, %v3803_v20  ;;  %v2756_v2 = vadd.f32 %v2709_v58, %v2387_v0 }
 0x368   : > { %3357 = vst.msk [vmem:[#allocation2 + $0xdb] sm:$0xff] %vm535_vm1, %v3312_v27  ;;  %v2989_v35 = vadd.f32 %v2938_v63, %v2753_v41  ;;  %v3394_v24 = vld [vmem:[#allocation2 + $0xd0] sm:$0xff]  ;;  %v3250_v41 = vpop.permute.xlu1 %3249 }
 0x36a   : > { %v3025_v16 = vmul.f32 0.2, %v2989_v35  ;;  %6629 = vmatmul.msk.bf16.gmra.mxu0 %vm535_vm1, %v3831_v36  ;;  %6612 = vmatmul.msk.bf16.gmra.mxu3 %vm535_vm1, %v3832_v14 }
 0x36c   : > { %v3061_v37 = vmax.f32 %v2989_v35, %v3025_v16 }
 0x36d   : > { %v2712_v59 = vpop.f32.mrf.mxu3 }
 0x36e   : > { %v3723_v30 = vpop.f32.mrf.mxu2  ;;  %v3313_v15 = vmul.f32 %v3240_v50, %v3061_v37 }
 0x36f   : > { %v8289_v19 = vadd.f32 %v3723_v30, %v3567_v47  ;;  %v2940_v55 = vpop.f32.mrf.mxu0  ;;  %v3570_v31 = vpop.f32.mrf.mxu1  ;;  %v3450_v40 = vld [vmem:[#allocation2 + $0xd9] sm:$0xff] }
 0x370   : > { %v3395_v53 = vld [vmem:[#allocation2 + $0xd8] sm:$0xff]  ;;  %3358 = vst.msk [vmem:[#allocation2 + $0xe3] sm:$0xff] %vm535_vm1, %v3313_v15  ;;  %v2990_v36 = vadd.f32 %v2940_v55, %v2754_v10  ;;  %v3472_v38 = vpack.c.bf16 %v3450_v40, %v3449_v46  ;;  %v3255_v30 = vpop.permute.xlu2 %3254  ;;  %v2757_v15 = vadd.f32 %v2712_v59, %v8009_v33  ;;  %v9157_v33 = vld [vmem:[#allocation16_spill] sm:$0xff] }
 0x371   : > { %v3417_v62 = vpack.c.bf16 %v3395_v53, %v3394_v24  ;;  %v3806_v40 = vld [vmem:[#allocation2 + $0x7a] sm:$0xff] }
 0x372   : > { %v3026_v45 = vmul.f32 0.2, %v2990_v36  ;;  %6583 = vmatmul.msk.bf16.gmra.mxu1 %vm535_vm1, %v3472_v38  ;;  %v9156_v38 = vld [vmem:[#allocation14_spill] sm:$0xff] }
 0x373   : > { %6601 = vmatmul.msk.bf16.gmra.mxu2 %vm535_vm1, %v3417_v62 }
 0x374   : > { %v3062_v25 = vmax.f32 %v2990_v36, %v3026_v45  ;;  %v9155_v36 = vld [vmem:[#allocation15_spill] sm:$0xff] }
 0x375   : > { %v2714_v8 = vpop.f32.mrf.mxu3  ;;  %v2028_v62 = vadd.f32 %v9156_v38, %v9155_v36 }
 0x376   : > { %v3726_v54 = vpop.f32.mrf.mxu2  ;;  %v3314_v17 = vmul.f32 %v3245_v4, %v3062_v25  ;;  %v3805_v25 = vld [vmem:[#allocation2 + $0x72] sm:$0xff] }
 0x377   : > { %v8295_v49 = vadd.f32 %v3726_v54, %v3570_v31  ;;  %v2943_v18 = vpop.f32.mrf.mxu0  ;;  %v3572_v32 = vpop.f32.mrf.mxu1  ;;  %v3451_v13 = vld [vmem:[#allocation2 + $0xe1] sm:$0xff]  ;;  %v3834_v4 = vpack.c.bf16 %v3806_v40, %v3805_v25  ;;  %v2389_v59 = vadd.f32 %v9157_v33, %v2028_v62 }
 0x378   : > { %3359 = vst.msk [vmem:[#allocation2 + $0xeb] sm:$0xff] %vm535_vm1, %v3314_v17  ;;  %v2991_v61 = vadd.f32 %v2943_v18, %v2755_v3  ;;  %v3396_v16 = vld [vmem:[#allocation2 + $0xe0] sm:$0xff]  ;;  %v3260_v3 = vpop.permute.xlu0 %3259  ;;  %v3270_v62 = vpop.permute.xlu2 %3269 }
 0x379   : > { %v2758_v57 = vadd.f32 %v2714_v8, %v2389_v59 }
 0x37a   : > { %v3027_v51 = vmul.f32 0.2, %v2991_v61  ;;  %6630 = vmatmul.msk.bf16.gmra.mxu0 %vm535_vm1, %v3832_v14  ;;  %6613 = vmatmul.msk.bf16.gmra.mxu3 %vm535_vm1, %v3833_v9 }
 0x37c   : > { %v3063_v12 = vmax.f32 %v2991_v61, %v3027_v51 }
 0x37d   : > { %v2717_v44 = vpop.f32.mrf.mxu3 }
 0x37e   : > { %v3728_v27 = vpop.f32.mrf.mxu2  ;;  %v3315_v63 = vmul.f32 %v3250_v41, %v3063_v12 }
 0x37f   : > { %v8303_v47 = vadd.f32 %v3728_v27, %v3572_v32  ;;  %v2945_v26 = vpop.f32.mrf.mxu0  ;;  %v3575_v35 = vpop.f32.mrf.mxu1  ;;  %v3452_v42 = vld [vmem:[#allocation2 + $0xe9] sm:$0xff] }
 0x380   : > { %v3397_v1 = vld [vmem:[#allocation2 + $0xe8] sm:$0xff]  ;;  %3360 = vst.msk [vmem:[#allocation2 + $0xf3] sm:$0xff] %vm535_vm1, %v3315_v63  ;;  %v2992_v14 = vadd.f32 %v2945_v26, %v2756_v2  ;;  %v3473_v37 = vpack.c.bf16 %v3452_v42, %v3451_v13  ;;  %v3265_v63 = vpop.permute.xlu1 %3264 }
 0x381   : > { %v3418_v50 = vpack.c.bf16 %v3397_v1, %v3396_v16  ;;  %v9158_v26 = vld [vmem:[#allocation17_spill] sm:$0xff] }
 0x382   : > { %v3028_v11 = vmul.f32 0.2, %v2992_v14  ;;  %6584 = vmatmul.msk.bf16.gmra.mxu1 %vm535_vm1, %v3473_v37 }
 0x383   : > { %6602 = vmatmul.msk.bf16.gmra.mxu2 %vm535_vm1, %v3418_v50 }
 0x384   : > { %v3064_v58 = vmax.f32 %v2992_v14, %v3028_v11  ;;  %v3808_v14 = vld [vmem:[#allocation2 + $0x8a] sm:$0xff]  ;;  %v9159_v11 = vld [vmem:[#allocation19_spill] sm:$0xff] }
 0x385   : > { %v2719_v31 = vpop.f32.mrf.mxu3 }
 0x386   : > { %v3731_v10 = vpop.f32.mrf.mxu2  ;;  %v3316_v46 = vmul.f32 %v3255_v30, %v3064_v58  ;;  %v9160_v58 = vld [vmem:[#allocation18_spill] sm:$0xff] }
 0x387   : > { %v8309_v55 = vadd.f32 %v3731_v10, %v3575_v35  ;;  %v2948_v24 = vpop.f32.mrf.mxu0  ;;  %v3577_v53 = vpop.f32.mrf.mxu1  ;;  %v3453_v5 = vld [vmem:[#allocation2 + $0xf1] sm:$0xff]  ;;  %v2759_v35 = vadd.f32 %v2717_v44, %v9158_v26  ;;  %v2030_v30 = vadd.f32 %v9160_v58, %v9159_v11  ;;  %v6682_v44 = vld [vmem:[%s9111_s2 + $0xc] sm:$0x3] }
 0x388   : > { %3361 = vst.msk [vmem:[#allocation2 + $0xfb] sm:$0xff] %vm535_vm1, %v3316_v46  ;;  %v2993_v45 = vadd.f32 %v2948_v24, %v2757_v15  ;;  %v3398_v0 = vld [vmem:[#allocation2 + $0xf0] sm:$0xff]  ;;  %v3807_v15 = vld [vmem:[#allocation2 + $0x82] sm:$0xff]  ;;  %v4894_v24 = vsel %vm590_vm0, %v6682_v44, 0 }
 0x389   : > { %v3835_v46 = vpack.c.bf16 %v3808_v14, %v3807_v15  ;;  %4903 = vmatpush.bf16.msra.mxu3 %v4894_v24  ;;  %v9163_v58 = vld [vmem:[#allocation22_spill] sm:$0xff] }
 0x38a   : > { %v3029_v54 = vmul.f32 0.2, %v2993_v45  ;;  %6631 = vmatmul.msk.bf16.gmra.mxu0 %vm535_vm1, %v3833_v9  ;;  %6614 = vmatmul.msk.bf16.gmra.mxu3 %vm535_vm1, %v3834_v4  ;;  %v3809_v15 = vld [vmem:[#allocation2 + $0x92] sm:$0xff] }
 0x38c   : > { %v3065_v52 = vmax.f32 %v2993_v45, %v3029_v54 }
 0x38d   : > { %v8319_v34 = vpop.f32.mrf.mxu3 }
 0x38e   : > { %v3733_v17 = vpop.f32.mrf.mxu2  ;;  %v3317_v18 = vmul.f32 %v3260_v3, %v3065_v52 }
 0x38f   : > { %v8317_v32 = vadd.f32 %v3733_v17, %v3577_v53  ;;  %v2950_v61 = vpop.f32.mrf.mxu0  ;;  %v3580_v20 = vpop.f32.mrf.mxu1  ;;  %v3454_v51 = vld [vmem:[#allocation2 + $0xf9] sm:$0xff] }
 0x390   : > { %v3399_v12 = vld [vmem:[#allocation2 + $0xf8] sm:$0xff]  ;;  %3362 = vst.msk [vmem:[#allocation2 + $0x103] sm:$0xff] %vm535_vm1, %v3317_v18  ;;  %v2994_v9 = vadd.f32 %v2950_v61, %v2758_v57  ;;  %v3474_v41 = vpack.c.bf16 %v3454_v51, %v3453_v5  ;;  %v9161_v53 = vld [vmem:[#allocation20_spill] sm:$0xff] }
 0x391   : > { %v3419_v27 = vpack.c.bf16 %v3399_v12, %v3398_v0  ;;  %v2391_v36 = vadd.f32 %v9161_v53, %v2030_v30  ;;  %v2032_v30 = vadd.f32 %v8174_v60, %v9163_v58  ;;  %v3280_v53 = vpop.permute.xlu1 %3279  ;;  %v4287_v58 = vld [vmem:[#allocation2 + $0x13] sm:$0xff] }
 0x392   : > { %v3030_v2 = vmul.f32 0.2, %v2994_v9  ;;  %6585 = vmatmul.msk.bf16.gmra.mxu1 %vm535_vm1, %v3474_v41  ;;  %v6720_v41 = vld [vmem:[%s9111_s2 + $0x10] sm:$0x3] }
 0x393   : > { %6603 = vmatmul.msk.bf16.gmra.mxu2 %vm535_vm1, %v3419_v27  ;;  %v2760_v25 = vadd.f32 %v2719_v31, %v2391_v36  ;;  %v6701_v31 = vld [vmem:[%s9111_s2 + $0xe] sm:$0x3] }
 0x394   : > { %v3066_v8 = vmax.f32 %v2994_v9, %v3030_v2  ;;  %v5142_v12 = vsel %vm590_vm0, %v6701_v31, 0  ;;  %v5390_v2 = vsel %vm590_vm0, %v6720_v41, 0  ;;  %v3812_v31 = vld [vmem:[#allocation2 + $0xaa] sm:$0xff] }
 0x395   : > { %v8327_v1 = vpop.f32.mrf.mxu3  ;;  %5151 = vmatpush.bf16.msra.mxu0 %v5142_v12  ;;  %5399 = vmatpush.bf16.msra.mxu1 %v5390_v2 }
 0x396   : > { %v3736_v13 = vpop.f32.mrf.mxu2  ;;  %v3318_v42 = vmul.f32 %v3265_v63, %v3066_v8  ;;  %v3275_v8 = vpop.permute.xlu0 %3274 }
 0x397   : > { %v8325_v16 = vadd.f32 %v3736_v13, %v3580_v20  ;;  %v2953_v37 = vpop.f32.mrf.mxu0  ;;  %v3582_v50 = vpop.f32.mrf.mxu1  ;;  %v3400_v18 = vld [vmem:[#allocation2 + $0x100] sm:$0xff]  ;;  %v9162_v13 = vld [vmem:[#allocation21_spill] sm:$0xff] }
 0x398   : > { %3363 = vst.msk [vmem:[#allocation2 + $0x10b] sm:$0xff] %vm535_vm1, %v3318_v42  ;;  %v2995_v10 = vadd.f32 %v2953_v37, %v2759_v35  ;;  %v2761_v26 = vadd.f32 %v8319_v34, %v9162_v13  ;;  %v3810_v37 = vld [vmem:[#allocation2 + $0x9a] sm:$0xff]  ;;  %v2393_v34 = vadd.f32 %v8177_v6, %v2032_v30 }
 0x399   : > { %v4288_v13 = vld [vmem:[#allocation2 + $0x1b] sm:$0xff] }
 0x39a   : > { %v3031_v40 = vmul.f32 0.2, %v2995_v10  ;;  %6632 = vmatmul.msk.bf16.gmra.mxu0 %vm535_vm1, %v3834_v4  ;;  %6615 = vmatmul.msk.bf16.gmra.mxu3 %vm535_vm1, %v3835_v46  ;;  %v3455_v4 = vld [vmem:[#allocation2 + $0x101] sm:$0xff]  ;;  %v4535_v30 = vld [vmem:[#allocation2 + $0x14] sm:$0xff] }
 0x39c   : > { %v3067_v38 = vmax.f32 %v2995_v10, %v3031_v40  ;;  %v3836_v40 = vpack.c.bf16 %v3810_v37, %v3809_v15  ;;  %v4323_v15 = vpack.c.bf16 %v4288_v13, %v4287_v58 }
 0x39d   : > { %v3913_v59 = vpop.f32.mrf.mxu3 }
 0x39e   : > { %v3738_v45 = vpop.f32.mrf.mxu2  ;;  %v3319_v54 = vmul.f32 %v3270_v62, %v3067_v38  ;;  %v8342_v17 = vadd.f32 %v3913_v59, %v8192_v7  ;;  %v5636_v7 = vld [vmem:[%s9112_s3] sm:$0x3]  ;;  %v2762_v38 = vadd.f32 %v8327_v1, %v2393_v34 }
 0x39f   : > { %v8339_v33 = vadd.f32 %v3738_v45, %v3582_v50  ;;  %v2955_v52 = vpop.f32.mrf.mxu0  ;;  %v3585_v3 = vpop.f32.mrf.mxu1  ;;  %v3456_v57 = vld [vmem:[#allocation2 + $0x109] sm:$0xff]  ;;  %v5959_v9 = vsel %vm590_vm0, %v5636_v7, 0 }
 0x3a0   : > { %v3401_v5 = vld [vmem:[#allocation2 + $0x108] sm:$0xff]  ;;  %3364 = vst.msk [vmem:[#allocation2 + $0x113] sm:$0xff] %vm535_vm1, %v3319_v54  ;;  %v2996_v61 = vadd.f32 %v2955_v52, %v2760_v25  ;;  %v3475_v20 = vpack.c.bf16 %v3456_v57, %v3455_v4  ;;  %5968 = vmatpush.bf16.msra.mxu2 %v5959_v9 }
 0x3a1   : > { %v3420_v51 = vpack.c.bf16 %v3401_v5, %v3400_v18 }
 0x3a2   : > { %v3032_v0 = vmul.f32 0.2, %v2996_v61  ;;  %6586 = vmatmul.msk.bf16.gmra.mxu1 %vm535_vm1, %v3475_v20 }
 0x3a3   : > { %6604 = vmatmul.msk.bf16.gmra.mxu2 %vm535_vm1, %v3420_v51 }
 0x3a4   : > { %v3068_v27 = vmax.f32 %v2996_v61, %v3032_v0  ;;  %v3285_v61 = vpop.permute.xlu2 %3284 }
 0x3a5   : > { %v3915_v14 = vpop.f32.mrf.mxu3 }
 0x3a6   : > { %v3741_v63 = vpop.f32.mrf.mxu2  ;;  %v3320_v35 = vmul.f32 %v3275_v8, %v3068_v27  ;;  %v3811_v27 = vld [vmem:[#allocation2 + $0xa2] sm:$0xff]  ;;  %v3704_v8 = vadd.f32 %v8233_v48, %v8224_v29 }
 0x3a7   : > { %v8361_v42 = vadd.f32 %v3741_v63, %v3585_v3  ;;  %v2958_v50 = vpop.f32.mrf.mxu0  ;;  %v3587_v11 = vpop.f32.mrf.mxu1  ;;  %v3457_v25 = vld [vmem:[#allocation2 + $0x111] sm:$0xff]  ;;  %v3837_v2 = vpack.c.bf16 %v3812_v31, %v3811_v27  ;;  %v4292_v27 = vld [vmem:[#allocation2 + $0x3b] sm:$0xff] }
 0x3a8   : > { %3365 = vst.msk [vmem:[#allocation2 + $0x11b] sm:$0xff] %vm535_vm1, %v3320_v35  ;;  %v2997_v10 = vadd.f32 %v2958_v50, %v2761_v26  ;;  %v4536_v26 = vld [vmem:[#allocation2 + $0x1c] sm:$0xff]  ;;  %v4004_v35 = vadd.f32 %v3915_v14, %v3704_v8 }
 0x3aa   : > { %v3033_v44 = vmul.f32 0.2, %v2997_v10  ;;  %6633 = vmatmul.msk.bf16.gmra.mxu0 %vm535_vm1, %v3835_v46  ;;  %6616 = vmatmul.msk.bf16.gmra.mxu3 %vm535_vm1, %v3836_v40  ;;  %v3402_v46 = vld [vmem:[#allocation2 + $0x110] sm:$0xff] }
 0x3ac   : > { %v3069_v24 = vmax.f32 %v2997_v10, %v3033_v44  ;;  %v3814_v44 = vld [vmem:[#allocation2 + $0xba] sm:$0xff] }
 0x3ad   : > { %v3918_v60 = vpop.f32.mrf.mxu3 }
 0x3ae   : > { %v3743_v36 = vpop.f32.mrf.mxu2  ;;  %v3321_v62 = vmul.f32 %v3280_v53, %v3069_v24  ;;  %v4005_v4 = vadd.f32 %v3918_v60, %v8239_v22  ;;  %v4290_v60 = vld [vmem:[#allocation2 + $0x2b] sm:$0xff] }
 0x3af   : > { %v8370_v45 = vadd.f32 %v3743_v36, %v3587_v11  ;;  %v2960_v54 = vpop.f32.mrf.mxu0  ;;  %v3590_v59 = vpop.f32.mrf.mxu1  ;;  %v3458_v52 = vld [vmem:[#allocation2 + $0x119] sm:$0xff] }
 0x3b0   : > { %v3403_v3 = vld [vmem:[#allocation2 + $0x118] sm:$0xff]  ;;  %3366 = vst.msk [vmem:[#allocation2 + $0x123] sm:$0xff] %vm535_vm1, %v3321_v62  ;;  %v2998_v6 = vadd.f32 %v2960_v54, %v2762_v38  ;;  %v3476_v57 = vpack.c.bf16 %v3458_v52, %v3457_v25  ;;  %v4538_v25 = vld [vmem:[#allocation2 + $0x2c] sm:$0xff] }
 0x3b1   : > { %v3421_v18 = vpack.c.bf16 %v3403_v3, %v3402_v46  ;;  %v3813_v36 = vld [vmem:[#allocation2 + $0xb2] sm:$0xff] }
 0x3b2   : > { %v3034_v5 = vmul.f32 0.2, %v2998_v6  ;;  %6587 = vmatmul.msk.bf16.gmra.mxu1 %vm535_vm1, %v3476_v57  ;;  %v3838_v38 = vpack.c.bf16 %v3814_v44, %v3813_v36  ;;  %v4294_v36 = vld [vmem:[#allocation2 + $0x4b] sm:$0xff] }
 0x3b3   : > { %6605 = vmatmul.msk.bf16.gmra.mxu2 %vm535_vm1, %v3421_v18 }
 0x3b4   : > { %v3070_v1 = vmax.f32 %v2998_v6, %v3034_v5  ;;  %v4537_v6 = vld [vmem:[#allocation2 + $0x24] sm:$0xff] }
 0x3b5   : > { %v3920_v22 = vpop.f32.mrf.mxu3  ;;  %v8406_v18 = vpack.c.bf16 %v4538_v25, %v4537_v6 }
 0x3b6   : > { %v3746_v20 = vpop.f32.mrf.mxu2  ;;  %v3322_v51 = vmul.f32 %v3285_v61, %v3070_v1  ;;  %v4006_v12 = vadd.f32 %v3920_v22, %v8247_v23 }
 0x3b7   : > { %v8376_v0 = vadd.f32 %v3746_v20, %v3590_v59  ;;  %v3592_v7 = vpop.f32.mrf.mxu1  ;;  %v4161_v9 = vpop.f32.mrf.mxu0  ;;  %v3816_v20 = vld [vmem:[#allocation2 + $0xca] sm:$0xff] }
 0x3b8   : > { %3367 = vst.msk [vmem:[#allocation2 + $0x12b] sm:$0xff] %vm535_vm1, %v3322_v51  ;;  %v8381_v41 = vadd.f32 %v4161_v9, %v8342_v17 }
 0x3ba   : > { %6634 = vmatmul.msk.bf16.gmra.mxu0 %vm535_vm1, %v3836_v40  ;;  %6617 = vmatmul.msk.bf16.gmra.mxu3 %vm535_vm1, %v3837_v2  ;;  %v4571_v40 = vpack.c.bf16 %v4536_v26, %v4535_v30 }
 0x3bd   : > { %v3923_v37 = vpop.f32.mrf.mxu3 }
 0x3be   : > { %v3748_v63 = vpop.f32.mrf.mxu2  ;;  %v4007_v17 = vadd.f32 %v3923_v37, %v8253_v21  ;;  %v4539_v37 = vld [vmem:[#allocation2 + $0x34] sm:$0xff] }
 0x3bf   : > { %v8387_v23 = vadd.f32 %v3748_v63, %v3592_v7  ;;  %v3595_v50 = vpop.f32.mrf.mxu1  ;;  %v4163_v11 = vpop.f32.mrf.mxu0  ;;  %v3815_v7 = vld [vmem:[#allocation2 + $0xc2] sm:$0xff] }
 0x3c0   : > { %v8390_v10 = vadd.f32 %v4163_v11, %v4004_v35 }
 0x3c2   : > { %6645 = vmatmul.msk.bf16.vlgmr.msrb.gmra.mxu1 %vm535_vm1, %v4323_v15 }
 0x3c3   : > { %6664 = vmatmul.msk.bf16.vlgmr.msrb.gmra.mxu2 %vm535_vm1, %v4571_v40  ;;  %v3818_v40 = vld [vmem:[#allocation2 + $0xda] sm:$0xff] }
 0x3c5   : > { %v3925_v14 = vpop.f32.mrf.mxu3 }
 0x3c6   : > { %v3751_v29 = vpop.f32.mrf.mxu2  ;;  %v4008_v24 = vadd.f32 %v3925_v14, %v8261_v28  ;;  %v4289_v28 = vld [vmem:[#allocation2 + $0x23] sm:$0xff] }
 0x3c7   : > { %v8394_v48 = vadd.f32 %v3751_v29, %v3595_v50  ;;  %v3597_v34 = vpop.f32.mrf.mxu1  ;;  %v4166_v21 = vpop.f32.mrf.mxu0  ;;  %v4324_v57 = vpack.c.bf16 %v4290_v60, %v4289_v28 }
 0x3c8   : > { %v8397_v53 = vadd.f32 %v4166_v21, %v4005_v4 }
 0x3ca   : > { %6635 = vmatmul.msk.bf16.gmra.mxu0 %vm535_vm1, %v3837_v2  ;;  %6618 = vmatmul.msk.bf16.gmra.mxu3 %vm535_vm1, %v3838_v38  ;;  %v4540_v2 = vld [vmem:[#allocation2 + $0x3c] sm:$0xff] }
 0x3cb   : > { %v8423_v11 = vpack.c.bf16 %v4540_v2, %v4539_v37  ;;  %v4544_v2 = vld [vmem:[#allocation2 + $0x5c] sm:$0xff] }
 0x3cd   : > { %v3928_v59 = vpop.f32.mrf.mxu3 }
 0x3ce   : > { %v3753_v62 = vpop.f32.mrf.mxu2  ;;  %v4009_v46 = vadd.f32 %v3928_v59, %v8267_v56 }
 0x3cf   : > { %v8401_v54 = vadd.f32 %v3753_v62, %v3597_v34  ;;  %v3600_v52 = vpop.f32.mrf.mxu1  ;;  %v4168_v3 = vpop.f32.mrf.mxu0  ;;  %v3817_v34 = vld [vmem:[#allocation2 + $0xd2] sm:$0xff] }
 0x3d0   : > { %v8404_v4 = vadd.f32 %v4168_v3, %v4006_v12  ;;  %v3839_v12 = vpack.c.bf16 %v3816_v20, %v3815_v7  ;;  %v4541_v3 = vld [vmem:[#allocation2 + $0x44] sm:$0xff] }
 0x3d1   : > { %v3820_v20 = vld [vmem:[#allocation2 + $0xea] sm:$0xff] }
 0x3d2   : > { %6646 = vmatmul.msk.bf16.gmra.mxu1 %vm535_vm1, %v4324_v57 }
 0x3d3   : > { %6665 = vmatmul.msk.bf16.gmra.mxu2 %vm535_vm1, %v8406_v18 }
 0x3d5   : > { %v3930_v61 = vpop.f32.mrf.mxu3 }
 0x3d6   : > { %v3756_v5 = vpop.f32.mrf.mxu2  ;;  %v4010_v56 = vadd.f32 %v3930_v61, %v8275_v39  ;;  %v4291_v39 = vld [vmem:[#allocation2 + $0x33] sm:$0xff] }
 0x3d7   : > { %v8411_v1 = vadd.f32 %v3756_v5, %v3600_v52  ;;  %v3602_v51 = vpop.f32.mrf.mxu1  ;;  %v4171_v22 = vpop.f32.mrf.mxu0 }
 0x3d8   : > { %v8414_v31 = vadd.f32 %v4171_v22, %v4007_v17  ;;  %v4325_v17 = vpack.c.bf16 %v4292_v27, %v4291_v39  ;;  %v4296_v27 = vld [vmem:[#allocation2 + $0x5b] sm:$0xff] }
 0x3da   : > { %6636 = vmatmul.msk.bf16.gmra.mxu0 %vm535_vm1, %v3838_v38  ;;  %6619 = vmatmul.msk.bf16.gmra.mxu3 %vm535_vm1, %v3839_v12  ;;  %v4542_v38 = vld [vmem:[#allocation2 + $0x4c] sm:$0xff] }
 0x3db   : > { %v8440_v6 = vpack.c.bf16 %v4542_v38, %v4541_v3 }
 0x3dd   : > { %v3933_v63 = vpop.f32.mrf.mxu3 }
 0x3de   : > { %v3758_v9 = vpop.f32.mrf.mxu2  ;;  %v4011_v26 = vadd.f32 %v3933_v63, %v8281_v43 }
 0x3df   : > { %v8418_v8 = vadd.f32 %v3758_v9, %v3602_v51  ;;  %v3605_v13 = vpop.f32.mrf.mxu1  ;;  %v4173_v35 = vpop.f32.mrf.mxu0 }
 0x3e0   : > { %v8421_v50 = vadd.f32 %v4173_v35, %v4008_v24  ;;  %v3840_v24 = vpack.c.bf16 %v3818_v40, %v3817_v34  ;;  %v3822_v34 = vld [vmem:[#allocation2 + $0xfa] sm:$0xff] }
 0x3e2   : > { %6647 = vmatmul.msk.bf16.gmra.mxu1 %vm535_vm1, %v4325_v17  ;;  %v4543_v17 = vld [vmem:[#allocation2 + $0x54] sm:$0xff] }
 0x3e3   : > { %6666 = vmatmul.msk.bf16.gmra.mxu2 %vm535_vm1, %v8423_v11 }
 0x3e5   : > { %v3935_v15 = vpop.f32.mrf.mxu3 }
 0x3e6   : > { %v3761_v58 = vpop.f32.mrf.mxu2  ;;  %v4012_v43 = vadd.f32 %v3935_v15, %v8289_v19  ;;  %v4293_v19 = vld [vmem:[#allocation2 + $0x43] sm:$0xff]  ;;  %v8457_v15 = vpack.c.bf16 %v4544_v2, %v4543_v17  ;;  %v4300_v17 = vld [vmem:[#allocation2 + $0x7b] sm:$0xff] }
 0x3e7   : > { %v8428_v30 = vadd.f32 %v3761_v58, %v3605_v13  ;;  %v3607_v29 = vpop.f32.mrf.mxu1  ;;  %v4176_v14 = vpop.f32.mrf.mxu0  ;;  %v4326_v28 = vpack.c.bf16 %v4294_v36, %v4293_v19 }
 0x3e8   : > { %v8431_v44 = vadd.f32 %v4176_v14, %v4009_v46 }
 0x3ea   : > { %6637 = vmatmul.msk.bf16.gmra.mxu0 %vm535_vm1, %v3839_v12  ;;  %6620 = vmatmul.msk.bf16.gmra.mxu3 %vm535_vm1, %v3840_v24 }
 0x3ed   : > { %v3938_v60 = vpop.f32.mrf.mxu3 }
 0x3ee   : > { %v3763_v21 = vpop.f32.mrf.mxu2  ;;  %v4013_v59 = vadd.f32 %v3938_v60, %v8295_v49 }
 0x3ef   : > { %v8435_v62 = vadd.f32 %v3763_v21, %v3607_v29  ;;  %v3610_v25 = vpop.f32.mrf.mxu1  ;;  %v4178_v52 = vpop.f32.mrf.mxu0 }
 0x3f0   : > { %v8438_v46 = vadd.f32 %v4178_v52, %v4010_v56  ;;  %v3819_v56 = vld [vmem:[#allocation2 + $0xe2] sm:$0xff]  ;;  %v4546_v52 = vld [vmem:[#allocation2 + $0x6c] sm:$0xff] }
 0x3f1   : > { %v3841_v12 = vpack.c.bf16 %v3820_v20, %v3819_v56  ;;  %v4545_v20 = vld [vmem:[#allocation2 + $0x64] sm:$0xff] }
 0x3f2   : > { %6648 = vmatmul.msk.bf16.gmra.mxu1 %vm535_vm1, %v4326_v28 }
 0x3f3   : > { %6667 = vmatmul.msk.bf16.gmra.mxu2 %vm535_vm1, %v8440_v6 }
 0x3f5   : > { %v3940_v61 = vpop.f32.mrf.mxu3 }
 0x3f6   : > { %v3766_v57 = vpop.f32.mrf.mxu2  ;;  %v4014_v49 = vadd.f32 %v3940_v61, %v8303_v47  ;;  %v4295_v47 = vld [vmem:[#allocation2 + $0x53] sm:$0xff] }
 0x3f7   : > { %v8445_v5 = vadd.f32 %v3766_v57, %v3610_v25  ;;  %v3612_v51 = vpop.f32.mrf.mxu1  ;;  %v4181_v22 = vpop.f32.mrf.mxu0  ;;  %v4327_v58 = vpack.c.bf16 %v4296_v27, %v4295_v47  ;;  %v4298_v25 = vld [vmem:[#allocation2 + $0x6b] sm:$0xff] }
 0x3f8   : > { %v8448_v7 = vadd.f32 %v4181_v22, %v4011_v26  ;;  %v8474_v22 = vpack.c.bf16 %v4546_v52, %v4545_v20  ;;  %v3824_v27 = vld [vmem:[#allocation2 + $0x10a] sm:$0xff] }
 0x3fa   : > { %6638 = vmatmul.msk.bf16.gmra.mxu0 %vm535_vm1, %v3840_v24  ;;  %6621 = vmatmul.msk.bf16.gmra.mxu3 %vm535_vm1, %v3841_v12 }
 0x3fd   : > { %v3943_v13 = vpop.f32.mrf.mxu3 }
 0x3fe   : > { %v3768_v9 = vpop.f32.mrf.mxu2  ;;  %v4015_v39 = vadd.f32 %v3943_v13, %v8309_v55 }
 0x3ff   : > { %v8452_v63 = vadd.f32 %v3768_v9, %v3612_v51  ;;  %v3615_v35 = vpop.f32.mrf.mxu1  ;;  %v4183_v37 = vpop.f32.mrf.mxu0 }
 0x400   : > { %v8455_v26 = vadd.f32 %v4183_v37, %v4012_v43  ;;  %v3821_v43 = vld [vmem:[#allocation2 + $0xf2] sm:$0xff] }
 0x401   : > { %v3842_v38 = vpack.c.bf16 %v3822_v34, %v3821_v43  ;;  %v4547_v43 = vld [vmem:[#allocation2 + $0x74] sm:$0xff] }
 0x402   : > { %6649 = vmatmul.msk.bf16.gmra.mxu1 %vm535_vm1, %v4327_v58  ;;  %v4548_v58 = vld [vmem:[#allocation2 + $0x7c] sm:$0xff] }
 0x403   : > { %6668 = vmatmul.msk.bf16.gmra.mxu2 %vm535_vm1, %v8457_v15 }
 0x405   : > { %v3945_v14 = vpop.f32.mrf.mxu3 }
 0x406   : > { %v3771_v40 = vpop.f32.mrf.mxu2  ;;  %v4016_v55 = vadd.f32 %v3945_v14, %v8317_v32  ;;  %v4297_v32 = vld [vmem:[#allocation2 + $0x63] sm:$0xff] }
 0x407   : > { %v8462_v29 = vadd.f32 %v3771_v40, %v3615_v35  ;;  %v3617_v24 = vpop.f32.mrf.mxu1  ;;  %v4186_v21 = vpop.f32.mrf.mxu0  ;;  %v4328_v51 = vpack.c.bf16 %v4298_v25, %v4297_v32  ;;  %v8491_v25 = vpack.c.bf16 %v4548_v58, %v4547_v43  ;;  %v4549_v58 = vld [vmem:[#allocation2 + $0x84] sm:$0xff] }
 0x408   : > { %v8465_v36 = vadd.f32 %v4186_v21, %v4013_v59 }
 0x40a   : > { %6639 = vmatmul.msk.bf16.gmra.mxu0 %vm535_vm1, %v3841_v12  ;;  %6622 = vmatmul.msk.bf16.gmra.mxu3 %vm535_vm1, %v3842_v38 }
 0x40d   : > { %v3948_v3 = vpop.f32.mrf.mxu3 }
 0x40e   : > { %v3773_v60 = vpop.f32.mrf.mxu2  ;;  %v4017_v57 = vadd.f32 %v3948_v3, %v8325_v16 }
 0x40f   : > { %v8469_v19 = vadd.f32 %v3773_v60, %v3617_v24  ;;  %v3620_v28 = vpop.f32.mrf.mxu1  ;;  %v4188_v61 = vpop.f32.mrf.mxu0 }
 0x410   : > { %v8472_v59 = vadd.f32 %v4188_v61, %v4014_v49  ;;  %v3823_v49 = vld [vmem:[#allocation2 + $0x102] sm:$0xff] }
 0x411   : > { %v3843_v37 = vpack.c.bf16 %v3824_v27, %v3823_v49  ;;  %v4550_v27 = vld [vmem:[#allocation2 + $0x8c] sm:$0xff] }
 0x412   : > { %6650 = vmatmul.msk.bf16.gmra.mxu1 %vm535_vm1, %v4328_v51 }
 0x413   : > { %6669 = vmatmul.msk.bf16.gmra.mxu2 %vm535_vm1, %v8474_v22 }
 0x415   : > { %v3950_v9 = vpop.f32.mrf.mxu3 }
 0x416   : > { %v3776_v56 = vpop.f32.mrf.mxu2  ;;  %v4018_v16 = vadd.f32 %v3950_v9, %v8339_v33  ;;  %v4299_v33 = vld [vmem:[#allocation2 + $0x73] sm:$0xff]  ;;  %v4302_v9 = vld [vmem:[#allocation2 + $0x8b] sm:$0xff] }
 0x417   : > { %v8479_v12 = vadd.f32 %v3776_v56, %v3620_v28  ;;  %v3622_v2 = vpop.f32.mrf.mxu1  ;;  %v4191_v13 = vpop.f32.mrf.mxu0  ;;  %v4329_v60 = vpack.c.bf16 %v4300_v17, %v4299_v33  ;;  %v3826_v28 = vld [vmem:[#allocation2 + $0x11a] sm:$0xff] }
 0x418   : > { %v8482_v35 = vadd.f32 %v4191_v13, %v4015_v39 }
 0x41a   : > { %6640 = vmatmul.msk.bf16.gmra.mxu0 %vm535_vm1, %v3842_v38  ;;  %6623 = vmatmul.msk.bf16.gmra.mxu3 %vm535_vm1, %v3843_v37 }
 0x41d   : > { %v3953_v14 = vpop.f32.mrf.mxu3 }
 0x41e   : > { %v3778_v47 = vpop.f32.mrf.mxu2  ;;  %v4019_v24 = vadd.f32 %v3953_v14, %v8361_v42 }
 0x41f   : > { %v8486_v40 = vadd.f32 %v3778_v47, %v3622_v2  ;;  %v3625_v34 = vpop.f32.mrf.mxu1  ;;  %v4193_v21 = vpop.f32.mrf.mxu0 }
 0x420   : > { %v8489_v39 = vadd.f32 %v4193_v21, %v4016_v55  ;;  %v3825_v55 = vld [vmem:[#allocation2 + $0x112] sm:$0xff] }
 0x421   : > { %v3844_v51 = vpack.c.bf16 %v3826_v28, %v3825_v55  ;;  %v4552_v28 = vld [vmem:[#allocation2 + $0x9c] sm:$0xff] }
 0x422   : > { %6651 = vmatmul.msk.bf16.gmra.mxu1 %vm535_vm1, %v4329_v60 }
 0x423   : > { %6670 = vmatmul.msk.bf16.gmra.mxu2 %vm535_vm1, %v8491_v25 }
 0x425   : > { %v3955_v3 = vpop.f32.mrf.mxu3 }
 0x426   : > { %v3781_v38 = vpop.f32.mrf.mxu2  ;;  %v4020_v42 = vadd.f32 %v3955_v3, %v8370_v45  ;;  %v4301_v45 = vld [vmem:[#allocation2 + $0x83] sm:$0xff]  ;;  %v4304_v3 = vld [vmem:[#allocation2 + $0x9b] sm:$0xff] }
 0x427   : > { %v8496_v52 = vadd.f32 %v3781_v38, %v3625_v34  ;;  %v3627_v61 = vpop.f32.mrf.mxu1  ;;  %v4196_v32 = vpop.f32.mrf.mxu0  ;;  %v4330_v14 = vpack.c.bf16 %v4302_v9, %v4301_v45  ;;  %v8508_v34 = vpack.c.bf16 %v4550_v27, %v4549_v58  ;;  %v4303_v27 = vld [vmem:[#allocation2 + $0x93] sm:$0xff] }
 0x428   : > { %v8499_v20 = vadd.f32 %v4196_v32, %v4017_v57 }
 0x42a   : > { %6641 = vmatmul.msk.bf16.gmra.mxu0 %vm535_vm1, %v3843_v37  ;;  %6624 = vmatmul.msk.bf16.gmra.mxu3 %vm535_vm1, %v3844_v51 }
 0x42d   : > { %v3958_v13 = vpop.f32.mrf.mxu3 }
 0x42e   : > { %v3783_v56 = vpop.f32.mrf.mxu2  ;;  %v4021_v47 = vadd.f32 %v3958_v13, %v8376_v0 }
 0x42f   : > { %v8503_v2 = vadd.f32 %v3783_v56, %v3627_v61  ;;  %v3630_v49 = vpop.f32.mrf.mxu1  ;;  %v4198_v17 = vpop.f32.mrf.mxu0 }
 0x430   : > { %v8506_v57 = vadd.f32 %v4198_v17, %v4018_v16  ;;  %v4074_v17 = vld [vmem:[#allocation2 + $0x12a] sm:$0xff] }
 0x432   : > { %6652 = vmatmul.msk.bf16.gmra.mxu1 %vm535_vm1, %v4330_v14 }
 0x433   : > { %6671 = vmatmul.msk.bf16.gmra.mxu2 %vm535_vm1, %v8508_v34 }
 0x435   : > { %v3960_v33 = vpop.f32.mrf.mxu3 }
 0x436   : > { %v3786_v37 = vpop.f32.mrf.mxu2  ;;  %v4022_v0 = vadd.f32 %v3960_v33, %v8387_v23  ;;  %v4551_v23 = vld [vmem:[#allocation2 + $0x94] sm:$0xff] }
 0x437   : > { %v8513_v21 = vadd.f32 %v3786_v37, %v3630_v49  ;;  %v3632_v43 = vpop.f32.mrf.mxu1  ;;  %v4201_v60 = vpop.f32.mrf.mxu0  ;;  %v8527_v49 = vpack.c.bf16 %v4552_v28, %v4551_v23  ;;  %v4073_v37 = vld [vmem:[#allocation2 + $0x122] sm:$0xff] }
 0x438   : > { %v8516_v38 = vadd.f32 %v4201_v60, %v4019_v24 }
 0x43a   : > { %6642 = vmatmul.msk.bf16.gmra.mxu0 %vm535_vm1, %v3844_v51  ;;  %6683 = vmatmul.msk.bf16.vlgmr.msra.gmra.mxu3 %vm535_vm1, %v8406_v18  ;;  %v4331_v51 = vpack.c.bf16 %v4304_v3, %v4303_v27  ;;  %v4554_v3 = vld [vmem:[#allocation2 + $0xac] sm:$0xff]  ;;  %v4553_v27 = vld [vmem:[#allocation2 + $0xa4] sm:$0xff] }
 0x43d   : > { %v3963_v32 = vpop.f32.mrf.mxu3 }
 0x43e   : > { %v3788_v16 = vpop.f32.mrf.mxu2  ;;  %v4023_v55 = vadd.f32 %v3963_v32, %v8394_v48 }
 0x43f   : > { %v8521_v61 = vadd.f32 %v3788_v16, %v3632_v43  ;;  %v4203_v56 = vpop.f32.mrf.mxu0  ;;  %v4409_v9 = vpop.f32.mrf.mxu1  ;;  %v4092_v43 = vpack.c.bf16 %v4074_v17, %v4073_v37  ;;  %v4306_v16 = vld [vmem:[#allocation2 + $0xab] sm:$0xff] }
 0x440   : > { %v8524_v13 = vadd.f32 %v4203_v56, %v4020_v42  ;;  %v4499_v24 = vadd.f32 %v4409_v9, %v8381_v41 }
 0x442   : > { %6653 = vmatmul.msk.bf16.gmra.mxu1 %vm535_vm1, %v4331_v51  ;;  %v8547_v51 = vpack.c.bf16 %v4554_v3, %v4553_v27 }
 0x443   : > { %6672 = vmatmul.msk.bf16.gmra.mxu2 %vm535_vm1, %v8527_v49 }
 0x445   : > { %v3965_v48 = vpop.f32.mrf.mxu3 }
 0x446   : > { %v4657_v18 = vpop.f32.mrf.mxu2  ;;  %v4024_v58 = vadd.f32 %v3965_v48, %v8401_v54 }
 0x447   : > { %v8532_v45 = vadd.f32 %v4657_v18, %v4499_v24  ;;  %v4206_v14 = vpop.f32.mrf.mxu0  ;;  %v4411_v42 = vpop.f32.mrf.mxu1  ;;  %v5032_v18 = vld [vmem:[#allocation2 + $0x2d] sm:$0xff] }
 0x448   : > { %v8535_v33 = vadd.f32 %v4206_v14, %v4021_v47  ;;  %v4500_v41 = vadd.f32 %v4411_v42, %v8390_v10  ;;  %v4305_v47 = vld [vmem:[#allocation2 + $0xa3] sm:$0xff] }
 0x449   : > { %v4332_v24 = vpack.c.bf16 %v4306_v16, %v4305_v47  ;;  %v5031_v42 = vld [vmem:[#allocation2 + $0x25] sm:$0xff]  ;;  %v4556_v16 = vld [vmem:[#allocation2 + $0xbc] sm:$0xff]  ;;  %v4555_v47 = vld [vmem:[#allocation2 + $0xb4] sm:$0xff] }
 0x44a   : > { %6643 = vmatmul.msk.bf16.gmra.mxu0 %vm535_vm1, %v4092_v43  ;;  %6684 = vmatmul.msk.bf16.gmra.mxu3 %vm535_vm1, %v8423_v11 }
 0x44d   : > { %v3968_v32 = vpop.f32.mrf.mxu3 }
 0x44e   : > { %v4659_v60 = vpop.f32.mrf.mxu2  ;;  %v4025_v54 = vadd.f32 %v3968_v32, %v8411_v1 }
 0x44f   : > { %v8541_v28 = vadd.f32 %v4659_v60, %v4500_v41  ;;  %v4208_v56 = vpop.f32.mrf.mxu0  ;;  %v4414_v9 = vpop.f32.mrf.mxu1  ;;  %v5067_v41 = vpack.c.bf16 %v5032_v18, %v5031_v42  ;;  %v4308_v60 = vld [vmem:[#allocation2 + $0xbb] sm:$0xff] }
 0x450   : > { %v8544_v23 = vadd.f32 %v4208_v56, %v4022_v0  ;;  %v4501_v10 = vadd.f32 %v4414_v9, %v8397_v53 }
 0x452   : > { %6654 = vmatmul.msk.bf16.gmra.mxu1 %vm535_vm1, %v4332_v24  ;;  %v8567_v24 = vpack.c.bf16 %v4556_v16, %v4555_v47 }
 0x453   : > { %6673 = vmatmul.msk.bf16.gmra.mxu2 %vm535_vm1, %v8547_v51 }
 0x455   : > { %v3970_v1 = vpop.f32.mrf.mxu3 }
 0x456   : > { %v4662_v11 = vpop.f32.mrf.mxu2  ;;  %v4026_v48 = vadd.f32 %v3970_v1, %v8418_v8 }
 0x457   : > { %v8552_v17 = vadd.f32 %v4662_v11, %v4501_v10  ;;  %v4211_v14 = vpop.f32.mrf.mxu0  ;;  %v4416_v0 = vpop.f32.mrf.mxu1  ;;  %v5034_v11 = vld [vmem:[#allocation2 + $0x3d] sm:$0xff] }
 0x458   : > { %v8555_v37 = vadd.f32 %v4211_v14, %v4023_v55  ;;  %v4502_v53 = vadd.f32 %v4416_v0, %v8404_v4  ;;  %v4307_v55 = vld [vmem:[#allocation2 + $0xb3] sm:$0xff] }
 0x459   : > { %v4333_v10 = vpack.c.bf16 %v4308_v60, %v4307_v55  ;;  %v5033_v0 = vld [vmem:[#allocation2 + $0x35] sm:$0xff]  ;;  %v4558_v60 = vld [vmem:[#allocation2 + $0xcc] sm:$0xff]  ;;  %v4557_v55 = vld [vmem:[#allocation2 + $0xc4] sm:$0xff] }
 0x45a   : > { %6702 = vmatmul.msk.bf16.vlgmr.msra.gmra.mxu0 %vm535_vm1, %v5067_v41  ;;  %6685 = vmatmul.msk.bf16.gmra.mxu3 %vm535_vm1, %v8440_v6 }
 0x45d   : > { %v3973_v32 = vpop.f32.mrf.mxu3 }
 0x45e   : > { %v4664_v43 = vpop.f32.mrf.mxu2  ;;  %v4027_v8 = vadd.f32 %v3973_v32, %v8428_v30 }
 0x45f   : > { %v8561_v3 = vadd.f32 %v4664_v43, %v4502_v53  ;;  %v4213_v56 = vpop.f32.mrf.mxu0  ;;  %v4419_v9 = vpop.f32.mrf.mxu1  ;;  %v5068_v53 = vpack.c.bf16 %v5034_v11, %v5033_v0  ;;  %v4310_v43 = vld [vmem:[#allocation2 + $0xcb] sm:$0xff] }
 0x460   : > { %v8564_v27 = vadd.f32 %v4213_v56, %v4024_v58  ;;  %v4503_v4 = vadd.f32 %v4419_v9, %v8414_v31 }
 0x462   : > { %6655 = vmatmul.msk.bf16.gmra.mxu1 %vm535_vm1, %v4333_v10  ;;  %v8587_v10 = vpack.c.bf16 %v4558_v60, %v4557_v55 }
 0x463   : > { %6674 = vmatmul.msk.bf16.gmra.mxu2 %vm535_vm1, %v8567_v24 }
 0x465   : > { %v3975_v30 = vpop.f32.mrf.mxu3 }
 0x466   : > { %v4667_v6 = vpop.f32.mrf.mxu2  ;;  %v4028_v1 = vadd.f32 %v3975_v30, %v8435_v62 }
 0x467   : > { %v8572_v18 = vadd.f32 %v4667_v6, %v4503_v4  ;;  %v4216_v14 = vpop.f32.mrf.mxu0  ;;  %v4421_v58 = vpop.f32.mrf.mxu1  ;;  %v5036_v6 = vld [vmem:[#allocation2 + $0x4d] sm:$0xff] }
 0x468   : > { %v8575_v42 = vadd.f32 %v4216_v14, %v4025_v54  ;;  %v4504_v31 = vadd.f32 %v4421_v58, %v8421_v50  ;;  %v4309_v54 = vld [vmem:[#allocation2 + $0xc3] sm:$0xff] }
 0x469   : > { %v4334_v4 = vpack.c.bf16 %v4310_v43, %v4309_v54  ;;  %v5035_v58 = vld [vmem:[#allocation2 + $0x45] sm:$0xff]  ;;  %v4560_v43 = vld [vmem:[#allocation2 + $0xdc] sm:$0xff]  ;;  %v4559_v54 = vld [vmem:[#allocation2 + $0xd4] sm:$0xff] }
 0x46a   : > { %6703 = vmatmul.msk.bf16.gmra.mxu0 %vm535_vm1, %v5068_v53  ;;  %6686 = vmatmul.msk.bf16.gmra.mxu3 %vm535_vm1, %v8457_v15 }
 0x46d   : > { %v3978_v32 = vpop.f32.mrf.mxu3 }
 0x46e   : > { %v4669_v41 = vpop.f32.mrf.mxu2  ;;  %v4029_v62 = vadd.f32 %v3978_v32, %v8445_v5 }
 0x46f   : > { %v8581_v16 = vadd.f32 %v4669_v41, %v4504_v31  ;;  %v4218_v56 = vpop.f32.mrf.mxu0  ;;  %v4424_v9 = vpop.f32.mrf.mxu1  ;;  %v5069_v31 = vpack.c.bf16 %v5036_v6, %v5035_v58  ;;  %v4312_v41 = vld [vmem:[#allocation2 + $0xdb] sm:$0xff] }
 0x470   : > { %v8584_v47 = vadd.f32 %v4218_v56, %v4026_v48  ;;  %v4505_v50 = vadd.f32 %v4424_v9, %v8431_v44 }
 0x472   : > { %6656 = vmatmul.msk.bf16.gmra.mxu1 %vm535_vm1, %v4334_v4  ;;  %v8607_v4 = vpack.c.bf16 %v4560_v43, %v4559_v54 }
 0x473   : > { %6675 = vmatmul.msk.bf16.gmra.mxu2 %vm535_vm1, %v8587_v10 }
 0x475   : > { %v3980_v5 = vpop.f32.mrf.mxu3 }
 0x476   : > { %v4672_v15 = vpop.f32.mrf.mxu2  ;;  %v4030_v30 = vadd.f32 %v3980_v5, %v8452_v63 }
 0x477   : > { %v8592_v11 = vadd.f32 %v4672_v15, %v4505_v50  ;;  %v4221_v14 = vpop.f32.mrf.mxu0  ;;  %v4426_v48 = vpop.f32.mrf.mxu1  ;;  %v5038_v15 = vld [vmem:[#allocation2 + $0x5d] sm:$0xff] }
 0x478   : > { %v8595_v0 = vadd.f32 %v4221_v14, %v4027_v8  ;;  %v4506_v44 = vadd.f32 %v4426_v48, %v8438_v46  ;;  %v4311_v8 = vld [vmem:[#allocation2 + $0xd3] sm:$0xff] }
 0x479   : > { %v4335_v50 = vpack.c.bf16 %v4312_v41, %v4311_v8  ;;  %v5037_v48 = vld [vmem:[#allocation2 + $0x55] sm:$0xff]  ;;  %v4562_v41 = vld [vmem:[#allocation2 + $0xec] sm:$0xff]  ;;  %v4561_v8 = vld [vmem:[#allocation2 + $0xe4] sm:$0xff] }
 0x47a   : > { %6704 = vmatmul.msk.bf16.gmra.mxu0 %vm535_vm1, %v5069_v31  ;;  %6687 = vmatmul.msk.bf16.gmra.mxu3 %vm535_vm1, %v8474_v22 }
 0x47d   : > { %v3983_v32 = vpop.f32.mrf.mxu3 }
 0x47e   : > { %v4674_v53 = vpop.f32.mrf.mxu2  ;;  %v4031_v63 = vadd.f32 %v3983_v32, %v8462_v29 }
 0x47f   : > { %v8601_v60 = vadd.f32 %v4674_v53, %v4506_v44  ;;  %v4223_v56 = vpop.f32.mrf.mxu0  ;;  %v4429_v9 = vpop.f32.mrf.mxu1  ;;  %v5070_v44 = vpack.c.bf16 %v5038_v15, %v5037_v48  ;;  %v4314_v53 = vld [vmem:[#allocation2 + $0xeb] sm:$0xff] }
 0x480   : > { %v8604_v55 = vadd.f32 %v4223_v56, %v4028_v1  ;;  %v4507_v46 = vadd.f32 %v4429_v9, %v8448_v7 }
 0x482   : > { %6657 = vmatmul.msk.bf16.gmra.mxu1 %vm535_vm1, %v4335_v50  ;;  %v8627_v50 = vpack.c.bf16 %v4562_v41, %v4561_v8 }
 0x483   : > { %6676 = vmatmul.msk.bf16.gmra.mxu2 %vm535_vm1, %v8607_v4 }
 0x485   : > { %v3985_v29 = vpop.f32.mrf.mxu3 }
 0x486   : > { %v4677_v22 = vpop.f32.mrf.mxu2  ;;  %v4032_v5 = vadd.f32 %v3985_v29, %v8469_v19 }
 0x487   : > { %v8612_v6 = vadd.f32 %v4677_v22, %v4507_v46  ;;  %v4226_v14 = vpop.f32.mrf.mxu0  ;;  %v4431_v1 = vpop.f32.mrf.mxu1  ;;  %v5040_v22 = vld [vmem:[#allocation2 + $0x6d] sm:$0xff] }
 0x488   : > { %v8615_v58 = vadd.f32 %v4226_v14, %v4029_v62  ;;  %v4508_v7 = vadd.f32 %v4431_v1, %v8455_v26  ;;  %v4313_v62 = vld [vmem:[#allocation2 + $0xe3] sm:$0xff] }
 0x489   : > { %v4336_v46 = vpack.c.bf16 %v4314_v53, %v4313_v62  ;;  %v5039_v1 = vld [vmem:[#allocation2 + $0x65] sm:$0xff]  ;;  %v4564_v53 = vld [vmem:[#allocation2 + $0xfc] sm:$0xff]  ;;  %v4563_v62 = vld [vmem:[#allocation2 + $0xf4] sm:$0xff] }
 0x48a   : > { %6705 = vmatmul.msk.bf16.gmra.mxu0 %vm535_vm1, %v5070_v44  ;;  %6688 = vmatmul.msk.bf16.gmra.mxu3 %vm535_vm1, %v8491_v25 }
 0x48d   : > { %v3988_v32 = vpop.f32.mrf.mxu3 }
 0x48e   : > { %v4679_v31 = vpop.f32.mrf.mxu2  ;;  %v4033_v19 = vadd.f32 %v3988_v32, %v8479_v12 }
 0x48f   : > { %v8621_v43 = vadd.f32 %v4679_v31, %v4508_v7  ;;  %v4228_v56 = vpop.f32.mrf.mxu0  ;;  %v4434_v9 = vpop.f32.mrf.mxu1  ;;  %v5071_v7 = vpack.c.bf16 %v5040_v22, %v5039_v1  ;;  %v4316_v31 = vld [vmem:[#allocation2 + $0xfb] sm:$0xff] }
 0x490   : > { %v8624_v54 = vadd.f32 %v4228_v56, %v4030_v30  ;;  %v4509_v26 = vadd.f32 %v4434_v9, %v8465_v36 }
 0x492   : > { %6658 = vmatmul.msk.bf16.gmra.mxu1 %vm535_vm1, %v4336_v46  ;;  %v8647_v46 = vpack.c.bf16 %v4564_v53, %v4563_v62 }
 0x493   : > { %6677 = vmatmul.msk.bf16.gmra.mxu2 %vm535_vm1, %v8627_v50 }
 0x495   : > { %v3990_v12 = vpop.f32.mrf.mxu3 }
 0x496   : > { %v4682_v25 = vpop.f32.mrf.mxu2  ;;  %v4034_v29 = vadd.f32 %v3990_v12, %v8486_v40 }
 0x497   : > { %v8632_v15 = vadd.f32 %v4682_v25, %v4509_v26  ;;  %v4231_v14 = vpop.f32.mrf.mxu0  ;;  %v4436_v30 = vpop.f32.mrf.mxu1  ;;  %v5042_v25 = vld [vmem:[#allocation2 + $0x7d] sm:$0xff] }
 0x498   : > { %v8635_v48 = vadd.f32 %v4231_v14, %v4031_v63  ;;  %v4510_v36 = vadd.f32 %v4436_v30, %v8472_v59  ;;  %v4315_v63 = vld [vmem:[#allocation2 + $0xf3] sm:$0xff] }
 0x499   : > { %v4337_v26 = vpack.c.bf16 %v4316_v31, %v4315_v63  ;;  %v5041_v30 = vld [vmem:[#allocation2 + $0x75] sm:$0xff]  ;;  %v4566_v31 = vld [vmem:[#allocation2 + $0x10c] sm:$0xff]  ;;  %v4565_v63 = vld [vmem:[#allocation2 + $0x104] sm:$0xff] }
 0x49a   : > { %6706 = vmatmul.msk.bf16.gmra.mxu0 %vm535_vm1, %v5071_v7  ;;  %6689 = vmatmul.msk.bf16.gmra.mxu3 %vm535_vm1, %v8508_v34 }
 0x49d   : > { %v3993_v32 = vpop.f32.mrf.mxu3 }
 0x49e   : > { %v4684_v44 = vpop.f32.mrf.mxu2  ;;  %v4035_v40 = vadd.f32 %v3993_v32, %v8496_v52 }
 0x49f   : > { %v8641_v41 = vadd.f32 %v4684_v44, %v4510_v36  ;;  %v4233_v56 = vpop.f32.mrf.mxu0  ;;  %v4439_v9 = vpop.f32.mrf.mxu1  ;;  %v5072_v36 = vpack.c.bf16 %v5042_v25, %v5041_v30  ;;  %v4318_v44 = vld [vmem:[#allocation2 + $0x10b] sm:$0xff] }
 0x4a0   : > { %v8644_v8 = vadd.f32 %v4233_v56, %v4032_v5  ;;  %v4511_v59 = vadd.f32 %v4439_v9, %v8482_v35 }
 0x4a2   : > { %6659 = vmatmul.msk.bf16.gmra.mxu1 %vm535_vm1, %v4337_v26  ;;  %v8667_v26 = vpack.c.bf16 %v4566_v31, %v4565_v63 }
 0x4a3   : > { %6678 = vmatmul.msk.bf16.gmra.mxu2 %vm535_vm1, %v8647_v46 }
 0x4a5   : > { %v3995_v52 = vpop.f32.mrf.mxu3 }
 0x4a6   : > { %v4687_v34 = vpop.f32.mrf.mxu2  ;;  %v4036_v12 = vadd.f32 %v3995_v52, %v8503_v2 }
 0x4a7   : > { %v8652_v22 = vadd.f32 %v4687_v34, %v4511_v59  ;;  %v4236_v14 = vpop.f32.mrf.mxu0  ;;  %v4441_v5 = vpop.f32.mrf.mxu1  ;;  %v5044_v34 = vld [vmem:[#allocation2 + $0x8d] sm:$0xff] }
 0x4a8   : > { %v8655_v1 = vadd.f32 %v4236_v14, %v4033_v19  ;;  %v4512_v35 = vadd.f32 %v4441_v5, %v8489_v39  ;;  %v4317_v19 = vld [vmem:[#allocation2 + $0x103] sm:$0xff] }
 0x4a9   : > { %v4338_v59 = vpack.c.bf16 %v4318_v44, %v4317_v19  ;;  %v5043_v5 = vld [vmem:[#allocation2 + $0x85] sm:$0xff]  ;;  %v4568_v44 = vld [vmem:[#allocation2 + $0x11c] sm:$0xff]  ;;  %v4567_v19 = vld [vmem:[#allocation2 + $0x114] sm:$0xff] }
 0x4aa   : > { %6707 = vmatmul.msk.bf16.gmra.mxu0 %vm535_vm1, %v5072_v36  ;;  %6690 = vmatmul.msk.bf16.gmra.mxu3 %vm535_vm1, %v8527_v49 }
 0x4ad   : > { %v3998_v32 = vpop.f32.mrf.mxu3 }
 0x4ae   : > { %v4689_v7 = vpop.f32.mrf.mxu2  ;;  %v4037_v2 = vadd.f32 %v3998_v32, %v8513_v21 }
 0x4af   : > { %v8661_v53 = vadd.f32 %v4689_v7, %v4512_v35  ;;  %v4238_v56 = vpop.f32.mrf.mxu0  ;;  %v4444_v9 = vpop.f32.mrf.mxu1  ;;  %v5073_v35 = vpack.c.bf16 %v5044_v34, %v5043_v5  ;;  %v4320_v7 = vld [vmem:[#allocation2 + $0x11b] sm:$0xff] }
 0x4b0   : > { %v8664_v62 = vadd.f32 %v4238_v56, %v4034_v29  ;;  %v4513_v39 = vadd.f32 %v4444_v9, %v8499_v20 }
 0x4b2   : > { %6660 = vmatmul.msk.bf16.gmra.mxu1 %vm535_vm1, %v4338_v59  ;;  %v8687_v59 = vpack.c.bf16 %v4568_v44, %v4567_v19  ;;  %v4322_v44 = vld [vmem:[#allocation2 + $0x12b] sm:$0xff] }
 0x4b3   : > { %6679 = vmatmul.msk.bf16.gmra.mxu2 %vm535_vm1, %v8667_v26 }
 0x4b5   : > { %v4000_v21 = vpop.f32.mrf.mxu3 }
 0x4b6   : > { %v4692_v49 = vpop.f32.mrf.mxu2  ;;  %v4038_v52 = vadd.f32 %v4000_v21, %v8521_v61 }
 0x4b7   : > { %v8672_v25 = vadd.f32 %v4692_v49, %v4513_v39  ;;  %v4241_v14 = vpop.f32.mrf.mxu0  ;;  %v4446_v29 = vpop.f32.mrf.mxu1  ;;  %v5046_v49 = vld [vmem:[#allocation2 + $0x9d] sm:$0xff] }
 0x4b8   : > { %v8675_v30 = vadd.f32 %v4241_v14, %v4035_v40  ;;  %v4514_v20 = vadd.f32 %v4446_v29, %v8506_v57  ;;  %v4319_v40 = vld [vmem:[#allocation2 + $0x113] sm:$0xff] }
 0x4b9   : > { %v4339_v39 = vpack.c.bf16 %v4320_v7, %v4319_v40 }
 0x4ba   : > { %6708 = vmatmul.msk.bf16.gmra.mxu0 %vm535_vm1, %v5073_v35  ;;  %6691 = vmatmul.msk.bf16.gmra.mxu3 %vm535_vm1, %v8547_v51  ;;  %v6741_v35 = vld [vmem:[%s7018_s10 + $0x8] sm:$0xe] }
 0x4bd   : > { %v4905_v32 = vpop.f32.mrf.mxu3 }
 0x4be   : > { %v4694_v36 = vpop.f32.mrf.mxu2  ;;  %v4995_v9 = vadd.f32 %v4905_v32, %v8532_v45  ;;  %v4569_v32 = vld [vmem:[#allocation2 + $0x124] sm:$0xff] }
 0x4bf   : > { %v8681_v31 = vadd.f32 %v4694_v36, %v4514_v20  ;;  %v4243_v61 = vpop.f32.mrf.mxu0  ;;  %v4449_v56 = vpop.f32.mrf.mxu1  ;;  %v6882_v36 = vld [vmem:[%s7018_s10 + $0x8] sm:$0xf0] }
 0x4c0   : > { %v8684_v63 = vadd.f32 %v4243_v61, %v4036_v12  ;;  %v4515_v57 = vadd.f32 %v4449_v56, %v8516_v38  ;;  %v5045_v38 = vld [vmem:[#allocation2 + $0x95] sm:$0xff]  ;;  %v4570_v61 = vld [vmem:[#allocation2 + $0x12c] sm:$0xff] }
 0x4c1   : > { %v5074_v20 = vpack.c.bf16 %v5046_v49, %v5045_v38 }
 0x4c2   : > { %6661 = vmatmul.msk.bf16.gmra.mxu1 %vm535_vm1, %v4339_v39  ;;  %v6883_v39 = vld [vmem:[%s7018_s10 + $0x10] sm:$0xff] }
 0x4c3   : > { %6680 = vmatmul.msk.bf16.gmra.mxu2 %vm535_vm1, %v8687_v59  ;;  %v5743_v38 = vshrl.u32 %v6883_v39, 16 }
 0x4c5   : > { %v4907_v45 = vpop.f32.mrf.mxu3 }
 0x4c6   : > { %v4697_v51 = vpop.f32.mrf.mxu2  ;;  %v4996_v14 = vadd.f32 %v4907_v45, %v8541_v28  ;;  %v8710_v45 = vpack.c.bf16 %v4570_v61, %v4569_v32  ;;  %v5047_v32 = vld [vmem:[#allocation2 + $0xa5] sm:$0xff] }
 0x4c7   : > { %v8692_v34 = vadd.f32 %v4697_v51, %v4515_v57  ;;  %v4246_v21 = vpop.f32.mrf.mxu0  ;;  %v4451_v12 = vpop.f32.mrf.mxu1  ;;  %v4321_v57 = vld [vmem:[#allocation2 + $0x123] sm:$0xff] }
 0x4c8   : > { %v8695_v29 = vadd.f32 %v4246_v21, %v4037_v2  ;;  %v4516_v5 = vadd.f32 %v4451_v12, %v8524_v13  ;;  %v6742_v2 = vor.u32 %v6882_v36, %v6741_v35  ;;  %v4340_v49 = vpack.c.bf16 %v4322_v44, %v4321_v57 }
 0x4ca   : > { %6709 = vmatmul.msk.bf16.gmra.mxu0 %vm535_vm1, %v5074_v20  ;;  %6692 = vmatmul.msk.bf16.gmra.mxu3 %vm535_vm1, %v8567_v24  ;;  %v5735_v21 = vshrl.u32 %v6742_v2, 16  ;;  %v5738_v12 = vshll.u32 %v6742_v2, 16 }
 0x4cc   : > { %v5737_v36 = vrot.slane %v5735_v21, 1  ;;  %v5740_v61 = vrot.slane %v5738_v12, 2 }
 0x4cd   : > { %v4910_v28 = vpop.f32.mrf.mxu3 }
 0x4ce   : > { %v4699_v7 = vpop.f32.mrf.mxu2  ;;  %v4997_v13 = vadd.f32 %v4910_v28, %v8552_v17  ;;  %v5048_v17 = vld [vmem:[#allocation2 + $0xad] sm:$0xff]  ;;  %v5745_v28 = vrot.slane %v5743_v38, 1 }
 0x4cf   : > { %v8703_v56 = vadd.f32 %v4699_v7, %v4516_v5  ;;  %v4248_v40 = vpop.f32.mrf.mxu0  ;;  %v4454_v19 = vpop.f32.mrf.mxu1  ;;  %v5746_v5 = vshll.u32 %v6883_v39, 16  ;;  %v5075_v57 = vpack.c.bf16 %v5048_v17, %v5047_v32  ;;  %v5741_v39 = vor.u32 %v5740_v61, %v5737_v36  ;;  %v6884_v17 = vld [vmem:[%s7018_s10 + $0x18] sm:$0xff] }
 0x4d0   : > { %v8707_v51 = vadd.f32 %v4248_v40, %v4038_v52  ;;  %v4517_v24 = vadd.f32 %v4454_v19, %v8535_v33  ;;  %v5752_v36 = vshrl.u32 %v6884_v17, 16  ;;  %v5050_v61 = vld [vmem:[#allocation2 + $0xbd] sm:$0xff] }
 0x4d1   : > { %v5748_v40 = vrot.slane %v5746_v5, 2 }
 0x4d2   : > { %6662 = vmatmul.msk.bf16.gmra.mxu1 %vm535_vm1, %v4340_v49 }
 0x4d3   : > { %6681 = vmatmul.msk.bf16.gmra.mxu2 %vm535_vm1, %v8710_v45 }
 0x4d5   : > { %v4912_v52 = vpop.f32.mrf.mxu3 }
 0x4d6   : > { %v4702_v20 = vpop.f32.mrf.mxu2  ;;  %v4998_v33 = vadd.f32 %v4912_v52, %v8561_v3  ;;  %v5280_v3 = vld [vmem:[#allocation2 + $0x2e] sm:$0xff] }
 0x4d7   : > { %v8715_v35 = vadd.f32 %v4702_v20, %v4517_v24  ;;  %v4456_v7 = vpop.f32.mrf.mxu1  ;;  %v5153_v44 = vpop.f32.mrf.mxu0  ;;  %v5749_v24 = vor.u32 %v5748_v40, %v5745_v28  ;;  %v5279_v20 = vld [vmem:[#allocation2 + $0x26] sm:$0xff] }
 0x4d8   : > { %v4518_v19 = vadd.f32 %v4456_v7, %v8544_v23  ;;  %v8719_v2 = vadd.f32 %v5153_v44, %v4995_v9  ;;  %v5755_v44 = vshll.u32 %v6884_v17, 16 }
 0x4d9   : > { %v5750_v9 = vsel %vm1434_vm5, %v5741_v39, %v5749_v24  ;;  %v5049_v39 = vld [vmem:[#allocation2 + $0xb5] sm:$0xff] }
 0x4da   : > { %6710 = vmatmul.msk.bf16.gmra.mxu0 %vm535_vm1, %v5075_v57  ;;  %6693 = vmatmul.msk.bf16.gmra.mxu3 %vm535_vm1, %v8587_v10  ;;  %v5315_v10 = vpack.c.bf16 %v5280_v3, %v5279_v20  ;;  %v5282_v20 = vld [vmem:[#allocation2 + $0x3e] sm:$0xff] }
 0x4dd   : > { %v4915_v12 = vpop.f32.mrf.mxu3 }
 0x4de   : > { %v4704_v49 = vpop.f32.mrf.mxu2  ;;  %v4999_v5 = vadd.f32 %v4915_v12, %v8572_v18  ;;  %v5076_v12 = vpack.c.bf16 %v5050_v61, %v5049_v39 }
 0x4df   : > { %v8724_v21 = vadd.f32 %v4704_v49, %v4518_v19  ;;  %v4459_v38 = vpop.f32.mrf.mxu1  ;;  %v5155_v23 = vpop.f32.mrf.mxu0 }
 0x4e0   : > { %v4519_v52 = vadd.f32 %v4459_v38, %v8555_v37  ;;  %v8730_v7 = vadd.f32 %v5155_v23, %v4996_v14  ;;  %v5754_v37 = vrot.slane %v5752_v36, 1  ;;  %v5757_v14 = vrot.slane %v5755_v44, 2  ;;  %v5281_v36 = vld [vmem:[#allocation2 + $0x36] sm:$0xff] }
 0x4e1   : > { %v5316_v61 = vpack.c.bf16 %v5282_v20, %v5281_v36 }
 0x4e2   : > { %6721 = vmatmul.msk.bf16.vlgmr.msra.gmra.mxu1 %vm535_vm1, %v5315_v10  ;;  %v5758_v38 = vor.u32 %v5757_v14, %v5754_v37 }
 0x4e3   : > { %6811 = vmatmul.msk.bf16.vlgmr.msra.gmra.mxu2 %vm535_vm1, %v5750_v9 }
 0x4e5   : > { %v4917_v18 = vpop.f32.mrf.mxu3 }
 0x4e6   : > { %v4707_v32 = vpop.f32.mrf.mxu2  ;;  %v5000_v19 = vadd.f32 %v4917_v18, %v8581_v16 }
 0x4e7   : > { %v8734_v28 = vadd.f32 %v4707_v32, %v4519_v52  ;;  %v4461_v40 = vpop.f32.mrf.mxu1  ;;  %v5158_v57 = vpop.f32.mrf.mxu0 }
 0x4e8   : > { %v4520_v49 = vadd.f32 %v4461_v40, %v8564_v27  ;;  %v8738_v3 = vadd.f32 %v5158_v57, %v4997_v13  ;;  %v5759_v27 = vsel %vm1434_vm5, %v5749_v24, %v5758_v38  ;;  %v6885_v13 = vld [vmem:[%s7018_s10 + $0x20] sm:$0xff]  ;;  %v5052_v57 = vld [vmem:[#allocation2 + $0xcd] sm:$0xff] }
 0x4e9   : > { %v5764_v18 = vshll.u32 %v6885_v13, 16 }
 0x4ea   : > { %6711 = vmatmul.msk.bf16.gmra.mxu0 %vm535_vm1, %v5076_v12  ;;  %6694 = vmatmul.msk.bf16.gmra.mxu3 %vm535_vm1, %v8607_v4  ;;  %v5761_v4 = vshrl.u32 %v6885_v13, 16 }
 0x4ed   : > { %v4920_v16 = vpop.f32.mrf.mxu3 }
 0x4ee   : > { %v4709_v23 = vpop.f32.mrf.mxu2  ;;  %v5001_v52 = vadd.f32 %v4920_v16, %v8592_v11 }
 0x4ef   : > { %v8743_v9 = vadd.f32 %v4709_v23, %v4520_v49  ;;  %v4464_v17 = vpop.f32.mrf.mxu1  ;;  %v5160_v10 = vpop.f32.mrf.mxu0  ;;  %v5051_v49 = vld [vmem:[#allocation2 + $0xc5] sm:$0xff] }
 0x4f0   : > { %v4521_v44 = vadd.f32 %v4464_v17, %v8575_v42  ;;  %v8749_v32 = vadd.f32 %v5160_v10, %v4998_v33  ;;  %v5763_v42 = vrot.slane %v5761_v4, 1  ;;  %v5766_v33 = vrot.slane %v5764_v18, 2  ;;  %v5284_v10 = vld [vmem:[#allocation2 + $0x4e] sm:$0xff] }
 0x4f1   : > { %v5077_v20 = vpack.c.bf16 %v5052_v57, %v5051_v49 }
 0x4f2   : > { %6722 = vmatmul.msk.bf16.gmra.mxu1 %vm535_vm1, %v5316_v61  ;;  %v5767_v16 = vor.u32 %v5766_v33, %v5763_v42  ;;  %v5283_v61 = vld [vmem:[#allocation2 + $0x46] sm:$0xff]  ;;  %v5053_v33 = vld [vmem:[#allocation2 + $0xd5] sm:$0xff] }
 0x4f3   : > { %6812 = vmatmul.msk.bf16.gmra.mxu2 %vm535_vm1, %v5759_v27 }
 0x4f5   : > { %v4922_v11 = vpop.f32.mrf.mxu3 }
 0x4f6   : > { %v4712_v40 = vpop.f32.mrf.mxu2  ;;  %v5002_v24 = vadd.f32 %v4922_v11, %v8601_v60 }
 0x4f7   : > { %v8753_v39 = vadd.f32 %v4712_v40, %v4521_v44  ;;  %v4466_v37 = vpop.f32.mrf.mxu1  ;;  %v5163_v14 = vpop.f32.mrf.mxu0  ;;  %v5317_v40 = vpack.c.bf16 %v5284_v10, %v5283_v61 }
 0x4f8   : > { %v4522_v12 = vadd.f32 %v4466_v37, %v8584_v47  ;;  %v8757_v23 = vadd.f32 %v5163_v14, %v4999_v5  ;;  %v5768_v47 = vsel %vm1434_vm5, %v5758_v38, %v5767_v16  ;;  %v6886_v5 = vld [vmem:[%s7018_s10 + $0x28] sm:$0xff]  ;;  %v5054_v37 = vld [vmem:[#allocation2 + $0xdd] sm:$0xff] }
 0x4f9   : > { %v5773_v57 = vshll.u32 %v6886_v5, 16 }
 0x4fa   : > { %6712 = vmatmul.msk.bf16.gmra.mxu0 %vm535_vm1, %v5077_v20  ;;  %6695 = vmatmul.msk.bf16.gmra.mxu3 %vm535_vm1, %v8627_v50  ;;  %v5770_v50 = vshrl.u32 %v6886_v5, 16 }
 0x4fd   : > { %v4925_v60 = vpop.f32.mrf.mxu3 }
 0x4fe   : > { %v4714_v17 = vpop.f32.mrf.mxu2  ;;  %v5003_v13 = vadd.f32 %v4925_v60, %v8612_v6 }
 0x4ff   : > { %v8762_v36 = vadd.f32 %v4714_v17, %v4522_v12  ;;  %v4469_v27 = vpop.f32.mrf.mxu1  ;;  %v5165_v44 = vpop.f32.mrf.mxu0  ;;  %v5078_v17 = vpack.c.bf16 %v5054_v37, %v5053_v33 }
 0x500   : > { %v4523_v4 = vadd.f32 %v4469_v27, %v8595_v0  ;;  %v8768_v18 = vadd.f32 %v5165_v44, %v5000_v19  ;;  %v5772_v0 = vrot.slane %v5770_v50, 1  ;;  %v5775_v19 = vrot.slane %v5773_v57, 2  ;;  %v5286_v27 = vld [vmem:[#allocation2 + $0x5e] sm:$0xff] }
 0x502   : > { %6723 = vmatmul.msk.bf16.gmra.mxu1 %vm535_vm1, %v5317_v40  ;;  %v5776_v10 = vor.u32 %v5775_v19, %v5772_v0  ;;  %v5055_v0 = vld [vmem:[#allocation2 + $0xe5] sm:$0xff] }
 0x503   : > { %6813 = vmatmul.msk.bf16.gmra.mxu2 %vm535_vm1, %v5768_v47 }
 0x505   : > { %v4927_v6 = vpop.f32.mrf.mxu3 }
 0x506   : > { %v4717_v11 = vpop.f32.mrf.mxu2  ;;  %v5004_v38 = vadd.f32 %v4927_v6, %v8621_v43  ;;  %v5056_v6 = vld [vmem:[#allocation2 + $0xed] sm:$0xff] }
 0x507   : > { %v8772_v14 = vadd.f32 %v4717_v11, %v4523_v4  ;;  %v4471_v49 = vpop.f32.mrf.mxu1  ;;  %v5168_v42 = vpop.f32.mrf.mxu0  ;;  %v5285_v4 = vld [vmem:[#allocation2 + $0x56] sm:$0xff] }
 0x508   : > { %v4524_v12 = vadd.f32 %v4471_v49, %v8604_v55  ;;  %v8776_v20 = vadd.f32 %v5168_v42, %v5001_v52  ;;  %v5777_v55 = vsel %vm1434_vm5, %v5767_v16, %v5776_v10  ;;  %v6887_v52 = vld [vmem:[%s7018_s10 + $0x30] sm:$0xff]  ;;  %v5318_v57 = vpack.c.bf16 %v5286_v27, %v5285_v4  ;;  %v5287_v4 = vld [vmem:[#allocation2 + $0x66] sm:$0xff] }
 0x509   : > { %v5782_v11 = vshll.u32 %v6887_v52, 16 }
 0x50a   : > { %6713 = vmatmul.msk.bf16.gmra.mxu0 %vm535_vm1, %v5078_v17  ;;  %6696 = vmatmul.msk.bf16.gmra.mxu3 %vm535_vm1, %v8647_v46  ;;  %v5779_v46 = vshrl.u32 %v6887_v52, 16  ;;  %v5079_v17 = vpack.c.bf16 %v5056_v6, %v5055_v0  ;;  %v6888_v52 = vld [vmem:[%s7018_s10 + $0x38] sm:$0xff] }
 0x50d   : > { %v4930_v43 = vpop.f32.mrf.mxu3 }
 0x50e   : > { %v4719_v60 = vpop.f32.mrf.mxu2  ;;  %v5005_v47 = vadd.f32 %v4930_v43, %v8632_v15  ;;  %v5288_v43 = vld [vmem:[#allocation2 + $0x6e] sm:$0xff] }
 0x50f   : > { %v8781_v44 = vadd.f32 %v4719_v60, %v4524_v12  ;;  %v4474_v61 = vpop.f32.mrf.mxu1  ;;  %v5170_v5 = vpop.f32.mrf.mxu0 }
 0x510   : > { %v4525_v40 = vadd.f32 %v4474_v61, %v8615_v58  ;;  %v8787_v50 = vadd.f32 %v5170_v5, %v5002_v24  ;;  %v5781_v58 = vrot.slane %v5779_v46, 1  ;;  %v5784_v24 = vrot.slane %v5782_v11, 2  ;;  %v5058_v11 = vld [vmem:[#allocation2 + $0xfd] sm:$0xff] }
 0x512   : > { %6724 = vmatmul.msk.bf16.gmra.mxu1 %vm535_vm1, %v5318_v57  ;;  %v5785_v60 = vor.u32 %v5784_v24, %v5781_v58  ;;  %v5791_v57 = vshll.u32 %v6888_v52, 16 }
 0x513   : > { %6814 = vmatmul.msk.bf16.gmra.mxu2 %vm535_vm1, %v5777_v55 }
 0x514   : > { %v5786_v55 = vsel %vm1434_vm5, %v5776_v10, %v5785_v60 }
 0x515   : > { %v4932_v15 = vpop.f32.mrf.mxu3 }
 0x516   : > { %v4722_v37 = vpop.f32.mrf.mxu2  ;;  %v5006_v16 = vadd.f32 %v4932_v15, %v8641_v41 }
 0x517   : > { %v8791_v49 = vadd.f32 %v4722_v37, %v4525_v40  ;;  %v4476_v42 = vpop.f32.mrf.mxu1  ;;  %v5173_v33 = vpop.f32.mrf.mxu0  ;;  %v5319_v40 = vpack.c.bf16 %v5288_v43, %v5287_v4  ;;  %v6889_v4 = vld [vmem:[%s7018_s10 + $0x40] sm:$0xff] }
 0x518   : > { %v4526_v19 = vadd.f32 %v4476_v42, %v8624_v54  ;;  %v8795_v12 = vadd.f32 %v5173_v33, %v5003_v13  ;;  %v5057_v42 = vld [vmem:[#allocation2 + $0xf5] sm:$0xff]  ;;  %v5793_v33 = vrot.slane %v5791_v57, 2 }
 0x519   : > { %v5080_v0 = vpack.c.bf16 %v5058_v11, %v5057_v42  ;;  %v5292_v42 = vld [vmem:[#allocation2 + $0x8e] sm:$0xff] }
 0x51a   : > { %6714 = vmatmul.msk.bf16.gmra.mxu0 %vm535_vm1, %v5079_v17  ;;  %6697 = vmatmul.msk.bf16.gmra.mxu3 %vm535_vm1, %v8667_v26  ;;  %v5788_v26 = vshrl.u32 %v6888_v52, 16  ;;  %v5800_v52 = vshll.u32 %v6889_v4, 16 }
 0x51c   : > { %v5790_v10 = vrot.slane %v5788_v26, 1  ;;  %v5802_v11 = vrot.slane %v5800_v52, 2 }
 0x51e   : > { %v4724_v27 = vpop.f32.mrf.mxu2  ;;  %v5794_v58 = vor.u32 %v5793_v33, %v5790_v10 }
 0x51f   : > { %v8800_v61 = vadd.f32 %v4724_v27, %v4526_v19  ;;  %v4479_v41 = vpop.f32.mrf.mxu1  ;;  %v5175_v5 = vpop.f32.mrf.mxu0  ;;  %v5290_v19 = vld [vmem:[#allocation2 + $0x7e] sm:$0xff] }
 0x520   : > { %v4527_v54 = vadd.f32 %v4479_v41, %v8635_v48  ;;  %v8805_v13 = vadd.f32 %v5175_v5, %v5004_v38  ;;  %v5289_v41 = vld [vmem:[#allocation2 + $0x76] sm:$0xff]  ;;  %v5795_v5 = vsel %vm1434_vm5, %v5785_v60, %v5794_v58 }
 0x522   : > { %6725 = vmatmul.msk.bf16.gmra.mxu1 %vm535_vm1, %v5319_v40  ;;  %v5060_v40 = vld [vmem:[#allocation2 + $0x10d] sm:$0xff] }
 0x523   : > { %6815 = vmatmul.msk.bf16.gmra.mxu2 %vm535_vm1, %v5786_v55  ;;  %v5320_v55 = vpack.c.bf16 %v5290_v19, %v5289_v41  ;;  %v4818_v41 = vld [vmem:[#allocation2 + $0x13c] sm:$0xff] }
 0x526   : > { %v4727_v46 = vpop.f32.mrf.mxu2 }
 0x527   : > { %v8809_v37 = vadd.f32 %v4727_v46, %v4527_v54  ;;  %v4481_v6 = vpop.f32.mrf.mxu1  ;;  %v5178_v15 = vpop.f32.mrf.mxu0  ;;  %v5059_v46 = vld [vmem:[#allocation2 + $0x105] sm:$0xff] }
 0x528   : > { %v4528_v48 = vadd.f32 %v4481_v6, %v8644_v8  ;;  %v8812_v38 = vadd.f32 %v5178_v15, %v5005_v47 }
 0x52a   : > { %6715 = vmatmul.msk.bf16.gmra.mxu0 %vm535_vm1, %v5080_v0  ;;  %6698 = vmatmul.msk.bf16.gmra.mxu3 %vm535_vm1, %v8687_v59  ;;  %v5797_v59 = vshrl.u32 %v6889_v4, 16  ;;  %v5062_v4 = vld [vmem:[#allocation2 + $0x11d] sm:$0xff] }
 0x52c   : > { %v5799_v60 = vrot.slane %v5797_v59, 1  ;;  %v5061_v59 = vld [vmem:[#allocation2 + $0x115] sm:$0xff] }
 0x52e   : > { %v4729_v24 = vpop.f32.mrf.mxu2  ;;  %v5803_v6 = vor.u32 %v5802_v11, %v5799_v60  ;;  %v5294_v60 = vld [vmem:[#allocation2 + $0x9e] sm:$0xff] }
 0x52f   : > { %v8817_v17 = vadd.f32 %v4729_v24, %v4528_v48  ;;  %v4484_v27 = vpop.f32.mrf.mxu1  ;;  %v5180_v43 = vpop.f32.mrf.mxu0  ;;  %v5291_v48 = vld [vmem:[#allocation2 + $0x86] sm:$0xff] }
 0x530   : > { %v4529_v8 = vadd.f32 %v4484_v27, %v8655_v1  ;;  %v8822_v47 = vadd.f32 %v5180_v43, %v5006_v16  ;;  %v5081_v16 = vpack.c.bf16 %v5060_v40, %v5059_v46  ;;  %v5804_v0 = vsel %vm1434_vm5, %v5794_v58, %v5803_v6  ;;  %v6890_v24 = vld [vmem:[%s7018_s10 + $0x48] sm:$0xff] }
 0x531   : > { %v5321_v27 = vpack.c.bf16 %v5292_v42, %v5291_v48  ;;  %v5809_v43 = vshll.u32 %v6890_v24, 16  ;;  %v5082_v40 = vpack.c.bf16 %v5062_v4, %v5061_v59  ;;  %v6891_v42 = vld [vmem:[%s7018_s10 + $0x50] sm:$0xff] }
 0x532   : > { %6726 = vmatmul.msk.bf16.gmra.mxu1 %vm535_vm1, %v5320_v55 }
 0x533   : > { %6816 = vmatmul.msk.bf16.gmra.mxu2 %vm535_vm1, %v5795_v5 }
 0x536   : > { %v4732_v54 = vpop.f32.mrf.mxu2 }
 0x537   : > { %v8826_v26 = vadd.f32 %v4732_v54, %v4529_v8  ;;  %v4486_v57 = vpop.f32.mrf.mxu1  ;;  %v5811_v54 = vrot.slane %v5809_v43, 2 }
 0x538   : > { %v4530_v1 = vadd.f32 %v4486_v57, %v8664_v62  ;;  %v5806_v62 = vshrl.u32 %v6890_v24, 16 }
 0x53a   : > { %6716 = vmatmul.msk.bf16.gmra.mxu0 %vm535_vm1, %v5081_v16  ;;  %6699 = vmatmul.msk.bf16.gmra.mxu3 %vm535_vm1, %v8710_v45  ;;  %v4817_v45 = vld [vmem:[#allocation2 + $0x134] sm:$0xff]  ;;  %v5808_v52 = vrot.slane %v5806_v62, 1 }
 0x53b   : > { %v4836_v58 = vpack.c.bf16 %v4818_v41, %v4817_v45  ;;  %v5293_v16 = vld [vmem:[#allocation2 + $0x96] sm:$0xff] }
 0x53c   : > { %v5812_v57 = vor.u32 %v5811_v54, %v5808_v52  ;;  %v5322_v48 = vpack.c.bf16 %v5294_v60, %v5293_v16  ;;  %v5295_v52 = vld [vmem:[#allocation2 + $0xa6] sm:$0xff]  ;;  %v5066_v16 = vld [vmem:[#allocation2 + $0x13d] sm:$0xff] }
 0x53e   : > { %v4734_v15 = vpop.f32.mrf.mxu2 }
 0x53f   : > { %v8832_v10 = vadd.f32 %v4734_v15, %v4530_v1  ;;  %v4489_v33 = vpop.f32.mrf.mxu1  ;;  %v5813_v15 = vsel %vm1434_vm5, %v5803_v6, %v5812_v57 }
 0x540   : > { %v4531_v19 = vadd.f32 %v4489_v33, %v8675_v30 }
 0x542   : > { %6727 = vmatmul.msk.bf16.gmra.mxu1 %vm535_vm1, %v5321_v27  ;;  %v5064_v27 = vld [vmem:[#allocation2 + $0x12d] sm:$0xff] }
 0x543   : > { %6817 = vmatmul.msk.bf16.gmra.mxu2 %vm535_vm1, %v5804_v0  ;;  %v5818_v0 = vshll.u32 %v6891_v42, 16 }
 0x545   : > { %v5820_v41 = vrot.slane %v5818_v0, 2 }
 0x546   : > { %v4737_v5 = vpop.f32.mrf.mxu2 }
 0x547   : > { %v8839_v8 = vadd.f32 %v4737_v5, %v4531_v19  ;;  %v4491_v55 = vpop.f32.mrf.mxu1  ;;  %v5063_v19 = vld [vmem:[#allocation2 + $0x125] sm:$0xff] }
 0x548   : > { %v4532_v30 = vadd.f32 %v4491_v55, %v8684_v63  ;;  %v5815_v63 = vshrl.u32 %v6891_v42, 16  ;;  %v5083_v5 = vpack.c.bf16 %v5064_v27, %v5063_v19  ;;  %v5296_v55 = vld [vmem:[#allocation2 + $0xae] sm:$0xff] }
 0x54a   : > { %6717 = vmatmul.msk.bf16.gmra.mxu0 %vm535_vm1, %v5082_v40  ;;  %6700 = vmatmul.msk.bf16.gmra.mxu3 %vm535_vm1, %v4836_v58  ;;  %v5817_v45 = vrot.slane %v5815_v63, 1 }
 0x54e   : > { %v4739_v46 = vpop.f32.mrf.mxu2 }
 0x54f   : > { %v8844_v11 = vadd.f32 %v4739_v46, %v4532_v30  ;;  %v4494_v1 = vpop.f32.mrf.mxu1  ;;  %v6892_v30 = vld [vmem:[%s7018_s10 + $0x58] sm:$0xff]  ;;  %v5323_v46 = vpack.c.bf16 %v5296_v55, %v5295_v52 }
 0x550   : > { %v4533_v33 = vadd.f32 %v4494_v1, %v8695_v29  ;;  %v5821_v29 = vor.u32 %v5820_v41, %v5817_v45  ;;  %v5065_v1 = vld [vmem:[#allocation2 + $0x135] sm:$0xff]  ;;  %v5827_v42 = vshll.u32 %v6892_v30, 16 }
 0x552   : > { %6728 = vmatmul.msk.bf16.gmra.mxu1 %vm535_vm1, %v5322_v48  ;;  %v5822_v54 = vsel %vm1434_vm5, %v5812_v57, %v5821_v29  ;;  %v5084_v48 = vpack.c.bf16 %v5066_v16, %v5065_v1 }
 0x553   : > { %6818 = vmatmul.msk.bf16.gmra.mxu2 %vm535_vm1, %v5813_v15  ;;  %v5824_v15 = vshrl.u32 %v6892_v30, 16 }
 0x555   : > { %v5826_v0 = vrot.slane %v5824_v15, 1 }
 0x556   : > { %v4742_v24 = vpop.f32.mrf.mxu2 }
 0x557   : > { %v8851_v62 = vadd.f32 %v4742_v24, %v4533_v33  ;;  %v4496_v43 = vpop.f32.mrf.mxu1  ;;  %v5829_v24 = vrot.slane %v5827_v42, 2 }
 0x558   : > { %v4534_v6 = vadd.f32 %v4496_v43, %v8707_v51  ;;  %v8865_v51 = vld [vmem:[%s9113_s4] ss:$0 sm:$0xff] }
 0x559   : > { %v5830_v45 = vor.u32 %v5829_v24, %v5826_v0  ;;  %v5300_v24 = vld [vmem:[#allocation2 + $0xce] sm:$0xff] }
 0x55a   : > { %6718 = vmatmul.msk.bf16.gmra.mxu0 %vm535_vm1, %v5083_v5 }
 0x55b   : > { %v5831_v52 = vsel %vm1434_vm5, %v5821_v29, %v5830_v45 }
 0x55e   : > { %v4744_v4 = vpop.f32.mrf.mxu2 }
 0x55f   : > { %v8855_v59 = vadd.f32 %v4744_v4, %v4534_v6  ;;  %v5401_v58 = vpop.f32.mrf.mxu1  ;;  %v5298_v6 = vld [vmem:[#allocation2 + $0xbe] sm:$0xff] }
 0x560   : > { %v5491_v40 = vadd.f32 %v5401_v58, %v8719_v2  ;;  %v5297_v58 = vld [vmem:[#allocation2 + $0xb6] sm:$0xff] }
 0x562   : > { %v5527_v60 = vmul.f32 0.2, %v5491_v40  ;;  %6729 = vmatmul.msk.bf16.gmra.mxu1 %vm535_vm1, %v5323_v46 }
 0x563   : > { %6819 = vmatmul.msk.bf16.gmra.mxu2 %vm535_vm1, %v5822_v54  ;;  %v6893_v54 = vld [vmem:[%s7018_s10 + $0x60] sm:$0xff] }
 0x564   : > { %v5563_v33 = vmax.f32 %v5491_v40, %v5527_v60  ;;  %v5324_v40 = vpack.c.bf16 %v5298_v6, %v5297_v58  ;;  %v5833_v60 = vshrl.u32 %v6893_v54, 16  ;;  %v5836_v1 = vshll.u32 %v6893_v54, 16 }
 0x566   : > { %v5970_v57 = vpop.f32.mrf.mxu2 }
 0x567   : > { %v5971_v2 = vadd.f32 %v8865_v51, %v5970_v57  ;;  %v5403_v63 = vpop.f32.mrf.mxu1  ;;  %v5835_v57 = vrot.slane %v5833_v60, 1 }
 0x568   : > { %v5492_v27 = vadd.f32 %v5403_v63, %v8730_v7 }
 0x569   : > { %v6060_v19 = vadd.f32 %v5971_v2, %v5563_v33  ;;  %v5838_v33 = vrot.slane %v5836_v1, 2 }
 0x56a   : > { %v5528_v43 = vmul.f32 0.2, %v5492_v27  ;;  %6719 = vmatmul.msk.bf16.gmra.mxu0 %vm535_vm1, %v5084_v48 }
 0x56b   : > { %6097 = vst.msk [vmem:[%s8872_s13] sm:$0xff] %vm6096_vm9, %v6060_v19  ;;  %v5839_v63 = vor.u32 %v5838_v33, %v5835_v57  ;;  %v5302_v33 = vld [vmem:[#allocation2 + $0xde] sm:$0xff] }
 0x56c   : > { %v5564_v5 = vmax.f32 %v5492_v27, %v5528_v43 }
 0x56d   : > { %v5840_v6 = vsel %vm1434_vm5, %v5830_v45, %v5839_v63 }
 0x56e   : > { %v5972_v41 = vpop.f32.mrf.mxu2 }
 0x56f   : > { %v5973_v4 = vadd.f32 %v8865_v51, %v5972_v41  ;;  %v5406_v55 = vpop.f32.mrf.mxu1  ;;  %v5299_v41 = vld [vmem:[#allocation2 + $0xc6] sm:$0xff] }
 0x570   : > { %v5493_v7 = vadd.f32 %v5406_v55, %v8738_v3  ;;  %v5325_v58 = vpack.c.bf16 %v5300_v24, %v5299_v41 }
 0x571   : > { %v6061_v30 = vadd.f32 %v5973_v4, %v5564_v5  ;;  %v6894_v5 = vld [vmem:[%s7018_s10 + $0x68] sm:$0xff] }
 0x572   : > { %v5529_v46 = vmul.f32 0.2, %v5493_v7  ;;  %6730 = vmatmul.msk.bf16.gmra.mxu1 %vm535_vm1, %v5324_v40  ;;  %v5845_v54 = vshll.u32 %v6894_v5, 16 }
 0x573   : > { %6098 = vst.msk [vmem:[%s8872_s13 + $0x8] sm:$0xff] %vm6096_vm9, %v6061_v30  ;;  %6820 = vmatmul.msk.bf16.gmra.mxu2 %vm535_vm1, %v5831_v52  ;;  %v5842_v52 = vshrl.u32 %v6894_v5, 16 }
 0x574   : > { %v5565_v15 = vmax.f32 %v5493_v7, %v5529_v46  ;;  %v5847_v60 = vrot.slane %v5845_v54, 2 }
 0x575   : > { %v5844_v46 = vrot.slane %v5842_v52, 1 }
 0x576   : > { %v5975_v16 = vpop.f32.mrf.mxu2 }
 0x577   : > { %v5976_v42 = vadd.f32 %v8865_v51, %v5975_v16  ;;  %v5408_v29 = vpop.f32.mrf.mxu1 }
 0x578   : > { %v5494_v2 = vadd.f32 %v5408_v29, %v8749_v32  ;;  %v8904_v29 = vpop.f32.mrf.mxu0 }
 0x579   : > { %v6062_v3 = vadd.f32 %v5976_v42, %v5565_v15  ;;  %v8902_v15 = vpop.f32.mrf.mxu3  ;;  %v5848_v42 = vor.u32 %v5847_v60, %v5844_v46  ;;  %v5304_v60 = vld [vmem:[#allocation2 + $0xee] sm:$0xff] }
 0x57a   : > { %v5530_v48 = vmul.f32 0.2, %v5494_v2 }
 0x57b   : > { %6099 = vst.msk [vmem:[%s8872_s13 + $0x10] sm:$0xff] %vm6096_vm9, %v6062_v3  ;;  %v5849_v24 = vsel %vm1434_vm5, %v5839_v63, %v5848_v42 }
 0x57c   : > { %v5566_v19 = vmax.f32 %v5494_v2, %v5530_v48 }
 0x57e   : > { %v5977_v0 = vpop.f32.mrf.mxu2 }
 0x57f   : > { %v5978_v27 = vadd.f32 %v8865_v51, %v5977_v0  ;;  %v5411_v43 = vpop.f32.mrf.mxu1  ;;  %v5301_v0 = vld [vmem:[#allocation2 + $0xd6] sm:$0xff] }
 0x580   : > { %v5495_v55 = vadd.f32 %v5411_v43, %v8757_v23  ;;  %v5326_v43 = vpack.c.bf16 %v5302_v33, %v5301_v0  ;;  %v5303_v33 = vld [vmem:[#allocation2 + $0xe6] sm:$0xff] }
 0x581   : > { %v6063_v4 = vadd.f32 %v5978_v27, %v5566_v19  ;;  %v6895_v19 = vld [vmem:[%s7018_s10 + $0x70] sm:$0xff]  ;;  %v5327_v0 = vpack.c.bf16 %v5304_v60, %v5303_v33 }
 0x582   : > { %v5531_v32 = vmul.f32 0.2, %v5495_v55  ;;  %6731 = vmatmul.msk.bf16.gmra.mxu1 %vm535_vm1, %v5325_v58  ;;  %v5854_v5 = vshll.u32 %v6895_v19, 16 }
 0x583   : > { %6100 = vst.msk [vmem:[%s8872_s13 + $0x18] sm:$0xff] %vm6096_vm9, %v6063_v4  ;;  %6821 = vmatmul.msk.bf16.gmra.mxu2 %vm535_vm1, %v5840_v6  ;;  %v5851_v6 = vshrl.u32 %v6895_v19, 16  ;;  %v8914_v4 = vpop.f32.mrf.mxu3 }
 0x584   : > { %v5567_v7 = vmax.f32 %v5495_v55, %v5531_v32  ;;  %v8917_v32 = vpop.f32.mrf.mxu0  ;;  %v5856_v54 = vrot.slane %v5854_v5, 2 }
 0x585   : > { %v5853_v52 = vrot.slane %v5851_v6, 1 }
 0x586   : > { %v5980_v30 = vpop.f32.mrf.mxu2 }
 0x587   : > { %v5981_v40 = vadd.f32 %v8865_v51, %v5980_v30  ;;  %v5413_v45 = vpop.f32.mrf.mxu1 }
 0x588   : > { %v5496_v1 = vadd.f32 %v5413_v45, %v8768_v18  ;;  %v5857_v45 = vor.u32 %v5856_v54, %v5853_v52 }
 0x589   : > { %v6064_v23 = vadd.f32 %v5981_v40, %v5567_v7 }
 0x58a   : > { %v5532_v16 = vmul.f32 0.2, %v5496_v1 }
 0x58b   : > { %6101 = vst.msk [vmem:[%s8872_s13 + $0x20] sm:$0xff] %vm6096_vm9, %v6064_v23 }
 0x58c   : > { %v5568_v3 = vmax.f32 %v5496_v1, %v5532_v16  ;;  %v8923_v16 = vpop.f32.mrf.mxu3 }
 0x58e   : > { %v5982_v57 = vpop.f32.mrf.mxu2 }
 0x58f   : > { %v5983_v2 = vadd.f32 %v8865_v51, %v5982_v57  ;;  %v5416_v48 = vpop.f32.mrf.mxu1 }
 0x590   : > { %v5497_v27 = vadd.f32 %v5416_v48, %v8776_v20 }
 0x591   : > { %v6065_v18 = vadd.f32 %v5983_v2, %v5568_v3  ;;  %v5858_v3 = vsel %vm1434_vm5, %v5848_v42, %v5857_v45  ;;  %v6896_v2 = vld [vmem:[%s7018_s10 + $0x78] sm:$0xff] }
 0x592   : > { %v5533_v41 = vmul.f32 0.2, %v5497_v27  ;;  %6732 = vmatmul.msk.bf16.gmra.mxu1 %vm535_vm1, %v5326_v43 }
 0x593   : > { %6102 = vst.msk [vmem:[%s8872_s13 + $0x28] sm:$0xff] %vm6096_vm9, %v6065_v18  ;;  %6822 = vmatmul.msk.bf16.gmra.mxu2 %vm535_vm1, %v5849_v24  ;;  %v8928_v24 = vpop.f32.mrf.mxu0  ;;  %v5860_v18 = vshrl.u32 %v6896_v2, 16 }
 0x594   : > { %v5569_v58 = vmax.f32 %v5497_v27, %v5533_v41  ;;  %v5863_v27 = vshll.u32 %v6896_v2, 16 }
 0x595   : > { %v5862_v5 = vrot.slane %v5860_v18, 1 }
 0x596   : > { %v5985_v55 = vpop.f32.mrf.mxu2 }
 0x597   : > { %v5986_v63 = vadd.f32 %v8865_v51, %v5985_v55  ;;  %v5418_v20 = vpop.f32.mrf.mxu1 }
 0x598   : > { %v5498_v7 = vadd.f32 %v5418_v20, %v8787_v50 }
 0x599   : > { %v6066_v30 = vadd.f32 %v5986_v63, %v5569_v58  ;;  %v8936_v63 = vpop.f32.mrf.mxu3 }
 0x59a   : > { %v5534_v40 = vmul.f32 0.2, %v5498_v7 }
 0x59b   : > { %6103 = vst.msk [vmem:[%s8872_s13 + $0x30] sm:$0xff] %vm6096_vm9, %v6066_v30  ;;  %v8940_v52 = vpop.f32.mrf.mxu0 }
 0x59c   : > { %v5570_v23 = vmax.f32 %v5498_v7, %v5534_v40  ;;  %v5306_v7 = vld [vmem:[#allocation2 + $0xfe] sm:$0xff] }
 0x59e   : > { %v5987_v46 = vpop.f32.mrf.mxu2 }
 0x59f   : > { %v5988_v1 = vadd.f32 %v8865_v51, %v5987_v46  ;;  %v5421_v57 = vpop.f32.mrf.mxu1 }
 0x5a0   : > { %v5499_v50 = vadd.f32 %v5421_v57, %v8795_v12  ;;  %v5865_v12 = vrot.slane %v5863_v27, 2  ;;  %v6897_v57 = vld [vmem:[%s7018_s10 + $0x80] sm:$0xff] }
 0x5a1   : > { %v6067_v48 = vadd.f32 %v5988_v1, %v5570_v23  ;;  %v5305_v23 = vld [vmem:[#allocation2 + $0xf6] sm:$0xff] }
 0x5a2   : > { %v5535_v19 = vmul.f32 0.2, %v5499_v50  ;;  %6733 = vmatmul.msk.bf16.gmra.mxu1 %vm535_vm1, %v5327_v0  ;;  %v5866_v54 = vor.u32 %v5865_v12, %v5862_v5  ;;  %v5872_v0 = vshll.u32 %v6897_v57, 16 }
 0x5a3   : > { %6104 = vst.msk [vmem:[%s8872_s13 + $0x38] sm:$0xff] %vm6096_vm9, %v6067_v48  ;;  %6823 = vmatmul.msk.bf16.gmra.mxu2 %vm535_vm1, %v5858_v3  ;;  %v5328_v3 = vpack.c.bf16 %v5306_v7, %v5305_v23  ;;  %v8950_v48 = vpop.f32.mrf.mxu3  ;;  %v5307_v23 = vld [vmem:[#allocation2 + $0x106] sm:$0xff] }
 0x5a4   : > { %v5571_v41 = vmax.f32 %v5499_v50, %v5535_v19  ;;  %v5867_v1 = vsel %vm1434_vm5, %v5857_v45, %v5866_v54  ;;  %v5869_v50 = vshrl.u32 %v6897_v57, 16  ;;  %v8952_v19 = vpop.f32.mrf.mxu0  ;;  %v6898_v57 = vld [vmem:[%s7018_s10 + $0x88] sm:$0xff] }
 0x5a6   : > { %v5990_v43 = vpop.f32.mrf.mxu2 }
 0x5a7   : > { %v5991_v42 = vadd.f32 %v8865_v51, %v5990_v43  ;;  %v5423_v6 = vpop.f32.mrf.mxu1  ;;  %v5871_v43 = vrot.slane %v5869_v50, 1 }
 0x5a8   : > { %v5500_v58 = vadd.f32 %v5423_v6, %v8805_v13 }
 0x5a9   : > { %v6068_v55 = vadd.f32 %v5991_v42, %v5571_v41  ;;  %v5874_v41 = vrot.slane %v5872_v0, 2 }
 0x5aa   : > { %v5536_v20 = vmul.f32 0.2, %v5500_v58 }
 0x5ab   : > { %6105 = vst.msk [vmem:[%s8872_s13 + $0x40] sm:$0xff] %vm6096_vm9, %v6068_v55  ;;  %v5875_v12 = vor.u32 %v5874_v41, %v5871_v43  ;;  %v5007_v55 = vadd.f32 %v8902_v15, %v8652_v22  ;;  %v5878_v15 = vshrl.u32 %v6898_v57, 16 }
 0x5ac   : > { %v5572_v40 = vmax.f32 %v5500_v58, %v5536_v20  ;;  %v8960_v58 = vpop.f32.mrf.mxu3 }
 0x5ad   : > { %v5255_v7 = vadd.f32 %v8904_v29, %v5007_v55  ;;  %v5881_v29 = vshll.u32 %v6898_v57, 16  ;;  %v5310_v55 = vld [vmem:[#allocation2 + $0x11e] sm:$0xff] }
 0x5ae   : > { %v5992_v30 = vpop.f32.mrf.mxu2 }
 0x5af   : > { %v5993_v46 = vadd.f32 %v8865_v51, %v5992_v30  ;;  %v5426_v60 = vpop.f32.mrf.mxu1  ;;  %v5308_v30 = vld [vmem:[#allocation2 + $0x10e] sm:$0xff]  ;;  %v5883_v43 = vrot.slane %v5881_v29, 2 }
 0x5b0   : > { %v5501_v33 = vadd.f32 %v5426_v60, %v8812_v38  ;;  %v8964_v60 = vpop.f32.mrf.mxu0 }
 0x5b1   : > { %v6069_v13 = vadd.f32 %v5993_v46, %v5572_v40 }
 0x5b2   : > { %v5537_v2 = vmul.f32 0.2, %v5501_v33  ;;  %6734 = vmatmul.msk.bf16.gmra.mxu1 %vm535_vm1, %v5328_v3  ;;  %v5329_v3 = vpack.c.bf16 %v5308_v30, %v5307_v23  ;;  %v6899_v23 = vld [vmem:[%s7018_s10 + $0x90] sm:$0xff] }
 0x5b3   : > { %6106 = vst.msk [vmem:[%s8872_s13 + $0x48] sm:$0xff] %vm6096_vm9, %v6069_v13  ;;  %6824 = vmatmul.msk.bf16.gmra.mxu2 %vm535_vm1, %v5867_v1  ;;  %v5876_v1 = vsel %vm1434_vm5, %v5866_v54, %v5875_v12 }
 0x5b4   : > { %v5573_v18 = vmax.f32 %v5501_v33, %v5537_v2  ;;  %v5008_v2 = vadd.f32 %v8914_v4, %v8661_v53  ;;  %v5009_v4 = vadd.f32 %v8923_v16, %v8672_v25 }
 0x5b6   : > { %v5995_v45 = vpop.f32.mrf.mxu2  ;;  %v5256_v54 = vadd.f32 %v8917_v32, %v5008_v2 }
 0x5b7   : > { %v5996_v27 = vadd.f32 %v8865_v51, %v5995_v45  ;;  %v5428_v38 = vpop.f32.mrf.mxu1 }
 0x5b8   : > { %v5502_v6 = vadd.f32 %v5428_v38, %v8822_v47  ;;  %v5880_v38 = vrot.slane %v5878_v15, 1 }
 0x5b9   : > { %v6070_v42 = vadd.f32 %v5996_v27, %v5573_v18  ;;  %v8976_v18 = vpop.f32.mrf.mxu3 }
 0x5ba   : > { %v5538_v5 = vmul.f32 0.2, %v5502_v6  ;;  %v5884_v53 = vor.u32 %v5883_v43, %v5880_v38  ;;  %v5635_v38 = vld [vmem:[%s7018_s10 + $0x98] sm:$0x3] }
 0x5bb   : > { %6107 = vst.msk [vmem:[%s8872_s13 + $0x50] sm:$0xff] %vm6096_vm9, %v6070_v42 }
 0x5bc   : > { %v5574_v40 = vmax.f32 %v5502_v6, %v5538_v5  ;;  %v8978_v6 = vpop.f32.mrf.mxu0 }
 0x5be   : > { %v5997_v20 = vpop.f32.mrf.mxu2 }
 0x5bf   : > { %v5998_v46 = vadd.f32 %v8865_v51, %v5997_v20  ;;  %v5431_v47 = vpop.f32.mrf.mxu1  ;;  %v5257_v20 = vadd.f32 %v8928_v24, %v5009_v4  ;;  %v5887_v24 = vshrl.u32 %v6899_v23, 16  ;;  %v5311_v4 = vld [vmem:[#allocation2 + $0x126] sm:$0xff] }
 0x5c0   : > { %v5503_v33 = vadd.f32 %v5431_v47, %v5255_v7  ;;  %v5885_v47 = vsel %vm1434_vm5, %v5875_v12, %v5884_v53  ;;  %v5010_v12 = vadd.f32 %v8936_v63, %v8681_v31  ;;  %v5714_v31 = vunpack.c.l.b16 %v5635_v38 }
 0x5c1   : > { %v6071_v13 = vadd.f32 %v5998_v46, %v5574_v40  ;;  %v5309_v46 = vld [vmem:[#allocation2 + $0x116] sm:$0xff]  ;;  %v5011_v63 = vadd.f32 %v8950_v48, %v8692_v34 }
 0x5c2   : > { %v5539_v22 = vmul.f32 0.2, %v5503_v33  ;;  %6735 = vmatmul.msk.bf16.gmra.mxu1 %vm535_vm1, %v5329_v3  ;;  %v5890_v3 = vshll.u32 %v6899_v23, 16  ;;  %v5258_v15 = vadd.f32 %v8940_v52, %v5010_v12 }
 0x5c3   : > { %6108 = vst.msk [vmem:[%s8872_s13 + $0x58] sm:$0xff] %vm6096_vm9, %v6071_v13  ;;  %6825 = vmatmul.msk.bf16.gmra.mxu2 %vm535_vm1, %v5876_v1  ;;  %v5330_v13 = vpack.c.bf16 %v5310_v55, %v5309_v46  ;;  %v5259_v55 = vadd.f32 %v8952_v19, %v5011_v63  ;;  %v5733_v46 = vpack.c.b16 %v5714_v31, %v5714_v31 }
 0x5c4   : > { %v5575_v0 = vmax.f32 %v5503_v33, %v5539_v22  ;;  %v8988_v33 = vpop.f32.mrf.mxu3  ;;  %v8994_v16 = vpop.f32.mrf.mxu0 }
 0x5c5   : > { %v5896_v48 = vshrl.u32 %v5733_v46, 16  ;;  %v5899_v19 = vshll.u32 %v5733_v46, 16 }
 0x5c6   : > { %v6000_v50 = vpop.f32.mrf.mxu2 }
 0x5c7   : > { %v6001_v45 = vadd.f32 %v8865_v51, %v6000_v50  ;;  %v5433_v27 = vpop.f32.mrf.mxu1 }
 0x5c8   : > { %v5504_v42 = vadd.f32 %v5433_v27, %v5256_v54  ;;  %v5889_v54 = vrot.slane %v5887_v24, 1 }
 0x5c9   : > { %v6072_v41 = vadd.f32 %v6001_v45, %v5575_v0  ;;  %v5892_v0 = vrot.slane %v5890_v3, 2 }
 0x5ca   : > { %v5540_v5 = vmul.f32 0.2, %v5504_v42 }
 0x5cb   : > { %6109 = vst.msk [vmem:[%s8872_s13 + $0x60] sm:$0xff] %vm6096_vm9, %v6072_v41 }
 0x5cc   : > { %v5576_v30 = vmax.f32 %v5504_v42, %v5540_v5  ;;  %v9003_v41 = vpop.f32.mrf.mxu3  ;;  %v5893_v42 = vor.u32 %v5892_v0, %v5889_v54  ;;  %v9007_v52 = vpop.f32.mrf.mxu0  ;;  %v5313_v0 = vld [vmem:[#allocation2 + $0x136] sm:$0xff] }
 0x5ce   : > { %v6002_v32 = vpop.f32.mrf.mxu2 }
 0x5cf   : > { %v6003_v7 = vadd.f32 %v8865_v51, %v6002_v32  ;;  %v5436_v40 = vpop.f32.mrf.mxu1  ;;  %v5312_v32 = vld [vmem:[#allocation2 + $0x12e] sm:$0xff] }
 0x5d0   : > { %v5505_v57 = vadd.f32 %v5436_v40, %v5257_v20  ;;  %v5894_v40 = vsel %vm1434_vm5, %v5884_v53, %v5893_v42 }
 0x5d1   : > { %v6073_v1 = vadd.f32 %v6003_v7, %v5576_v30 }
 0x5d2   : > { %v5541_v25 = vmul.f32 0.2, %v5505_v57  ;;  %6736 = vmatmul.msk.bf16.gmra.mxu1 %vm535_vm1, %v5330_v13 }
 0x5d3   : > { %6110 = vst.msk [vmem:[%s8872_s13 + $0x68] sm:$0xff] %vm6096_vm9, %v6073_v1  ;;  %6826 = vmatmul.msk.bf16.gmra.mxu2 %vm535_vm1, %v5885_v47  ;;  %v5331_v1 = vpack.c.bf16 %v5312_v32, %v5311_v4 }
 0x5d4   : > { %v5577_v29 = vmax.f32 %v5505_v57, %v5541_v25  ;;  %v5012_v57 = vadd.f32 %v8960_v58, %v8703_v56  ;;  %v4957_v13 = vpop.f32.mrf.mxu3  ;;  %v5205_v12 = vpop.f32.mrf.mxu0  ;;  %v5013_v58 = vadd.f32 %v8976_v18, %v8715_v35  ;;  %v5014_v35 = vadd.f32 %v8988_v33, %v8724_v21 }
 0x5d6   : > { %v6005_v22 = vpop.f32.mrf.mxu2  ;;  %v5260_v53 = vadd.f32 %v8964_v60, %v5012_v57 }
 0x5d7   : > { %v6006_v2 = vadd.f32 %v8865_v51, %v6005_v22  ;;  %v5438_v50 = vpop.f32.mrf.mxu1 }
 0x5d8   : > { %v5506_v27 = vadd.f32 %v5438_v50, %v5258_v15  ;;  %v5898_v15 = vrot.slane %v5896_v48, 1  ;;  %v5015_v48 = vadd.f32 %v9003_v41, %v8734_v28 }
 0x5d9   : > { %v6074_v45 = vadd.f32 %v6006_v2, %v5577_v29  ;;  %v5901_v29 = vrot.slane %v5899_v19, 2 }
 0x5da   : > { %v5542_v43 = vmul.f32 0.2, %v5506_v27  ;;  %v5263_v21 = vadd.f32 %v9007_v52, %v5015_v48 }
 0x5db   : > { %6111 = vst.msk [vmem:[%s8872_s13 + $0x70] sm:$0xff] %vm6096_vm9, %v6074_v45  ;;  %v5314_v45 = vld [vmem:[#allocation2 + $0x13e] sm:$0xff]  ;;  %v5902_v56 = vor.u32 %v5901_v29, %v5898_v15 }
 0x5dc   : > { %v5578_v20 = vmax.f32 %v5506_v27, %v5542_v43  ;;  %v5261_v27 = vadd.f32 %v8978_v6, %v5013_v58  ;;  %v5332_v31 = vpack.c.bf16 %v5314_v45, %v5313_v0  ;;  %v4960_v63 = vpop.f32.mrf.mxu3  ;;  %v5262_v6 = vadd.f32 %v8994_v16, %v5014_v35 }
 0x5dd   : > { %v5903_v4 = vsel %vm1434_vm5, %v5893_v42, %v5902_v56  ;;  %v5017_v45 = vadd.f32 %v4960_v63, %v8753_v39 }
 0x5de   : > { %v6007_v5 = vpop.f32.mrf.mxu2 }
 0x5df   : > { %v6008_v30 = vadd.f32 %v8865_v51, %v6007_v5  ;;  %v5441_v7 = vpop.f32.mrf.mxu1 }
 0x5e0   : > { %v5507_v23 = vadd.f32 %v5441_v7, %v5259_v55 }
 0x5e1   : > { %v6075_v47 = vadd.f32 %v6008_v30, %v5578_v20  ;;  %v5208_v20 = vpop.f32.mrf.mxu0 }
 0x5e2   : > { %v5543_v34 = vmul.f32 0.2, %v5507_v23  ;;  %6737 = vmatmul.msk.bf16.gmra.mxu1 %vm535_vm1, %v5331_v1 }
 0x5e3   : > { %6112 = vst.msk [vmem:[%s8872_s13 + $0x78] sm:$0xff] %vm6096_vm9, %v6075_v47  ;;  %6827 = vmatmul.msk.bf16.gmra.mxu2 %vm535_vm1, %v5894_v40 }
 0x5e4   : > { %v5579_v24 = vmax.f32 %v5507_v23, %v5543_v34  ;;  %v4962_v23 = vpop.f32.mrf.mxu3 }
 0x5e6   : > { %v6010_v25 = vpop.f32.mrf.mxu2 }
 0x5e7   : > { %v6011_v3 = vadd.f32 %v8865_v51, %v6010_v25  ;;  %v5443_v22 = vpop.f32.mrf.mxu1 }
 0x5e8   : > { %v5508_v50 = vadd.f32 %v5443_v22, %v5260_v53  ;;  %v5016_v22 = vadd.f32 %v4957_v13, %v8743_v9 }
 0x5e9   : > { %v6076_v2 = vadd.f32 %v6011_v3, %v5579_v24  ;;  %v5210_v34 = vpop.f32.mrf.mxu0 }
 0x5ea   : > { %v5544_v54 = vmul.f32 0.2, %v5508_v50 }
 0x5eb   : > { %6113 = vst.msk [vmem:[%s8872_s13 + $0x80] sm:$0xff] %vm6096_vm9, %v6076_v2  ;;  %v5264_v2 = vadd.f32 %v5205_v12, %v5016_v22 }
 0x5ec   : > { %v5580_v38 = vmax.f32 %v5508_v50, %v5544_v54  ;;  %v4965_v3 = vpop.f32.mrf.mxu3 }
 0x5ee   : > { %v6012_v60 = vpop.f32.mrf.mxu2 }
 0x5ef   : > { %v6013_v43 = vadd.f32 %v8865_v51, %v6012_v60  ;;  %v5446_v5 = vpop.f32.mrf.mxu1  ;;  %v5265_v60 = vadd.f32 %v5208_v20, %v5017_v45 }
 0x5f0   : > { %v5509_v55 = vadd.f32 %v5446_v5, %v5261_v27  ;;  %v5018_v5 = vadd.f32 %v4962_v23, %v8762_v36 }
 0x5f1   : > { %v6077_v32 = vadd.f32 %v6013_v43, %v5580_v38  ;;  %v5213_v15 = vpop.f32.mrf.mxu0 }
 0x5f2   : > { %v5545_v30 = vmul.f32 0.2, %v5509_v55  ;;  %6738 = vmatmul.msk.bf16.gmra.mxu1 %vm535_vm1, %v5332_v31 }
 0x5f3   : > { %6114 = vst.msk [vmem:[%s8872_s13 + $0x88] sm:$0xff] %vm6096_vm9, %v6077_v32  ;;  %6828 = vmatmul.msk.bf16.gmra.mxu2 %vm535_vm1, %v5903_v4  ;;  %v5266_v32 = vadd.f32 %v5210_v34, %v5018_v5 }
 0x5f4   : > { %v5581_v7 = vmax.f32 %v5509_v55, %v5545_v30  ;;  %v4967_v56 = vpop.f32.mrf.mxu3 }
 0x5f6   : > { %v6015_v18 = vpop.f32.mrf.mxu2 }
 0x5f7   : > { %v6016_v42 = vadd.f32 %v8865_v51, %v6015_v18  ;;  %v5448_v40 = vpop.f32.mrf.mxu1 }
 0x5f8   : > { %v5510_v47 = vadd.f32 %v5448_v40, %v5262_v6 }
 0x5f9   : > { %v6078_v46 = vadd.f32 %v6016_v42, %v5581_v7  ;;  %v5215_v13 = vpop.f32.mrf.mxu0  ;;  %v5019_v7 = vadd.f32 %v4965_v3, %v8772_v14 }
 0x5fa   : > { %v5546_v1 = vmul.f32 0.2, %v5510_v47 }
 0x5fb   : > { %6115 = vst.msk [vmem:[%s8872_s13 + $0x90] sm:$0xff] %vm6096_vm9, %v6078_v46  ;;  %v5267_v40 = vadd.f32 %v5213_v15, %v5019_v7 }
 0x5fc   : > { %v5582_v33 = vmax.f32 %v5510_v47, %v5546_v1  ;;  %v4970_v63 = vpop.f32.mrf.mxu3 }
 0x5fd   : > { %v5021_v15 = vadd.f32 %v4970_v63, %v8791_v49 }
 0x5fe   : > { %v6017_v19 = vpop.f32.mrf.mxu2 }
 0x5ff   : > { %v6018_v16 = vadd.f32 %v8865_v51, %v6017_v19  ;;  %v5451_v57 = vpop.f32.mrf.mxu1 }
 0x600   : > { %v5511_v53 = vadd.f32 %v5451_v57, %v5263_v21  ;;  %v5020_v21 = vadd.f32 %v4967_v56, %v8781_v44 }
 0x601   : > { %v6079_v25 = vadd.f32 %v6018_v16, %v5582_v33  ;;  %v5218_v18 = vpop.f32.mrf.mxu0 }
 0x602   : > { %v5547_v24 = vmul.f32 0.2, %v5511_v53  ;;  %v5268_v16 = vadd.f32 %v5215_v13, %v5020_v21 }
 0x603   : > { %6116 = vst.msk [vmem:[%s8872_s13 + $0x98] sm:$0xff] %vm6096_vm9, %v6079_v25 }
 0x604   : > { %v5583_v28 = vmax.f32 %v5511_v53, %v5547_v24  ;;  %v4972_v34 = vpop.f32.mrf.mxu3 }
 0x605   : > { %v5022_v45 = vadd.f32 %v4972_v34, %v8800_v61 }
 0x606   : > { %v6020_v29 = vpop.f32.mrf.mxu2 }
 0x607   : > { %v6021_v41 = vadd.f32 %v8865_v51, %v6020_v29  ;;  %v5453_v52 = vpop.f32.mrf.mxu1 }
 0x608   : > { %v5512_v54 = vadd.f32 %v5453_v52, %v5264_v2 }
 0x609   : > { %v6080_v50 = vadd.f32 %v6021_v41, %v5583_v28  ;;  %v5220_v19 = vpop.f32.mrf.mxu0  ;;  %v5269_v28 = vadd.f32 %v5218_v18, %v5021_v15 }
 0x60a   : > { %v5548_v0 = vmul.f32 0.2, %v5512_v54 }
 0x60b   : > { %6117 = vst.msk [vmem:[%s8872_s13 + $0xa0] sm:$0xff] %vm6096_vm9, %v6080_v50 }
 0x60c   : > { %v5584_v27 = vmax.f32 %v5512_v54, %v5548_v0  ;;  %v4975_v22 = vpop.f32.mrf.mxu3 }
 0x60e   : > { %v6022_v58 = vpop.f32.mrf.mxu2 }
 0x60f   : > { %v6023_v9 = vadd.f32 %v8865_v51, %v6022_v58  ;;  %v5456_v12 = vpop.f32.mrf.mxu1 }
 0x610   : > { %v5513_v43 = vadd.f32 %v5456_v12, %v5265_v60  ;;  %v5270_v60 = vadd.f32 %v5220_v19, %v5022_v45 }
 0x611   : > { %v6081_v38 = vadd.f32 %v6023_v9, %v5584_v27  ;;  %v5223_v29 = vpop.f32.mrf.mxu0 }
 0x612   : > { %v5549_v31 = vmul.f32 0.2, %v5513_v43 }
 0x613   : > { %6118 = vst.msk [vmem:[%s8872_s13 + $0xa8] sm:$0xff] %vm6096_vm9, %v6081_v38 }
 0x614   : > { %v5585_v55 = vmax.f32 %v5513_v43, %v5549_v31  ;;  %v4977_v56 = vpop.f32.mrf.mxu3  ;;  %v5023_v31 = vadd.f32 %v4975_v22, %v8809_v37 }
 0x615   : > { %v5024_v18 = vadd.f32 %v4977_v56, %v8817_v17 }
 0x616   : > { %v6025_v4 = vpop.f32.mrf.mxu2 }
 0x617   : > { %v6026_v39 = vadd.f32 %v8865_v51, %v6025_v4  ;;  %v5458_v20 = vpop.f32.mrf.mxu1  ;;  %v5271_v4 = vadd.f32 %v5223_v29, %v5023_v31 }
 0x618   : > { %v5514_v35 = vadd.f32 %v5458_v20, %v5266_v32 }
 0x619   : > { %v6082_v30 = vadd.f32 %v6026_v39, %v5585_v55  ;;  %v5225_v9 = vpop.f32.mrf.mxu0 }
 0x61a   : > { %v5550_v6 = vmul.f32 0.2, %v5514_v35  ;;  %v5272_v7 = vadd.f32 %v5225_v9, %v5024_v18 }
 0x61b   : > { %6119 = vst.msk [vmem:[%s8872_s13 + $0xb0] sm:$0xff] %vm6096_vm9, %v6082_v30 }
 0x61c   : > { %v5586_v46 = vmax.f32 %v5514_v35, %v5550_v6  ;;  %v4980_v55 = vpop.f32.mrf.mxu3 }
 0x61d   : > { %v5025_v34 = vadd.f32 %v4980_v55, %v8826_v26 }
 0x61e   : > { %v6027_v42 = vpop.f32.mrf.mxu2 }
 0x61f   : > { %v6028_v36 = vadd.f32 %v8865_v51, %v6027_v42  ;;  %v5461_v47 = vpop.f32.mrf.mxu1 }
 0x620   : > { %v5515_v1 = vadd.f32 %v5461_v47, %v5267_v40 }
 0x621   : > { %v6083_v23 = vadd.f32 %v6028_v36, %v5586_v46  ;;  %v5228_v30 = vpop.f32.mrf.mxu0 }
 0x622   : > { %v5551_v48 = vmul.f32 0.2, %v5515_v1  ;;  %v5273_v19 = vadd.f32 %v5228_v30, %v5025_v34 }
 0x623   : > { %6120 = vst.msk [vmem:[%s8872_s13 + $0xb8] sm:$0xff] %vm6096_vm9, %v6083_v23 }
 0x624   : > { %v5587_v57 = vmax.f32 %v5515_v1, %v5551_v48  ;;  %v4982_v47 = vpop.f32.mrf.mxu3 }
 0x626   : > { %v6030_v33 = vpop.f32.mrf.mxu2 }
 0x627   : > { %v6031_v14 = vadd.f32 %v8865_v51, %v6030_v33  ;;  %v5463_v25 = vpop.f32.mrf.mxu1 }
 0x628   : > { %v5516_v24 = vadd.f32 %v5463_v25, %v5268_v16 }
 0x629   : > { %v6084_v53 = vadd.f32 %v6031_v14, %v5587_v57  ;;  %v5230_v1 = vpop.f32.mrf.mxu0 }
 0x62a   : > { %v5552_v3 = vmul.f32 0.2, %v5516_v24 }
 0x62b   : > { %6121 = vst.msk [vmem:[%s8872_s13 + $0xc0] sm:$0xff] %vm6096_vm9, %v6084_v53  ;;  %v5026_v53 = vadd.f32 %v4982_v47, %v8832_v10 }
 0x62c   : > { %v5588_v41 = vmax.f32 %v5516_v24, %v5552_v3  ;;  %v4985_v25 = vpop.f32.mrf.mxu3 }
 0x62d   : > { %v5274_v22 = vadd.f32 %v5230_v1, %v5026_v53 }
 0x62e   : > { %v6032_v2 = vpop.f32.mrf.mxu2 }
 0x62f   : > { %v6033_v44 = vadd.f32 %v8865_v51, %v6032_v2  ;;  %v5466_v52 = vpop.f32.mrf.mxu1 }
 0x630   : > { %v5517_v54 = vadd.f32 %v5466_v52, %v5269_v28 }
 0x631   : > { %v6085_v50 = vadd.f32 %v6033_v44, %v5588_v41  ;;  %v5233_v24 = vpop.f32.mrf.mxu0  ;;  %v5027_v44 = vadd.f32 %v4985_v25, %v8839_v8 }
 0x632   : > { %v5553_v0 = vmul.f32 0.2, %v5517_v54 }
 0x633   : > { %6122 = vst.msk [vmem:[%s8872_s13 + $0xc8] sm:$0xff] %vm6096_vm9, %v6085_v50 }
 0x634   : > { %v5589_v27 = vmax.f32 %v5517_v54, %v5553_v0  ;;  %v4987_v52 = vpop.f32.mrf.mxu3  ;;  %v5275_v54 = vadd.f32 %v5233_v24, %v5027_v44 }
 0x636   : > { %v6035_v58 = vpop.f32.mrf.mxu2 }
 0x637   : > { %v6036_v49 = vadd.f32 %v8865_v51, %v6035_v58  ;;  %v5468_v13 = vpop.f32.mrf.mxu1 }
 0x638   : > { %v5518_v38 = vadd.f32 %v5468_v13, %v5270_v60 }
 0x639   : > { %v6086_v12 = vadd.f32 %v6036_v49, %v5589_v27  ;;  %v5235_v45 = vpop.f32.mrf.mxu0  ;;  %v5028_v49 = vadd.f32 %v4987_v52, %v8844_v11 }
 0x63a   : > { %v5554_v43 = vmul.f32 0.2, %v5518_v38 }
 0x63b   : > { %6123 = vst.msk [vmem:[%s8872_s13 + $0xd0] sm:$0xff] %vm6096_vm9, %v6086_v12  ;;  %v5276_v13 = vadd.f32 %v5235_v45, %v5028_v49 }
 0x63c   : > { %v5590_v32 = vmax.f32 %v5518_v38, %v5554_v43  ;;  %v4990_v38 = vpop.f32.mrf.mxu3 }
 0x63e   : > { %v6037_v5 = vpop.f32.mrf.mxu2 }
 0x63f   : > { %v6038_v61 = vadd.f32 %v8865_v51, %v6037_v5  ;;  %v5471_v39 = vpop.f32.mrf.mxu1 }
 0x640   : > { %v5519_v20 = vadd.f32 %v5471_v39, %v5271_v4 }
 0x641   : > { %v6087_v63 = vadd.f32 %v6038_v61, %v5590_v32  ;;  %v5238_v4 = vpop.f32.mrf.mxu0  ;;  %v5029_v61 = vadd.f32 %v4990_v38, %v8851_v62 }
 0x642   : > { %v5555_v35 = vmul.f32 0.2, %v5519_v20 }
 0x643   : > { %6124 = vst.msk [vmem:[%s8872_s13 + $0xd8] sm:$0xff] %vm6096_vm9, %v6087_v63  ;;  %v5277_v39 = vadd.f32 %v5238_v4, %v5029_v61 }
 0x644   : > { %v5591_v42 = vmax.f32 %v5519_v20, %v5555_v35  ;;  %v4992_v18 = vpop.f32.mrf.mxu3 }
 0x646   : > { %v6040_v6 = vpop.f32.mrf.mxu2 }
 0x647   : > { %v6041_v37 = vadd.f32 %v8865_v51, %v6040_v6  ;;  %v5473_v40 = vpop.f32.mrf.mxu1 }
 0x648   : > { %v5520_v36 = vadd.f32 %v5473_v40, %v5272_v7 }
 0x649   : > { %v6088_v46 = vadd.f32 %v6041_v37, %v5591_v42  ;;  %v5240_v7 = vpop.f32.mrf.mxu0  ;;  %v5030_v42 = vadd.f32 %v4992_v18, %v8855_v59 }
 0x64a   : > { %v5556_v23 = vmul.f32 0.2, %v5520_v36 }
 0x64b   : > { %6125 = vst.msk [vmem:[%s8872_s13 + $0xe0] sm:$0xff] %vm6096_vm9, %v6088_v46  ;;  %v5278_v40 = vadd.f32 %v5240_v7, %v5030_v42 }
 0x64c   : > { %v5592_v21 = vmax.f32 %v5520_v36, %v5556_v23 }
 0x64e   : > { %v6042_v48 = vpop.f32.mrf.mxu2 }
 0x64f   : > { %v6043_v17 = vadd.f32 %v8865_v51, %v6042_v48  ;;  %v5476_v33 = vpop.f32.mrf.mxu1 }
 0x650   : > { %v5521_v57 = vadd.f32 %v5476_v33, %v5273_v19 }
 0x651   : > { %v6089_v16 = vadd.f32 %v6043_v17, %v5592_v21 }
 0x652   : > { %v5557_v14 = vmul.f32 0.2, %v5521_v57 }
 0x653   : > { %6126 = vst.msk [vmem:[%s8872_s13 + $0xe8] sm:$0xff] %vm6096_vm9, %v6089_v16 }
 0x654   : > { %v5593_v15 = vmax.f32 %v5521_v57, %v5557_v14 }
 0x656   : > { %v6045_v3 = vpop.f32.mrf.mxu2 }
 0x657   : > { %v6046_v26 = vadd.f32 %v8865_v51, %v6045_v3  ;;  %v5478_v29 = vpop.f32.mrf.mxu1 }
 0x658   : > { %v5522_v28 = vadd.f32 %v5478_v29, %v5274_v22 }
 0x659   : > { %v6090_v2 = vadd.f32 %v6046_v26, %v5593_v15 }
 0x65a   : > { %v5558_v41 = vmul.f32 0.2, %v5522_v28 }
 0x65b   : > { %6127 = vst.msk [vmem:[%s8872_s13 + $0xf0] sm:$0xff] %vm6096_vm9, %v6090_v2 }
 0x65c   : > { %v5594_v0 = vmax.f32 %v5522_v28, %v5558_v41 }
 0x65e   : > { %v6047_v50 = vpop.f32.mrf.mxu2 }
 0x65f   : > { %v6048_v10 = vadd.f32 %v8865_v51, %v6047_v50  ;;  %v5481_v56 = vpop.f32.mrf.mxu1 }
 0x660   : > { %v5523_v60 = vadd.f32 %v5481_v56, %v5275_v54 }
 0x661   : > { %v6091_v58 = vadd.f32 %v6048_v10, %v5594_v0 }
 0x662   : > { %v5559_v27 = vmul.f32 0.2, %v5523_v60 }
 0x663   : > { %6128 = vst.msk [vmem:[%s8872_s13 + $0xf8] sm:$0xff] %vm6096_vm9, %v6091_v58 }
 0x664   : > { %v5595_v12 = vmax.f32 %v5523_v60, %v5559_v27 }
 0x666   : > { %v6050_v9 = vpop.f32.mrf.mxu2 }
 0x667   : > { %v6051_v8 = vadd.f32 %v8865_v51, %v6050_v9  ;;  %v5483_v43 = vpop.f32.mrf.mxu1 }
 0x668   : > { %v5524_v5 = vadd.f32 %v5483_v43, %v5276_v13 }
 0x669   : > { %v6092_v31 = vadd.f32 %v6051_v8, %v5595_v12 }
 0x66a   : > { %v5560_v32 = vmul.f32 0.2, %v5524_v5 }
 0x66b   : > { %6129 = vst.msk [vmem:[%s8872_s13 + $0x100] sm:$0xff] %vm6096_vm9, %v6092_v31 }
 0x66c   : > { %v5596_v63 = vmax.f32 %v5524_v5, %v5560_v32 }
 0x66e   : > { %v6052_v55 = vpop.f32.mrf.mxu2 }
 0x66f   : > { %v6053_v11 = vadd.f32 %v8865_v51, %v6052_v55  ;;  %v5486_v20 = vpop.f32.mrf.mxu1 }
 0x670   : > { %v5525_v35 = vadd.f32 %v5486_v20, %v5277_v39 }
 0x671   : > { %v6093_v30 = vadd.f32 %v6053_v11, %v5596_v63 }
 0x672   : > { %v5561_v6 = vmul.f32 0.2, %v5525_v35 }
 0x673   : > { %6130 = vst.msk [vmem:[%s8872_s13 + $0x108] sm:$0xff] %vm6096_vm9, %v6093_v30 }
 0x674   : > { %v5597_v62 = vmax.f32 %v5525_v35, %v5561_v6 }
 0x676   : > { %v6055_v37 = vpop.f32.mrf.mxu2 }
 0x677   : > { %v6056_v46 = vadd.f32 %v8865_v51, %v6055_v37  ;;  %v5488_v36 = vpop.f32.mrf.mxu1 }
 0x678   : > { %v5526_v23 = vadd.f32 %v5488_v36, %v5278_v40 }
 0x679   : > { %v6094_v47 = vadd.f32 %v6056_v46, %v5597_v62 }
 0x67a   : > { %v5562_v1 = vmul.f32 0.2, %v5526_v23 }
 0x67b   : > { %6131 = vst.msk [vmem:[%s8872_s13 + $0x110] sm:$0xff] %vm6096_vm9, %v6094_v47 }
 0x67c   : > { %v5598_v48 = vmax.f32 %v5526_v23, %v5562_v1 }
 0x67e   : > { %v6057_v34 = vpop.f32.mrf.mxu2 }
 0x67f   : > { %v6058_v19 = vadd.f32 %v8865_v51, %v6057_v34 }
 0x681   : > { %v6095_v21 = vadd.f32 %v6058_v19, %v5598_v48 }
 0x683   : > { %6132 = vst.msk [vmem:[%s8872_s13 + $0x118] sm:$0xff] %vm6096_vm9, %v6095_v21 }
 0x684 PF: > { %s16_s21 = sadd.s32 1, %s6949_s21  }
 0x685   : > { %p13_p4 = scmp.ge.s32.totalorder %s16_s21, 4  }
 0x687   :  { %15 = sbr.rel (!%p13_p4) target bundleno = 1 (0x1), region = 90 }

</bundles_post_ra>
